<compile_context>
chip_gen: v6e
topology: v6e:2x2x1
jax: 0.10.0
libtpu: 0.0.40
codegen_flags: <defaults>
</compile_context>

<pallas_src>
import functools

import jax
import jax.numpy as jnp
from jax.experimental import pallas as pl
from jax.experimental.pallas import tpu as pltpu


def _round_up(x, m):
    return (x + m - 1) // m * m


# ----------------------------------------------------------------------------
# Kernel 1: bf16 x bf16 -> f32 GEMM with fused epilogue
#           out = A @ W + shift (+ residual) (, ReLU), stored as bf16.
#           (BN scale is pre-folded into W, so epilogue is add-only.)
# ----------------------------------------------------------------------------
def _gemm_fused_kernel(*refs, relu, has_res):
    if has_res:
        a_ref, b_ref, t_ref, r_ref, o_ref = refs
    else:
        a_ref, b_ref, t_ref, o_ref = refs
    acc = jnp.dot(a_ref[...], b_ref[...], preferred_element_type=jnp.float32)
    acc = acc + t_ref[...]
    if has_res:
        acc = acc + r_ref[...].astype(jnp.float32)
    if relu:
        acc = jnp.maximum(acc, 0.0)
    o_ref[...] = acc.astype(o_ref.dtype)


def _pick_tm(mp):
    """Row tile: multiple of 16, capped at 256, >=2 tiles when possible (v7x 2 TCs)."""
    for tm in (256, 128, 64, 32, 16):
        if tm <= mp // 2 and mp % tm == 0:
            return tm
    return mp


def gemm_fused(a_bf16, w_bf16, shift_f32, residual=None, relu=False):
    """(M,K)bf16 @ (K,N)bf16 + shift[1,N]f32 (+ residual[M,N]) (+ReLU) -> (M,N)bf16."""
    M, K = a_bf16.shape
    N = w_bf16.shape[1]
    Mp = _round_up(M, 16)
    if Mp != M:  # not hit for the shapes in this script
        a_bf16 = jnp.pad(a_bf16, ((0, Mp - M), (0, 0)))
        if residual is not None:
            residual = jnp.pad(residual, ((0, Mp - M), (0, 0)))
    tm = _pick_tm(Mp)

    in_specs = [
        pl.BlockSpec((tm, K), lambda i: (i, 0)),   # A row tile, full (unpadded) K
        pl.BlockSpec((K, N), lambda i: (0, 0)),    # whole weight matrix
        pl.BlockSpec((1, N), lambda i: (0, 0)),    # folded BN/bias shift
    ]
    args = [a_bf16, w_bf16, shift_f32]
    if residual is not None:
        in_specs.append(pl.BlockSpec((tm, N), lambda i: (i, 0)))
        args.append(residual)

    out = pl.pallas_call(
        functools.partial(_gemm_fused_kernel, relu=relu,
                          has_res=residual is not None),
        out_shape=jax.ShapeDtypeStruct((Mp, N), jnp.bfloat16),
        grid=(Mp // tm,),
        in_specs=in_specs,
        out_specs=pl.BlockSpec((tm, N), lambda i: (i, 0)),
        compiler_params=pltpu.CompilerParams(
            dimension_semantics=("parallel",)),
    )(*args)
    return out[:M] if Mp != M else out


# ----------------------------------------------------------------------------
# Kernel 2: stride-1 3x3 window max (per batch element); the stride-2
#           subsample outside the kernel completes MaxPool2d(3, 2, 1).
# ----------------------------------------------------------------------------
def _maxpool3x3_s1_kernel(x_ref, o_ref):
    H, W = o_ref.shape[1], o_ref.shape[2]
    x = x_ref[...]                              # (1, H+2, W+2, C)
    m = x[:, 0:H, 0:W, :]
    for di in range(3):
        for dj in range(3):
            if di == 0 and dj == 0:
                continue
            m = jnp.maximum(m, x[:, di:di + H, dj:dj + W, :])
    o_ref[...] = m


def maxpool2d_3x3_s2_p1(x_nhwc):
    N, H, W, C = x_nhwc.shape
    neg = jnp.asarray(-1e30, x_nhwc.dtype)
    xp = jnp.pad(x_nhwc, ((0, 0), (1, 1), (1, 1), (0, 0)), constant_values=neg)
    m = pl.pallas_call(
        _maxpool3x3_s1_kernel,
        out_shape=jax.ShapeDtypeStruct((N, H, W, C), x_nhwc.dtype),
        grid=(N,),
        in_specs=[pl.BlockSpec((1, H + 2, W + 2, C), lambda n: (n, 0, 0, 0))],
        out_specs=pl.BlockSpec((1, H, W, C), lambda n: (n, 0, 0, 0)),
        compiler_params=pltpu.CompilerParams(
            dimension_semantics=("parallel",)),
    )(xp)
    # stride-2 subsample of the stride-1 window max == MaxPool2d(3, 2, 1)
    return m[:, ::2, ::2, :]


# ----------------------------------------------------------------------------
# Kernel 3: AdaptiveAvgPool2d((1,1)) fused with the final Linear layer.
# ----------------------------------------------------------------------------
def _avgpool_fc_kernel(x_ref, w_ref, b_ref, o_ref):
    pooled = jnp.mean(x_ref[...].astype(jnp.float32), axis=1)        # (N, C)
    o_ref[...] = (jnp.dot(pooled.astype(w_ref.dtype), w_ref[...],
                          preferred_element_type=jnp.float32) + b_ref[...])


def avgpool_fc(x_nhwc, fc):
    N, H, W, C = x_nhwc.shape
    F = fc["w"].shape[1]
    xr = x_nhwc.reshape(N, H * W, C)
    return pl.pallas_call(
        _avgpool_fc_kernel,
        out_shape=jax.ShapeDtypeStruct((N, F), jnp.float32),
        grid=(1,),
        in_specs=[
            pl.BlockSpec((N, H * W, C), lambda i: (0, 0, 0)),
            pl.BlockSpec((C, F), lambda i: (0, 0)),
            pl.BlockSpec((1, F), lambda i: (0, 0)),
        ],
        out_specs=pl.BlockSpec((N, F), lambda i: (0, 0)),
    )(xr, fc["w"], fc["b"])


# ----------------------------------------------------------------------------
# Conv (+ folded BN, + optional residual, + optional ReLU) via im2col + GEMM
# ----------------------------------------------------------------------------
def _im2col(x_nhwc, kh, kw, stride, pad):
    N, H, W, C = x_nhwc.shape
    Ho = (H + 2 * pad - kh) // stride + 1
    Wo = (W + 2 * pad - kw) // stride + 1
    xp = jnp.pad(x_nhwc, ((0, 0), (pad, pad), (pad, pad), (0, 0))) if pad else x_nhwc
    cols = [xp[:, i:i + stride * Ho:stride, j:j + stride * Wo:stride, :]
            for i in range(kh) for j in range(kw)]
    patches = jnp.stack(cols, axis=3).reshape(N * Ho * Wo, kh * kw * C)
    return patches, Ho, Wo


def conv_layer(x_nhwc, lp, stride, pad, relu, residual_nhwc=None):
    """lp: prepared params {w:(kh*kw*Cin,Cout) bf16, shift:(1,Cout) f32, kh, kw}."""
    patches, Ho, Wo = _im2col(x_nhwc, lp["kh"], lp["kw"], stride, pad)
    res2d = None
    if residual_nhwc is not None:
        res2d = residual_nhwc.reshape(-1, residual_nhwc.shape[-1])
    out = gemm_fused(patches, lp["w"], lp["shift"], residual=res2d, relu=relu)
    return out.reshape(x_nhwc.shape[0], Ho, Wo, -1)


# ----------------------------------------------------------------------------
# Parameter init (raw, PyTorch layout) and one-time preparation (fold/cast)
# ----------------------------------------------------------------------------
def _bn_params(c):
    return (jnp.ones((c,), jnp.float32), jnp.zeros((c,), jnp.float32),
            jnp.zeros((c,), jnp.float32), jnp.ones((c,), jnp.float32), 1e-5)


def _conv_init(key, c_out, c_in, kh, kw):
    kw_, kb_ = jax.random.split(key)
    fan_in = c_in * kh * kw
    w = jax.random.normal(kw_, (c_out, c_in, kh, kw), jnp.float32) / jnp.sqrt(fan_in)
    b = jax.random.normal(kb_, (c_out,), jnp.float32) * 0.01
    return w, b


def init_params(key, block_sizes, res=True, norm=True, num_classes=200):
    keys = jax.random.split(key, 2 + len(block_sizes))
    params = {}
    w, b = _conv_init(keys[0], 64, 3, 7, 7)
    params["stem"] = {"w": w, "b": b, "bn": _bn_params(64) if norm else None}

    blocks = []
    for idx, (c_in, c_out, stride) in enumerate(block_sizes):
        k1, k2, k3 = jax.random.split(keys[1 + idx], 3)
        w1, b1 = _conv_init(k1, c_out, c_in, 3, 3)
        w2, b2 = _conv_init(k2, c_out, c_out, 3, 3)
        blk = {"w1": w1, "b1": b1, "bn1": _bn_params(c_out) if norm else None,
               "w2": w2, "b2": b2, "bn2": _bn_params(c_out) if norm else None,
               "stride": stride, "res": res, "down": None}
        if res and stride != 1:
            wd, bd = _conv_init(k3, c_out, c_in, 1, 1)
            blk["down"] = {"w": wd, "b": bd,
                           "bn": _bn_params(c_out) if norm else None}
        blocks.append(blk)
    params["blocks"] = blocks

    kf1, kf2 = jax.random.split(keys[-1])
    c_last = block_sizes[-1][1]
    params["fc_w"] = jax.random.normal(kf1, (num_classes, c_last),
                                       jnp.float32) / jnp.sqrt(c_last)
    params["fc_b"] = jax.random.normal(kf2, (num_classes,), jnp.float32) * 0.01
    return params


def _prep_conv(w, b, bn):
    """Fold conv bias + inference BN into (bf16 weight matrix, f32 shift)."""
    c_out, _, kh, kw = w.shape
    w_mat = jnp.transpose(w, (2, 3, 1, 0)).reshape(-1, c_out)    # (kh*kw*Cin, Cout)
    if bn is not None:
        gamma, beta, mean, var, eps = bn
        scale = gamma / jnp.sqrt(var + eps)
        shift = beta + (b - mean) * scale
        w_mat = w_mat * scale[None, :]            # BN scale folded into weights
    else:
        shift = b
    return {"w": w_mat.astype(jnp.bfloat16),
            "shift": shift.reshape(1, c_out).astype(jnp.float32),
            "kh": kh, "kw": kw}


def prepare_params(raw):
    p = {"stem": _prep_conv(raw["stem"]["w"], raw["stem"]["b"], raw["stem"]["bn"])}
    blocks = []
    for blk in raw["blocks"]:
        blocks.append({
            "stride": blk["stride"], "res": blk["res"],
            "c1": _prep_conv(blk["w1"], blk["b1"], blk["bn1"]),
            "c2": _prep_conv(blk["w2"], blk["b2"], blk["bn2"]),
            "down": (_prep_conv(blk["down"]["w"], blk["down"]["b"],
                                blk["down"]["bn"])
                     if blk["down"] is not None else None)})
    p["blocks"] = blocks
    p["fc"] = {"w": raw["fc_w"].T.astype(jnp.bfloat16),
               "b": raw["fc_b"].reshape(1, -1).astype(jnp.float32)}
    return p


# ----------------------------------------------------------------------------
# Model forward
# ----------------------------------------------------------------------------
def basic_block(x, p):
    identity = x
    out = conv_layer(x, p["c1"], stride=p["stride"], pad=1, relu=True)
    # dropout1: identity (eval mode)
    if p["res"]:
        if p["down"] is not None:
            identity = conv_layer(identity, p["down"], stride=p["stride"],
                                  pad=0, relu=False)
        # conv2 + BN + residual add + ReLU fused into a single GEMM epilogue
        out = conv_layer(out, p["c2"], stride=1, pad=1, relu=True,
                         residual_nhwc=identity)
    else:
        out = conv_layer(out, p["c2"], stride=1, pad=1, relu=True)
    # dropout2: identity (eval mode)
    return out


def resnet_forward(params, x_nchw):
    x = jnp.transpose(x_nchw, (0, 2, 3, 1)).astype(jnp.bfloat16)   # NCHW -> NHWC bf16
    # stem: Conv(3->64, 7, s2, p3) + BN + ReLU + MaxPool(3, s2, p1)
    x = conv_layer(x, params["stem"], stride=2, pad=3, relu=True)
    x = maxpool2d_3x3_s2_p1(x)
    for blk in params["blocks"]:
        x = basic_block(x, blk)
    # AdaptiveAvgPool((1,1)) + flatten + Dropout(identity, eval) + Linear
    return avgpool_fc(x, params["fc"])


if __name__ == "__main__":
    key = jax.random.PRNGKey(0)
    kp, kx = jax.random.split(key)

    # block_sizes entries are (c_in, c_out, stride), as BasicBlock(*block_size)
    block_sizes = [(64, 64, 1), (64, 128, 2)]
    params = prepare_params(
        init_params(kp, block_sizes, res=True, norm=True, num_classes=200))

    x = jax.random.normal(kx, (2, 3, 32, 32), jnp.float32)   # NCHW like PyTorch
    fwd = jax.jit(lambda inp: resnet_forward(params, inp))
    out = jax.block_until_ready(fwd(x))
    assert out.shape == (2, 200), out.shape
    assert bool(jnp.all(jnp.isfinite(out)))
    print("KERNEL_OK")
</pallas_src>

<mosaic_0001>
module attributes {stable_mosaic.version = 11 : i64} {
  func.func @_gemm_fused_kernel(%arg0: i32, %arg1: memref<256x147xbf16, #tpu.memory_space<vmem>>, %arg2: memref<147x64xbf16, #tpu.memory_space<vmem>>, %arg3: memref<1x64xf32, #tpu.memory_space<vmem>>, %arg4: memref<256x64xbf16, #tpu.memory_space<vmem>>) attributes {dimension_semantics = [#tpu.dimension_semantics<parallel>], iteration_bounds = array<i64: 2>, scalar_prefetch = 0 : i64, scratch_operands = 0 : i64, tpu.core_type = #tpu.core_type<tc>, window_params = [{transform_indices = @transform_0, window_bounds = array<i64: 256, 147>}, {pipeline_mode = #tpu.pipeline_mode<synchronous>, transform_indices = @transform_1, window_bounds = array<i64: 147, 64>}, {pipeline_mode = #tpu.pipeline_mode<synchronous>, transform_indices = @transform_2, window_bounds = array<i64: 1, 64>}, {transform_indices = @transform_3, window_bounds = array<i64: 256, 64>}]} {
    %c0 = arith.constant 0 : index
    %c0_0 = arith.constant 0 : index
    %0 = vector.load %arg1[%c0, %c0_0] : memref<256x147xbf16, #tpu.memory_space<vmem>>, vector<256x147xbf16>
    %c0_1 = arith.constant 0 : index
    %c0_2 = arith.constant 0 : index
    %1 = vector.load %arg2[%c0_1, %c0_2] : memref<147x64xbf16, #tpu.memory_space<vmem>>, vector<147x64xbf16>
    %cst = arith.constant dense<0.000000e+00> : vector<256x64xf32>
    %2 = tpu.matmul %0, %1, %cst {dimension_numbers = #tpu.dot_dimension_numbers<[1], [0], [0], [1], [0, 0, 1, 1], [], []>} : vector<256x147xbf16>, vector<147x64xbf16>, vector<256x64xf32> -> vector<256x64xf32>
    %c0_3 = arith.constant 0 : index
    %c0_4 = arith.constant 0 : index
    %3 = vector.load %arg3[%c0_3, %c0_4] : memref<1x64xf32, #tpu.memory_space<vmem>>, vector<1x64xf32>
    %4 = vector.broadcast %3 : vector<1x64xf32> to vector<256x64xf32>
    %5 = arith.addf %2, %4 : vector<256x64xf32>
    %cst_5 = arith.constant 0.000000e+00 : f32
    %6 = vector.broadcast %cst_5 : f32 to vector<256x64xf32>
    %7 = arith.maximumf %5, %6 : vector<256x64xf32>
    %8 = arith.truncf %7 : vector<256x64xf32> to vector<256x64xbf16>
    %c0_6 = arith.constant 0 : index
    %c0_7 = arith.constant 0 : index
    %9 = vector.load %arg4[%c0_6, %c0_7] : memref<256x64xbf16, #tpu.memory_space<vmem>>, vector<256x64xbf16>
    tpu.vector_store %arg4[%c0_6, %c0_7], %8 {strides = array<i32>} : memref<256x64xbf16, #tpu.memory_space<vmem>>, vector<256x64xbf16>,
    return
  }
  func.func @transform_0(%arg0: i32) -> (i32, i32) {
    %c0_i32 = arith.constant 0 : i32
    %c0_i32_0 = arith.constant 0 : i32
    return %arg0, %c0_i32 : i32, i32
  }
  func.func @transform_1(%arg0: i32) -> (i32, i32) {
    %c0_i32 = arith.constant 0 : i32
    %c0_i32_0 = arith.constant 0 : i32
    %c0_i32_1 = arith.constant 0 : i32
    return %c0_i32, %c0_i32_0 : i32, i32
  }
  func.func @transform_2(%arg0: i32) -> (i32, i32) {
    %c0_i32 = arith.constant 0 : i32
    %c0_i32_0 = arith.constant 0 : i32
    %c0_i32_1 = arith.constant 0 : i32
    return %c0_i32, %c0_i32_0 : i32, i32
  }
  func.func @transform_3(%arg0: i32) -> (i32, i32) {
    %c0_i32 = arith.constant 0 : i32
    %c0_i32_0 = arith.constant 0 : i32
    return %arg0, %c0_i32 : i32, i32
  }
}

module attributes {stable_mosaic.version = 11 : i64} {
  func.func @_maxpool3x3_s1_kernel(%arg0: i32, %arg1: memref<1x18x18x64xbf16, #tpu.memory_space<vmem>>, %arg2: memref<1x16x16x64xbf16, #tpu.memory_space<vmem>>) attributes {dimension_semantics = [#tpu.dimension_semantics<parallel>], iteration_bounds = array<i64: 2>, scalar_prefetch = 0 : i64, scratch_operands = 0 : i64, tpu.core_type = #tpu.core_type<tc>, window_params = [{transform_indices = @transform_0, window_bounds = array<i64: 1, 18, 18, 64>}, {transform_indices = @transform_1, window_bounds = array<i64: 1, 16, 16, 64>}]} {
    %c0 = arith.constant 0 : index
    %c0_0 = arith.constant 0 : index
    %c0_1 = arith.constant 0 : index
    %c0_2 = arith.constant 0 : index
    %0 = vector.load %arg1[%c0, %c0_0, %c0_1, %c0_2] : memref<1x18x18x64xbf16, #tpu.memory_space<vmem>>, vector<1x18x18x64xbf16>
    %1 = vector.extract_strided_slice %0 {offsets = [0, 0, 0, 0], sizes = [1, 16, 16, 64], strides = [1, 1, 1, 1]} : vector<1x18x18x64xbf16> to vector<1x16x16x64xbf16>
    %2 = vector.extract_strided_slice %0 {offsets = [0, 0, 1, 0], sizes = [1, 16, 16, 64], strides = [1, 1, 1, 1]} : vector<1x18x18x64xbf16> to vector<1x16x16x64xbf16>
    %3 = arith.maximumf %1, %2 : vector<1x16x16x64xbf16>
    %4 = vector.extract_strided_slice %0 {offsets = [0, 0, 2, 0], sizes = [1, 16, 16, 64], strides = [1, 1, 1, 1]} : vector<1x18x18x64xbf16> to vector<1x16x16x64xbf16>
    %5 = arith.maximumf %3, %4 : vector<1x16x16x64xbf16>
    %6 = vector.extract_strided_slice %0 {offsets = [0, 1, 0, 0], sizes = [1, 16, 16, 64], strides = [1, 1, 1, 1]} : vector<1x18x18x64xbf16> to vector<1x16x16x64xbf16>
    %7 = arith.maximumf %5, %6 : vector<1x16x16x64xbf16>
    %8 = vector.extract_strided_slice %0 {offsets = [0, 1, 1, 0], sizes = [1, 16, 16, 64], strides = [1, 1, 1, 1]} : vector<1x18x18x64xbf16> to vector<1x16x16x64xbf16>
    %9 = arith.maximumf %7, %8 : vector<1x16x16x64xbf16>
    %10 = vector.extract_strided_slice %0 {offsets = [0, 1, 2, 0], sizes = [1, 16, 16, 64], strides = [1, 1, 1, 1]} : vector<1x18x18x64xbf16> to vector<1x16x16x64xbf16>
    %11 = arith.maximumf %9, %10 : vector<1x16x16x64xbf16>
    %12 = vector.extract_strided_slice %0 {offsets = [0, 2, 0, 0], sizes = [1, 16, 16, 64], strides = [1, 1, 1, 1]} : vector<1x18x18x64xbf16> to vector<1x16x16x64xbf16>
    %13 = arith.maximumf %11, %12 : vector<1x16x16x64xbf16>
    %14 = vector.extract_strided_slice %0 {offsets = [0, 2, 1, 0], sizes = [1, 16, 16, 64], strides = [1, 1, 1, 1]} : vector<1x18x18x64xbf16> to vector<1x16x16x64xbf16>
    %15 = arith.maximumf %13, %14 : vector<1x16x16x64xbf16>
    %16 = vector.extract_strided_slice %0 {offsets = [0, 2, 2, 0], sizes = [1, 16, 16, 64], strides = [1, 1, 1, 1]} : vector<1x18x18x64xbf16> to vector<1x16x16x64xbf16>
    %17 = arith.maximumf %15, %16 : vector<1x16x16x64xbf16>
    %c0_3 = arith.constant 0 : index
    %c0_4 = arith.constant 0 : index
    %c0_5 = arith.constant 0 : index
    %c0_6 = arith.constant 0 : index
    %18 = vector.load %arg2[%c0_3, %c0_4, %c0_5, %c0_6] : memref<1x16x16x64xbf16, #tpu.memory_space<vmem>>, vector<1x16x16x64xbf16>
    tpu.vector_store %arg2[%c0_3, %c0_4, %c0_5, %c0_6], %17 {strides = array<i32>} : memref<1x16x16x64xbf16, #tpu.memory_space<vmem>>, vector<1x16x16x64xbf16>,
    return
  }
  func.func @transform_0(%arg0: i32) -> (i32, i32, i32, i32) {
    %c0_i32 = arith.constant 0 : i32
    %c0_i32_0 = arith.constant 0 : i32
    %c0_i32_1 = arith.constant 0 : i32
    %c0_i32_2 = arith.constant 0 : i32
    return %arg0, %c0_i32, %c0_i32_0, %c0_i32_1 : i32, i32, i32, i32
  }
  func.func @transform_1(%arg0: i32) -> (i32, i32, i32, i32) {
    %c0_i32 = arith.constant 0 : i32
    %c0_i32_0 = arith.constant 0 : i32
    %c0_i32_1 = arith.constant 0 : i32
    %c0_i32_2 = arith.constant 0 : i32
    return %arg0, %c0_i32, %c0_i32_0, %c0_i32_1 : i32, i32, i32, i32
  }
}

module attributes {stable_mosaic.version = 11 : i64} {
  func.func @_gemm_fused_kernel(%arg0: i32, %arg1: memref<64x576xbf16, #tpu.memory_space<vmem>>, %arg2: memref<576x64xbf16, #tpu.memory_space<vmem>>, %arg3: memref<1x64xf32, #tpu.memory_space<vmem>>, %arg4: memref<64x64xbf16, #tpu.memory_space<vmem>>) attributes {dimension_semantics = [#tpu.dimension_semantics<parallel>], iteration_bounds = array<i64: 2>, scalar_prefetch = 0 : i64, scratch_operands = 0 : i64, tpu.core_type = #tpu.core_type<tc>, window_params = [{transform_indices = @transform_0, window_bounds = array<i64: 64, 576>}, {pipeline_mode = #tpu.pipeline_mode<synchronous>, transform_indices = @transform_1, window_bounds = array<i64: 576, 64>}, {pipeline_mode = #tpu.pipeline_mode<synchronous>, transform_indices = @transform_2, window_bounds = array<i64: 1, 64>}, {transform_indices = @transform_3, window_bounds = array<i64: 64, 64>}]} {
    %c0 = arith.constant 0 : index
    %c0_0 = arith.constant 0 : index
    %0 = vector.load %arg1[%c0, %c0_0] : memref<64x576xbf16, #tpu.memory_space<vmem>>, vector<64x576xbf16>
    %c0_1 = arith.constant 0 : index
    %c0_2 = arith.constant 0 : index
    %1 = vector.load %arg2[%c0_1, %c0_2] : memref<576x64xbf16, #tpu.memory_space<vmem>>, vector<576x64xbf16>
    %cst = arith.constant dense<0.000000e+00> : vector<64x64xf32>
    %2 = tpu.matmul %0, %1, %cst {dimension_numbers = #tpu.dot_dimension_numbers<[1], [0], [0], [1], [0, 0, 1, 1], [], []>} : vector<64x576xbf16>, vector<576x64xbf16>, vector<64x64xf32> -> vector<64x64xf32>
    %c0_3 = arith.constant 0 : index
    %c0_4 = arith.constant 0 : index
    %3 = vector.load %arg3[%c0_3, %c0_4] : memref<1x64xf32, #tpu.memory_space<vmem>>, vector<1x64xf32>
    %4 = vector.broadcast %3 : vector<1x64xf32> to vector<64x64xf32>
    %5 = arith.addf %2, %4 : vector<64x64xf32>
    %cst_5 = arith.constant 0.000000e+00 : f32
    %6 = vector.broadcast %cst_5 : f32 to vector<64x64xf32>
    %7 = arith.maximumf %5, %6 : vector<64x64xf32>
    %8 = arith.truncf %7 : vector<64x64xf32> to vector<64x64xbf16>
    %c0_6 = arith.constant 0 : index
    %c0_7 = arith.constant 0 : index
    %9 = vector.load %arg4[%c0_6, %c0_7] : memref<64x64xbf16, #tpu.memory_space<vmem>>, vector<64x64xbf16>
    tpu.vector_store %arg4[%c0_6, %c0_7], %8 {strides = array<i32>} : memref<64x64xbf16, #tpu.memory_space<vmem>>, vector<64x64xbf16>,
    return
  }
  func.func @transform_0(%arg0: i32) -> (i32, i32) {
    %c0_i32 = arith.constant 0 : i32
    %c0_i32_0 = arith.constant 0 : i32
    return %arg0, %c0_i32 : i32, i32
  }
  func.func @transform_1(%arg0: i32) -> (i32, i32) {
    %c0_i32 = arith.constant 0 : i32
    %c0_i32_0 = arith.constant 0 : i32
    %c0_i32_1 = arith.constant 0 : i32
    return %c0_i32, %c0_i32_0 : i32, i32
  }
  func.func @transform_2(%arg0: i32) -> (i32, i32) {
    %c0_i32 = arith.constant 0 : i32
    %c0_i32_0 = arith.constant 0 : i32
    %c0_i32_1 = arith.constant 0 : i32
    return %c0_i32, %c0_i32_0 : i32, i32
  }
  func.func @transform_3(%arg0: i32) -> (i32, i32) {
    %c0_i32 = arith.constant 0 : i32
    %c0_i32_0 = arith.constant 0 : i32
    return %arg0, %c0_i32 : i32, i32
  }
}

module attributes {stable_mosaic.version = 11 : i64} {
  func.func @_gemm_fused_kernel(%arg0: i32, %arg1: memref<64x576xbf16, #tpu.memory_space<vmem>>, %arg2: memref<576x64xbf16, #tpu.memory_space<vmem>>, %arg3: memref<1x64xf32, #tpu.memory_space<vmem>>, %arg4: memref<64x64xbf16, #tpu.memory_space<vmem>>, %arg5: memref<64x64xbf16, #tpu.memory_space<vmem>>) attributes {dimension_semantics = [#tpu.dimension_semantics<parallel>], iteration_bounds = array<i64: 2>, scalar_prefetch = 0 : i64, scratch_operands = 0 : i64, tpu.core_type = #tpu.core_type<tc>, window_params = [{transform_indices = @transform_0, window_bounds = array<i64: 64, 576>}, {pipeline_mode = #tpu.pipeline_mode<synchronous>, transform_indices = @transform_1, window_bounds = array<i64: 576, 64>}, {pipeline_mode = #tpu.pipeline_mode<synchronous>, transform_indices = @transform_2, window_bounds = array<i64: 1, 64>}, {transform_indices = @transform_3, window_bounds = array<i64: 64, 64>}, {transform_indices = @transform_4, window_bounds = array<i64: 64, 64>}]} {
    %c0 = arith.constant 0 : index
    %c0_0 = arith.constant 0 : index
    %0 = vector.load %arg1[%c0, %c0_0] : memref<64x576xbf16, #tpu.memory_space<vmem>>, vector<64x576xbf16>
    %c0_1 = arith.constant 0 : index
    %c0_2 = arith.constant 0 : index
    %1 = vector.load %arg2[%c0_1, %c0_2] : memref<576x64xbf16, #tpu.memory_space<vmem>>, vector<576x64xbf16>
    %cst = arith.constant dense<0.000000e+00> : vector<64x64xf32>
    %2 = tpu.matmul %0, %1, %cst {dimension_numbers = #tpu.dot_dimension_numbers<[1], [0], [0], [1], [0, 0, 1, 1], [], []>} : vector<64x576xbf16>, vector<576x64xbf16>, vector<64x64xf32> -> vector<64x64xf32>
    %c0_3 = arith.constant 0 : index
    %c0_4 = arith.constant 0 : index
    %3 = vector.load %arg3[%c0_3, %c0_4] : memref<1x64xf32, #tpu.memory_space<vmem>>, vector<1x64xf32>
    %4 = vector.broadcast %3 : vector<1x64xf32> to vector<64x64xf32>
    %5 = arith.addf %2, %4 : vector<64x64xf32>
    %c0_5 = arith.constant 0 : index
    %c0_6 = arith.constant 0 : index
    %6 = vector.load %arg4[%c0_5, %c0_6] : memref<64x64xbf16, #tpu.memory_space<vmem>>, vector<64x64xbf16>
    %7 = arith.extf %6 : vector<64x64xbf16> to vector<64x64xf32>
    %8 = arith.addf %5, %7 : vector<64x64xf32>
    %cst_7 = arith.constant 0.000000e+00 : f32
    %9 = vector.broadcast %cst_7 : f32 to vector<64x64xf32>
    %10 = arith.maximumf %8, %9 : vector<64x64xf32>
    %11 = arith.truncf %10 : vector<64x64xf32> to vector<64x64xbf16>
    %c0_8 = arith.constant 0 : index
    %c0_9 = arith.constant 0 : index
    %12 = vector.load %arg5[%c0_8, %c0_9] : memref<64x64xbf16, #tpu.memory_space<vmem>>, vector<64x64xbf16>
    tpu.vector_store %arg5[%c0_8, %c0_9], %11 {strides = array<i32>} : memref<64x64xbf16, #tpu.memory_space<vmem>>, vector<64x64xbf16>,
    return
  }
  func.func @transform_0(%arg0: i32) -> (i32, i32) {
    %c0_i32 = arith.constant 0 : i32
    %c0_i32_0 = arith.constant 0 : i32
    return %arg0, %c0_i32 : i32, i32
  }
  func.func @transform_1(%arg0: i32) -> (i32, i32) {
    %c0_i32 = arith.constant 0 : i32
    %c0_i32_0 = arith.constant 0 : i32
    %c0_i32_1 = arith.constant 0 : i32
    return %c0_i32, %c0_i32_0 : i32, i32
  }
  func.func @transform_2(%arg0: i32) -> (i32, i32) {
    %c0_i32 = arith.constant 0 : i32
    %c0_i32_0 = arith.constant 0 : i32
    %c0_i32_1 = arith.constant 0 : i32
    return %c0_i32, %c0_i32_0 : i32, i32
  }
  func.func @transform_3(%arg0: i32) -> (i32, i32) {
    %c0_i32 = arith.constant 0 : i32
    %c0_i32_0 = arith.constant 0 : i32
    return %arg0, %c0_i32 : i32, i32
  }
  func.func @transform_4(%arg0: i32) -> (i32, i32) {
    %c0_i32 = arith.constant 0 : i32
    %c0_i32_0 = arith.constant 0 : i32
    return %arg0, %c0_i32 : i32, i32
  }
}

module attributes {stable_mosaic.version = 11 : i64} {
  func.func @_gemm_fused_kernel(%arg0: i32, %arg1: memref<16x576xbf16, #tpu.memory_space<vmem>>, %arg2: memref<576x128xbf16, #tpu.memory_space<vmem>>, %arg3: memref<1x128xf32, #tpu.memory_space<vmem>>, %arg4: memref<16x128xbf16, #tpu.memory_space<vmem>>) attributes {dimension_semantics = [#tpu.dimension_semantics<parallel>], iteration_bounds = array<i64: 2>, scalar_prefetch = 0 : i64, scratch_operands = 0 : i64, tpu.core_type = #tpu.core_type<tc>, window_params = [{transform_indices = @transform_0, window_bounds = array<i64: 16, 576>}, {pipeline_mode = #tpu.pipeline_mode<synchronous>, transform_indices = @transform_1, window_bounds = array<i64: 576, 128>}, {pipeline_mode = #tpu.pipeline_mode<synchronous>, transform_indices = @transform_2, window_bounds = array<i64: 1, 128>}, {transform_indices = @transform_3, window_bounds = array<i64: 16, 128>}]} {
    %c0 = arith.constant 0 : index
    %c0_0 = arith.constant 0 : index
    %0 = vector.load %arg1[%c0, %c0_0] : memref<16x576xbf16, #tpu.memory_space<vmem>>, vector<16x576xbf16>
    %c0_1 = arith.constant 0 : index
    %c0_2 = arith.constant 0 : index
    %1 = vector.load %arg2[%c0_1, %c0_2] : memref<576x128xbf16, #tpu.memory_space<vmem>>, vector<576x128xbf16>
    %cst = arith.constant dense<0.000000e+00> : vector<16x128xf32>
    %2 = tpu.matmul %0, %1, %cst {dimension_numbers = #tpu.dot_dimension_numbers<[1], [0], [0], [1], [0, 0, 1, 1], [], []>} : vector<16x576xbf16>, vector<576x128xbf16>, vector<16x128xf32> -> vector<16x128xf32>
    %c0_3 = arith.constant 0 : index
    %c0_4 = arith.constant 0 : index
    %3 = vector.load %arg3[%c0_3, %c0_4] : memref<1x128xf32, #tpu.memory_space<vmem>>, vector<1x128xf32>
    %4 = vector.broadcast %3 : vector<1x128xf32> to vector<16x128xf32>
    %5 = arith.addf %2, %4 : vector<16x128xf32>
    %cst_5 = arith.constant 0.000000e+00 : f32
    %6 = vector.broadcast %cst_5 : f32 to vector<16x128xf32>
    %7 = arith.maximumf %5, %6 : vector<16x128xf32>
    %8 = arith.truncf %7 : vector<16x128xf32> to vector<16x128xbf16>
    %c0_6 = arith.constant 0 : index
    %c0_7 = arith.constant 0 : index
    %9 = vector.load %arg4[%c0_6, %c0_7] : memref<16x128xbf16, #tpu.memory_space<vmem>>, vector<16x128xbf16>
    tpu.vector_store %arg4[%c0_6, %c0_7], %8 {strides = array<i32>} : memref<16x128xbf16, #tpu.memory_space<vmem>>, vector<16x128xbf16>,
    return
  }
  func.func @transform_0(%arg0: i32) -> (i32, i32) {
    %c0_i32 = arith.constant 0 : i32
    %c0_i32_0 = arith.constant 0 : i32
    return %arg0, %c0_i32 : i32, i32
  }
  func.func @transform_1(%arg0: i32) -> (i32, i32) {
    %c0_i32 = arith.constant 0 : i32
    %c0_i32_0 = arith.constant 0 : i32
    %c0_i32_1 = arith.constant 0 : i32
    return %c0_i32, %c0_i32_0 : i32, i32
  }
  func.func @transform_2(%arg0: i32) -> (i32, i32) {
    %c0_i32 = arith.constant 0 : i32
    %c0_i32_0 = arith.constant 0 : i32
    %c0_i32_1 = arith.constant 0 : i32
    return %c0_i32, %c0_i32_0 : i32, i32
  }
  func.func @transform_3(%arg0: i32) -> (i32, i32) {
    %c0_i32 = arith.constant 0 : i32
    %c0_i32_0 = arith.constant 0 : i32
    return %arg0, %c0_i32 : i32, i32
  }
}

module attributes {stable_mosaic.version = 11 : i64} {
  func.func @_avgpool_fc_kernel(%arg0: i32, %arg1: memref<2x16x128xbf16, #tpu.memory_space<vmem>>, %arg2: memref<128x200xbf16, #tpu.memory_space<vmem>>, %arg3: memref<1x200xf32, #tpu.memory_space<vmem>>, %arg4: memref<2x200xf32, #tpu.memory_space<vmem>>) attributes {dimension_semantics = [#tpu.dimension_semantics<arbitrary>], iteration_bounds = array<i64: 1>, scalar_prefetch = 0 : i64, scratch_operands = 0 : i64, tpu.core_type = #tpu.core_type<tc>, window_params = [{pipeline_mode = #tpu.pipeline_mode<synchronous>, transform_indices = @transform_0, window_bounds = array<i64: 2, 16, 128>}, {pipeline_mode = #tpu.pipeline_mode<synchronous>, transform_indices = @transform_1, window_bounds = array<i64: 128, 200>}, {pipeline_mode = #tpu.pipeline_mode<synchronous>, transform_indices = @transform_2, window_bounds = array<i64: 1, 200>}, {pipeline_mode = #tpu.pipeline_mode<synchronous>, transform_indices = @transform_3, window_bounds = array<i64: 2, 200>}]} {
    %c0 = arith.constant 0 : index
    %c0_0 = arith.constant 0 : index
    %c0_1 = arith.constant 0 : index
    %0 = vector.load %arg1[%c0, %c0_0, %c0_1] : memref<2x16x128xbf16, #tpu.memory_space<vmem>>, vector<2x16x128xbf16>
    %1 = arith.extf %0 : vector<2x16x128xbf16> to vector<2x16x128xf32>
    %cst = arith.constant dense<0.000000e+00> : vector<2x128xf32>
    %2 = vector.multi_reduction <add>, %1, %cst [1] : vector<2x16x128xf32> to vector<2x128xf32>
    %cst_2 = arith.constant 1.600000e+01 : f32
    %3 = vector.broadcast %cst_2 : f32 to vector<2x128xf32>
    %4 = arith.divf %2, %3 : vector<2x128xf32>
    %5 = arith.truncf %4 : vector<2x128xf32> to vector<2x128xbf16>
    %c0_3 = arith.constant 0 : index
    %c0_4 = arith.constant 0 : index
    %6 = vector.load %arg2[%c0_3, %c0_4] : memref<128x200xbf16, #tpu.memory_space<vmem>>, vector<128x200xbf16>
    %cst_5 = arith.constant dense<0.000000e+00> : vector<2x200xf32>
    %7 = tpu.matmul %5, %6, %cst_5 {dimension_numbers = #tpu.dot_dimension_numbers<[1], [0], [0], [1], [0, 0, 1, 1], [], []>} : vector<2x128xbf16>, vector<128x200xbf16>, vector<2x200xf32> -> vector<2x200xf32>
    %c0_6 = arith.constant 0 : index
    %c0_7 = arith.constant 0 : index
    %8 = vector.load %arg3[%c0_6, %c0_7] : memref<1x200xf32, #tpu.memory_space<vmem>>, vector<1x200xf32>
    %9 = vector.broadcast %8 : vector<1x200xf32> to vector<2x200xf32>
    %10 = arith.addf %7, %9 : vector<2x200xf32>
    %c0_8 = arith.constant 0 : index
    %c0_9 = arith.constant 0 : index
    %11 = vector.load %arg4[%c0_8, %c0_9] : memref<2x200xf32, #tpu.memory_space<vmem>>, vector<2x200xf32>
    tpu.vector_store %arg4[%c0_8, %c0_9], %10 {strides = array<i32>} : memref<2x200xf32, #tpu.memory_space<vmem>>, vector<2x200xf32>,
    return
  }
  func.func @transform_0(%arg0: i32) -> (i32, i32, i32) {
    %c0_i32 = arith.constant 0 : i32
    %c0_i32_0 = arith.constant 0 : i32
    %c0_i32_1 = arith.constant 0 : i32
    %c0_i32_2 = arith.constant 0 : i32
    return %c0_i32, %c0_i32_0, %c0_i32_1 : i32, i32, i32
  }
  func.func @transform_1(%arg0: i32) -> (i32, i32) {
    %c0_i32 = arith.constant 0 : i32
    %c0_i32_0 = arith.constant 0 : i32
    %c0_i32_1 = arith.constant 0 : i32
    return %c0_i32, %c0_i32_0 : i32, i32
  }
  func.func @transform_2(%arg0: i32) -> (i32, i32) {
    %c0_i32 = arith.constant 0 : i32
    %c0_i32_0 = arith.constant 0 : i32
    %c0_i32_1 = arith.constant 0 : i32
    return %c0_i32, %c0_i32_0 : i32, i32
  }
  func.func @transform_3(%arg0: i32) -> (i32, i32) {
    %c0_i32 = arith.constant 0 : i32
    %c0_i32_0 = arith.constant 0 : i32
    %c0_i32_1 = arith.constant 0 : i32
    return %c0_i32, %c0_i32_0 : i32, i32
  }
}

module attributes {stable_mosaic.version = 11 : i64} {
  func.func @_gemm_fused_kernel(%arg0: i32, %arg1: memref<16x1152xbf16, #tpu.memory_space<vmem>>, %arg2: memref<1152x128xbf16, #tpu.memory_space<vmem>>, %arg3: memref<1x128xf32, #tpu.memory_space<vmem>>, %arg4: memref<16x128xbf16, #tpu.memory_space<vmem>>, %arg5: memref<16x128xbf16, #tpu.memory_space<vmem>>) attributes {dimension_semantics = [#tpu.dimension_semantics<parallel>], iteration_bounds = array<i64: 2>, scalar_prefetch = 0 : i64, scratch_operands = 0 : i64, tpu.core_type = #tpu.core_type<tc>, window_params = [{transform_indices = @transform_0, window_bounds = array<i64: 16, 1152>}, {pipeline_mode = #tpu.pipeline_mode<synchronous>, transform_indices = @transform_1, window_bounds = array<i64: 1152, 128>}, {pipeline_mode = #tpu.pipeline_mode<synchronous>, transform_indices = @transform_2, window_bounds = array<i64: 1, 128>}, {transform_indices = @transform_3, window_bounds = array<i64: 16, 128>}, {transform_indices = @transform_4, window_bounds = array<i64: 16, 128>}]} {
    %c0 = arith.constant 0 : index
    %c0_0 = arith.constant 0 : index
    %0 = vector.load %arg1[%c0, %c0_0] : memref<16x1152xbf16, #tpu.memory_space<vmem>>, vector<16x1152xbf16>
    %c0_1 = arith.constant 0 : index
    %c0_2 = arith.constant 0 : index
    %1 = vector.load %arg2[%c0_1, %c0_2] : memref<1152x128xbf16, #tpu.memory_space<vmem>>, vector<1152x128xbf16>
    %cst = arith.constant dense<0.000000e+00> : vector<16x128xf32>
    %2 = tpu.matmul %0, %1, %cst {dimension_numbers = #tpu.dot_dimension_numbers<[1], [0], [0], [1], [0, 0, 1, 1], [], []>} : vector<16x1152xbf16>, vector<1152x128xbf16>, vector<16x128xf32> -> vector<16x128xf32>
    %c0_3 = arith.constant 0 : index
    %c0_4 = arith.constant 0 : index
    %3 = vector.load %arg3[%c0_3, %c0_4] : memref<1x128xf32, #tpu.memory_space<vmem>>, vector<1x128xf32>
    %4 = vector.broadcast %3 : vector<1x128xf32> to vector<16x128xf32>
    %5 = arith.addf %2, %4 : vector<16x128xf32>
    %c0_5 = arith.constant 0 : index
    %c0_6 = arith.constant 0 : index
    %6 = vector.load %arg4[%c0_5, %c0_6] : memref<16x128xbf16, #tpu.memory_space<vmem>>, vector<16x128xbf16>
    %7 = arith.extf %6 : vector<16x128xbf16> to vector<16x128xf32>
    %8 = arith.addf %5, %7 : vector<16x128xf32>
    %cst_7 = arith.constant 0.000000e+00 : f32
    %9 = vector.broadcast %cst_7 : f32 to vector<16x128xf32>
    %10 = arith.maximumf %8, %9 : vector<16x128xf32>
    %11 = arith.truncf %10 : vector<16x128xf32> to vector<16x128xbf16>
    %c0_8 = arith.constant 0 : index
    %c0_9 = arith.constant 0 : index
    %12 = vector.load %arg5[%c0_8, %c0_9] : memref<16x128xbf16, #tpu.memory_space<vmem>>, vector<16x128xbf16>
    tpu.vector_store %arg5[%c0_8, %c0_9], %11 {strides = array<i32>} : memref<16x128xbf16, #tpu.memory_space<vmem>>, vector<16x128xbf16>,
    return
  }
  func.func @transform_0(%arg0: i32) -> (i32, i32) {
    %c0_i32 = arith.constant 0 : i32
    %c0_i32_0 = arith.constant 0 : i32
    return %arg0, %c0_i32 : i32, i32
  }
  func.func @transform_1(%arg0: i32) -> (i32, i32) {
    %c0_i32 = arith.constant 0 : i32
    %c0_i32_0 = arith.constant 0 : i32
    %c0_i32_1 = arith.constant 0 : i32
    return %c0_i32, %c0_i32_0 : i32, i32
  }
  func.func @transform_2(%arg0: i32) -> (i32, i32) {
    %c0_i32 = arith.constant 0 : i32
    %c0_i32_0 = arith.constant 0 : i32
    %c0_i32_1 = arith.constant 0 : i32
    return %c0_i32, %c0_i32_0 : i32, i32
  }
  func.func @transform_3(%arg0: i32) -> (i32, i32) {
    %c0_i32 = arith.constant 0 : i32
    %c0_i32_0 = arith.constant 0 : i32
    return %arg0, %c0_i32 : i32, i32
  }
  func.func @transform_4(%arg0: i32) -> (i32, i32) {
    %c0_i32 = arith.constant 0 : i32
    %c0_i32_0 = arith.constant 0 : i32
    return %arg0, %c0_i32 : i32, i32
  }
}

module attributes {stable_mosaic.version = 11 : i64} {
  func.func @_gemm_fused_kernel(%arg0: i32, %arg1: memref<16x64xbf16, #tpu.memory_space<vmem>>, %arg2: memref<64x128xbf16, #tpu.memory_space<vmem>>, %arg3: memref<1x128xf32, #tpu.memory_space<vmem>>, %arg4: memref<16x128xbf16, #tpu.memory_space<vmem>>) attributes {dimension_semantics = [#tpu.dimension_semantics<parallel>], iteration_bounds = array<i64: 2>, scalar_prefetch = 0 : i64, scratch_operands = 0 : i64, tpu.core_type = #tpu.core_type<tc>, window_params = [{transform_indices = @transform_0, window_bounds = array<i64: 16, 64>}, {pipeline_mode = #tpu.pipeline_mode<synchronous>, transform_indices = @transform_1, window_bounds = array<i64: 64, 128>}, {pipeline_mode = #tpu.pipeline_mode<synchronous>, transform_indices = @transform_2, window_bounds = array<i64: 1, 128>}, {transform_indices = @transform_3, window_bounds = array<i64: 16, 128>}]} {
    %c0 = arith.constant 0 : index
    %c0_0 = arith.constant 0 : index
    %0 = vector.load %arg1[%c0, %c0_0] : memref<16x64xbf16, #tpu.memory_space<vmem>>, vector<16x64xbf16>
    %c0_1 = arith.constant 0 : index
    %c0_2 = arith.constant 0 : index
    %1 = vector.load %arg2[%c0_1, %c0_2] : memref<64x128xbf16, #tpu.memory_space<vmem>>, vector<64x128xbf16>
    %cst = arith.constant dense<0.000000e+00> : vector<16x128xf32>
    %2 = tpu.matmul %0, %1, %cst {dimension_numbers = #tpu.dot_dimension_numbers<[1], [0], [0], [1], [0, 0, 1, 1], [], []>} : vector<16x64xbf16>, vector<64x128xbf16>, vector<16x128xf32> -> vector<16x128xf32>
    %c0_3 = arith.constant 0 : index
    %c0_4 = arith.constant 0 : index
    %3 = vector.load %arg3[%c0_3, %c0_4] : memref<1x128xf32, #tpu.memory_space<vmem>>, vector<1x128xf32>
    %4 = vector.broadcast %3 : vector<1x128xf32> to vector<16x128xf32>
    %5 = arith.addf %2, %4 : vector<16x128xf32>
    %6 = arith.truncf %5 : vector<16x128xf32> to vector<16x128xbf16>
    %c0_5 = arith.constant 0 : index
    %c0_6 = arith.constant 0 : index
    %7 = vector.load %arg4[%c0_5, %c0_6] : memref<16x128xbf16, #tpu.memory_space<vmem>>, vector<16x128xbf16>
    tpu.vector_store %arg4[%c0_5, %c0_6], %6 {strides = array<i32>} : memref<16x128xbf16, #tpu.memory_space<vmem>>, vector<16x128xbf16>,
    return
  }
  func.func @transform_0(%arg0: i32) -> (i32, i32) {
    %c0_i32 = arith.constant 0 : i32
    %c0_i32_0 = arith.constant 0 : i32
    return %arg0, %c0_i32 : i32, i32
  }
  func.func @transform_1(%arg0: i32) -> (i32, i32) {
    %c0_i32 = arith.constant 0 : i32
    %c0_i32_0 = arith.constant 0 : i32
    %c0_i32_1 = arith.constant 0 : i32
    return %c0_i32, %c0_i32_0 : i32, i32
  }
  func.func @transform_2(%arg0: i32) -> (i32, i32) {
    %c0_i32 = arith.constant 0 : i32
    %c0_i32_0 = arith.constant 0 : i32
    %c0_i32_1 = arith.constant 0 : i32
    return %c0_i32, %c0_i32_0 : i32, i32
  }
  func.func @transform_3(%arg0: i32) -> (i32, i32) {
    %c0_i32 = arith.constant 0 : i32
    %c0_i32_0 = arith.constant 0 : i32
    return %arg0, %c0_i32 : i32, i32
  }
}

</mosaic_0001>

<bundles_post_ra>
// kernel: _lambda_.8
= control target key start
LH: loop header
LB: loop body
LE: loop exit
PB: predicated region body
PF: predicated region fallthrough
CT: control target
= control target key end

     0   :  { %s1157_s12 = smov 0   ;;  %s1361_s0 = inlined_call_operand.vmem [shape: bf16[512,147], index: 0, kind: input, shape index: {}]   ;;  %s1362_s1 = inlined_call_operand.vmem [shape: bf16[147,64], index: 1, kind: input, shape index: {}]   ;;  %s1363_s2 = inlined_call_operand.vmem [shape: f32[1,64], index: 2, kind: input, shape index: {}]   ;;  %s1364_s3 = inlined_call_operand.vmem [shape: bf16[512,64], index: 3, kind: output, shape index: {}]  }
   0x1 LB: > { %s903_s13 = sadd.s32 4294967295, %s1133_s12   ;;  %p907_p0 = scmp.ge.s32.totalorder %s1133_s12, 1  ;;  %s1133_s12 = sphi %s1157_s12, %s13_s12  }
   0x2   : > { %p139_p1 = scmp.lt.s32.totalorder %s1133_s12, 3 }
   0x4   : > { %p140_p2 = pnand %p907_p0, %p139_p1 }
   0x5   : > { %s908_s20 = sshll.u32 (!%p140_p2), %s903_s13, 5 }
   0x6   : > { %143 = sbr.rel (%p140_p2) target bundleno = 312 (0x138), region = 32  ;;  %p165_p3 = scmp.lt.s32.totalorder (!%p140_p2), %s908_s20, 63 }
   0xb   : > { %v1069_v0 = vld [vmem:[%s1362_s1 + $0x38] sm:$0xff]   ;;  %v1135_v1 = vmov 0   ;;  %v1070_v2 = vld [vmem:[%s1362_s1 + $0x30] sm:$0xff]   ;;  %v1071_v3 = vld [vmem:[%s1362_s1 + $0x28] sm:$0xff]   ;;  %s1366_s20 = smov (!%p165_p3, %s908_s20), 63  ;;  %vm437_vm0 = vcmask 154624  }
   0xc   : > { %493 = vmatprep.subr.bf16.mxu0 %v1135_v1  ;;  %1039 = vmatprep.subr.bf16.mxu1 %v1135_v1  ;;  %v1072_v4 = vld [vmem:[%s1362_s1 + $0x20] sm:$0xff]   ;;  %s1006_s23 = sshll.u32 %s1366_s20, 3  ;;  %v1073_v5 = vld [vmem:[%s1362_s1 + $0x18] sm:$0xff]   ;;  %v1074_v8 = vld [vmem:[%s1362_s1 + $0x10] sm:$0xff]   ;;  %vm486_vm1 = vcmask 1040384   ;;  %vm487_vm2 = vcmask 1041408  }
   0xd   : > { %494 = vmatpush1.bf16.msra.mxu0 %v1069_v0  ;;  %1049 = vmatpush1.bf16.msra.mxu1 %v1069_v0  ;;  %s1183_s26 = scalar_lea.vmem %s1361_s0, %s1006_s23  ;;  %v1075_v9 = vld [vmem:[%s1362_s1 + $0x8] sm:$0xff]   ;;  %v1136_v10 = vmov 65535   ;;  %v1076_v12 = vld [vmem:[%s1362_s1] sm:$0xff]   ;;  %s912_s15 = sshll.u32 %s1366_s20, 2  ;;  %vm814_vm3 = vcmask 519168  }
   0xe   : > { %495 = vmatprep.subr.bf16.mxu0 %v1135_v1  ;;  %1040 = vmatprep.subr.bf16.mxu1 %v1135_v1  ;;  %v1081_v6 = vld [vmem:[%s1183_s26 + $0x4] ss:$8 sps:$4 sm:$0xff]   ;;  %v488_v11 = vsel %vm486_vm1, 4294967295, %v1136_v10  ;;  %v1077_v13 = vld [vmem:[%s1362_s1 + $0x48] ss:$0 sps:$4 sm:$0x33]   ;;  %s1262_s18 = scalar_lea.vmem %s1364_s3, %s912_s15 }
   0xf   : > { %v1084_v7 = vld [vmem:[%s1183_s26 + $0x84] ss:$8 sps:$4 sm:$0xff]   ;;  %956 = vmatprep.mubr.msk.bf16.mxu0 %vm437_vm0, %v1081_v6  ;;  %v489_v14 = vsel %vm487_vm2, %v488_v11, 0  ;;  %v1079_v17 = vld [vmem:[%s1183_s26] ss:$8 sps:$4 sm:$0xff]  }
  0x10   : > { %964 = vmatprep.mubr.msk.bf16.mxu1 %vm437_vm0, %v1084_v7  ;;  %v491_v15 = vand.u32 %v1077_v13, %v489_v14  ;;  %v1078_v16 = vld [vmem:[%s1362_s1 + $0x40] sm:$0xff]   ;;  %v1085_v19 = vld [vmem:[%s1183_s26 + $0x14] ss:$8 sps:$4 sm:$0xff]   ;;  %v1089_v21 = vld [vmem:[%s1183_s26 + $0x10] ss:$8 sps:$4 sm:$0xff]  }
  0x11   : > { %496 = vmatpush1.bf16.msra.mxu0 %v1070_v2  ;;  %1050 = vmatpush1.bf16.msra.mxu1 %v1070_v2  ;;  %v1082_v18 = vld [vmem:[%s1183_s26 + $0x80] ss:$8 sps:$4 sm:$0xff]   ;;  %v1087_v20 = vld [vmem:[%s1183_s26 + $0x94] ss:$8 sps:$4 sm:$0xff]   ;;  %v1090_v22 = vld [vmem:[%s1183_s26 + $0x90] ss:$8 sps:$4 sm:$0xff]  }
  0x12   : > { %497 = vmatprep.subr.bf16.mxu0 %v1135_v1  ;;  %1041 = vmatprep.subr.bf16.mxu1 %v1135_v1  ;;  %v1091_v23 = vld [vmem:[%s1183_s26 + $0x24] ss:$8 sps:$4 sm:$0xff]   ;;  %v1095_v25 = vld [vmem:[%s1183_s26 + $0x20] ss:$8 sps:$4 sm:$0xff]   ;;  %v1097_v27 = vld [vmem:[%s1183_s26 + $0x34] ss:$8 sps:$4 sm:$0xff]  }
  0x13   : > { %v1093_v24 = vld [vmem:[%s1183_s26 + $0xa4] ss:$8 sps:$4 sm:$0xff]   ;;  %v1096_v26 = vld [vmem:[%s1183_s26 + $0xa0] ss:$8 sps:$4 sm:$0xff]   ;;  %v1099_v28 = vld [vmem:[%s1183_s26 + $0xb4] ss:$8 sps:$4 sm:$0xff]  }
  0x14   : > { %v1101_v29 = vld [vmem:[%s1183_s26 + $0x30] ss:$8 sps:$4 sm:$0xff]   ;;  %v1103_v31 = vld [vmem:[%s1183_s26 + $0x44] ss:$8 sps:$4 sm:$0xff]   ;;  %v1107_v33 = vld [vmem:[%s1183_s26 + $0x40] ss:$8 sps:$4 sm:$0xff]  }
  0x15   : > { %498 = vmatpush1.bf16.msra.mxu0 %v1071_v3  ;;  %1051 = vmatpush1.bf16.msra.mxu1 %v1071_v3  ;;  %v1102_v30 = vld [vmem:[%s1183_s26 + $0xb0] ss:$8 sps:$4 sm:$0xff]   ;;  %v1105_v32 = vld [vmem:[%s1183_s26 + $0xc4] ss:$8 sps:$4 sm:$0xff]   ;;  %v1108_v34 = vld [vmem:[%s1183_s26 + $0xc0] ss:$8 sps:$4 sm:$0xff]  }
  0x16   : > { %499 = vmatprep.subr.bf16.mxu0 %v1135_v1  ;;  %1042 = vmatprep.subr.bf16.mxu1 %v1135_v1  ;;  %v1109_v35 = vld [vmem:[%s1183_s26 + $0x54] ss:$8 sps:$4 sm:$0xff]   ;;  %v1113_v37 = vld [vmem:[%s1183_s26 + $0x50] ss:$8 sps:$4 sm:$0xff]   ;;  %v1115_v39 = vld [vmem:[%s1183_s26 + $0x64] ss:$8 sps:$4 sm:$0xff]  }
  0x17   : > { %v1111_v36 = vld [vmem:[%s1183_s26 + $0xd4] ss:$8 sps:$4 sm:$0xff]   ;;  %v1114_v38 = vld [vmem:[%s1183_s26 + $0xd0] ss:$8 sps:$4 sm:$0xff]   ;;  %v1117_v40 = vld [vmem:[%s1183_s26 + $0xe4] ss:$8 sps:$4 sm:$0xff]  }
  0x18   : > { %v1119_v41 = vld [vmem:[%s1183_s26 + $0x60] ss:$8 sps:$4 sm:$0xff]   ;;  %v1121_v43 = vld [vmem:[%s1183_s26 + $0x74] ss:$8 sps:$4 sm:$0xff]   ;;  %v1125_v45 = vld [vmem:[%s1183_s26 + $0x70] ss:$8 sps:$4 sm:$0xff]  }
  0x19   : > { %500 = vmatpush1.bf16.msra.mxu0 %v1072_v4  ;;  %1052 = vmatpush1.bf16.msra.mxu1 %v1072_v4  ;;  %v1120_v42 = vld [vmem:[%s1183_s26 + $0xe0] ss:$8 sps:$4 sm:$0xff]   ;;  %v1123_v44 = vld [vmem:[%s1183_s26 + $0xf4] ss:$8 sps:$4 sm:$0xff]   ;;  %v1126_v46 = vld [vmem:[%s1183_s26 + $0xf0] ss:$8 sps:$4 sm:$0xff]  }
  0x1a   : > { %501 = vmatprep.subr.bf16.mxu0 %v1135_v1  ;;  %1043 = vmatprep.subr.bf16.mxu1 %v1135_v1  ;;  %v1254_v47 = vld [vmem:[%s1363_s2] ss:$0 sm:$0xff] }
  0x1d   : > { %502 = vmatpush1.bf16.msra.mxu0 %v1073_v5  ;;  %1053 = vmatpush1.bf16.msra.mxu1 %v1073_v5 }
  0x1e   : > { %503 = vmatprep.subr.bf16.mxu0 %v1135_v1  ;;  %1044 = vmatprep.subr.bf16.mxu1 %v1135_v1 }
  0x21   : > { %504 = vmatpush1.bf16.msra.mxu0 %v1074_v8  ;;  %1054 = vmatpush1.bf16.msra.mxu1 %v1074_v8 }
  0x22   : > { %505 = vmatprep.subr.bf16.mxu0 %v1135_v1  ;;  %1045 = vmatprep.subr.bf16.mxu1 %v1135_v1 }
  0x25   : > { %506 = vmatpush1.bf16.msra.mxu0 %v1075_v9  ;;  %1055 = vmatpush1.bf16.msra.mxu1 %v1075_v9 }
  0x26   : > { %507 = vmatprep.subr.bf16.mxu0 %v1135_v1  ;;  %1046 = vmatprep.subr.bf16.mxu1 %v1135_v1 }
  0x29   : > { %508 = vmatpush1.bf16.msra.mxu0 %v1076_v12  ;;  %1056 = vmatpush1.bf16.msra.mxu1 %v1076_v12 }
  0x2a   : > { %521 = vmatprep.subr.bf16.mxu0 %v1135_v1  ;;  %1047 = vmatprep.subr.bf16.mxu1 %v1135_v1 }
  0x2d   : > { %522 = vmatpush2.bf16.msra.mxu0 %v491_v15  ;;  %1057 = vmatpush2.bf16.msra.mxu1 %v491_v15 }
  0x2e   : > { %523 = vmatprep.subr.bf16.mxu0 %v1135_v1  ;;  %1048 = vmatprep.subr.bf16.mxu1 %v1135_v1 }
  0x31   : > { %524 = vmatpush2.bf16.msra.mxu0 %v1078_v16  ;;  %1058 = vmatpush2.bf16.msra.mxu1 %v1078_v16 }
  0x34   : > { %526 = vmatmul.mubr.bf16.vlgmr.msra.gmra.mxu0 %v1079_v17  ;;  %590 = vmatmul.mubr.bf16.vlgmr.msra.gmra.mxu1 %v1082_v18 }
  0x35   : > { %957 = vmatprep.mubr.msk.bf16.mxu0 %vm437_vm0, %v1085_v19  ;;  %965 = vmatprep.mubr.msk.bf16.mxu1 %vm437_vm0, %v1087_v20 }
  0x3c   : > { %534 = vmatmul.mubr.bf16.gmra.mxu0 %v1089_v21  ;;  %598 = vmatmul.mubr.bf16.gmra.mxu1 %v1090_v22 }
  0x3d   : > { %958 = vmatprep.mubr.msk.bf16.mxu0 %vm437_vm0, %v1091_v23  ;;  %966 = vmatprep.mubr.msk.bf16.mxu1 %vm437_vm0, %v1093_v24 }
  0x44   : > { %542 = vmatmul.mubr.bf16.gmra.mxu0 %v1095_v25  ;;  %606 = vmatmul.mubr.bf16.gmra.mxu1 %v1096_v26 }
  0x45   : > { %959 = vmatprep.mubr.msk.bf16.mxu0 %vm437_vm0, %v1097_v27  ;;  %967 = vmatprep.mubr.msk.bf16.mxu1 %vm437_vm0, %v1099_v28 }
  0x4c   : > { %550 = vmatmul.mubr.bf16.gmra.mxu0 %v1101_v29  ;;  %614 = vmatmul.mubr.bf16.gmra.mxu1 %v1102_v30 }
  0x4d   : > { %960 = vmatprep.mubr.msk.bf16.mxu0 %vm437_vm0, %v1103_v31  ;;  %968 = vmatprep.mubr.msk.bf16.mxu1 %vm437_vm0, %v1105_v32 }
  0x54   : > { %558 = vmatmul.mubr.bf16.gmra.mxu0 %v1107_v33  ;;  %622 = vmatmul.mubr.bf16.gmra.mxu1 %v1108_v34 }
  0x55   : > { %961 = vmatprep.mubr.msk.bf16.mxu0 %vm437_vm0, %v1109_v35  ;;  %969 = vmatprep.mubr.msk.bf16.mxu1 %vm437_vm0, %v1111_v36 }
  0x5c   : > { %566 = vmatmul.mubr.bf16.gmra.mxu0 %v1113_v37  ;;  %630 = vmatmul.mubr.bf16.gmra.mxu1 %v1114_v38 }
  0x5d   : > { %962 = vmatprep.mubr.msk.bf16.mxu0 %vm437_vm0, %v1115_v39  ;;  %970 = vmatprep.mubr.msk.bf16.mxu1 %vm437_vm0, %v1117_v40 }
  0x64   : > { %574 = vmatmul.mubr.bf16.gmra.mxu0 %v1119_v41  ;;  %638 = vmatmul.mubr.bf16.gmra.mxu1 %v1120_v42 }
  0x65   : > { %963 = vmatprep.mubr.msk.bf16.mxu0 %vm437_vm0, %v1121_v43  ;;  %971 = vmatprep.mubr.msk.bf16.mxu1 %vm437_vm0, %v1123_v44 }
  0x6c   : > { %582 = vmatmul.mubr.bf16.gmra.mxu0 %v1125_v45  ;;  %646 = vmatmul.mubr.bf16.gmra.mxu1 %v1126_v46 }
  0xf4   : > { %v527_v48 = vpop.f32.mrf.mxu0  ;;  %v591_v49 = vpop.f32.mrf.mxu1 }
  0xf5   : > { %v528_v50 = vadd.f32 %v1254_v47, %v527_v48  ;;  %v592_v51 = vadd.f32 %v1254_v47, %v591_v49 }
  0xf6   : > { %v529_v52 = vpop.f32.mrf.mxu0  ;;  %v593_v53 = vpop.f32.mrf.mxu1 }
  0xf7   : > { %v654_v54 = vmax.f32 %v528_v50, 0.0  ;;  %v670_v55 = vmax.f32 %v592_v51, 0.0 }
  0xf8   : > { %v530_v56 = vpop.f32.mrf.mxu0  ;;  %v594_v57 = vpop.f32.mrf.mxu1 }
  0xf9   : > { %v1007_v58 = vpack.c.bf16 %v654_v54, %v654_v54  ;;  %v1023_v59 = vpack.c.bf16 %v670_v55, %v670_v55  ;;  %v531_v60 = vadd.f32 %v1254_v47, %v530_v56  ;;  %v595_v61 = vadd.f32 %v1254_v47, %v594_v57 }
  0xfa   : > { %v532_v62 = vpop.f32.mrf.mxu0  ;;  %v596_v63 = vpop.f32.mrf.mxu1 }
  0xfb   : > { %815 = vst.msk [vmem:[%s1262_s18] sm:$0xf] %vm814_vm3, %v1007_v58  ;;  %831 = vst.msk [vmem:[%s1262_s18 + $0x40] sm:$0xf] %vm814_vm3, %v1023_v59  ;;  %v655_v0 = vmax.f32 %v531_v60, 0.0  ;;  %v671_v1 = vmax.f32 %v595_v61, 0.0 }
  0xfc   : > { %v535_v2 = vpop.f32.mrf.mxu0  ;;  %v599_v3 = vpop.f32.mrf.mxu1 }
  0xfd   : > { %v1008_v4 = vpack.c.bf16 %v655_v0, %v655_v0  ;;  %v1024_v5 = vpack.c.bf16 %v671_v1, %v671_v1  ;;  %v536_v6 = vadd.f32 %v1254_v47, %v535_v2  ;;  %v600_v7 = vadd.f32 %v1254_v47, %v599_v3 }
  0xfe   : > { %v537_v8 = vpop.f32.mrf.mxu0  ;;  %v601_v9 = vpop.f32.mrf.mxu1 }
  0xff   : > { %816 = vst.msk [vmem:[%s1262_s18 + $0x4] sm:$0xf] %vm814_vm3, %v1008_v4  ;;  %832 = vst.msk [vmem:[%s1262_s18 + $0x44] sm:$0xf] %vm814_vm3, %v1024_v5  ;;  %v656_v10 = vmax.f32 %v536_v6, 0.0  ;;  %v672_v11 = vmax.f32 %v600_v7, 0.0 }
 0x100   : > { %v538_v12 = vpop.f32.mrf.mxu0  ;;  %v602_v13 = vpop.f32.mrf.mxu1 }
 0x101   : > { %v1009_v14 = vpack.c.bf16 %v656_v10, %v656_v10  ;;  %v1025_v15 = vpack.c.bf16 %v672_v11, %v672_v11  ;;  %v539_v16 = vadd.f32 %v1254_v47, %v538_v12  ;;  %v603_v17 = vadd.f32 %v1254_v47, %v602_v13 }
 0x102   : > { %v540_v18 = vpop.f32.mrf.mxu0  ;;  %v604_v19 = vpop.f32.mrf.mxu1 }
 0x103   : > { %817 = vst.msk [vmem:[%s1262_s18 + $0x8] sm:$0xf] %vm814_vm3, %v1009_v14  ;;  %833 = vst.msk [vmem:[%s1262_s18 + $0x48] sm:$0xf] %vm814_vm3, %v1025_v15  ;;  %v657_v20 = vmax.f32 %v539_v16, 0.0  ;;  %v673_v21 = vmax.f32 %v603_v17, 0.0 }
 0x104   : > { %v543_v22 = vpop.f32.mrf.mxu0  ;;  %v607_v23 = vpop.f32.mrf.mxu1 }
 0x105   : > { %v1010_v24 = vpack.c.bf16 %v657_v20, %v657_v20  ;;  %v1026_v25 = vpack.c.bf16 %v673_v21, %v673_v21  ;;  %v544_v26 = vadd.f32 %v1254_v47, %v543_v22  ;;  %v608_v27 = vadd.f32 %v1254_v47, %v607_v23 }
 0x106   : > { %v545_v28 = vpop.f32.mrf.mxu0  ;;  %v609_v29 = vpop.f32.mrf.mxu1 }
 0x107   : > { %818 = vst.msk [vmem:[%s1262_s18 + $0xc] sm:$0xf] %vm814_vm3, %v1010_v24  ;;  %834 = vst.msk [vmem:[%s1262_s18 + $0x4c] sm:$0xf] %vm814_vm3, %v1026_v25  ;;  %v658_v30 = vmax.f32 %v544_v26, 0.0  ;;  %v674_v31 = vmax.f32 %v608_v27, 0.0 }
 0x108   : > { %v546_v32 = vpop.f32.mrf.mxu0  ;;  %v610_v33 = vpop.f32.mrf.mxu1 }
 0x109   : > { %v1011_v34 = vpack.c.bf16 %v658_v30, %v658_v30  ;;  %v1027_v35 = vpack.c.bf16 %v674_v31, %v674_v31  ;;  %v547_v36 = vadd.f32 %v1254_v47, %v546_v32  ;;  %v611_v37 = vadd.f32 %v1254_v47, %v610_v33 }
 0x10a   : > { %v548_v38 = vpop.f32.mrf.mxu0  ;;  %v612_v39 = vpop.f32.mrf.mxu1 }
 0x10b   : > { %819 = vst.msk [vmem:[%s1262_s18 + $0x10] sm:$0xf] %vm814_vm3, %v1011_v34  ;;  %835 = vst.msk [vmem:[%s1262_s18 + $0x50] sm:$0xf] %vm814_vm3, %v1027_v35  ;;  %v659_v40 = vmax.f32 %v547_v36, 0.0  ;;  %v675_v41 = vmax.f32 %v611_v37, 0.0 }
 0x10c   : > { %v551_v42 = vpop.f32.mrf.mxu0  ;;  %v615_v43 = vpop.f32.mrf.mxu1 }
 0x10d   : > { %v1012_v44 = vpack.c.bf16 %v659_v40, %v659_v40  ;;  %v1028_v45 = vpack.c.bf16 %v675_v41, %v675_v41  ;;  %v552_v46 = vadd.f32 %v1254_v47, %v551_v42  ;;  %v616_v48 = vadd.f32 %v1254_v47, %v615_v43 }
 0x10e   : > { %v553_v49 = vpop.f32.mrf.mxu0  ;;  %v617_v50 = vpop.f32.mrf.mxu1 }
 0x10f   : > { %820 = vst.msk [vmem:[%s1262_s18 + $0x14] sm:$0xf] %vm814_vm3, %v1012_v44  ;;  %836 = vst.msk [vmem:[%s1262_s18 + $0x54] sm:$0xf] %vm814_vm3, %v1028_v45  ;;  %v660_v51 = vmax.f32 %v552_v46, 0.0  ;;  %v676_v52 = vmax.f32 %v616_v48, 0.0 }
 0x110   : > { %v554_v53 = vpop.f32.mrf.mxu0  ;;  %v618_v54 = vpop.f32.mrf.mxu1 }
 0x111   : > { %v1013_v55 = vpack.c.bf16 %v660_v51, %v660_v51  ;;  %v1029_v56 = vpack.c.bf16 %v676_v52, %v676_v52  ;;  %v555_v57 = vadd.f32 %v1254_v47, %v554_v53  ;;  %v619_v58 = vadd.f32 %v1254_v47, %v618_v54 }
 0x112   : > { %v556_v59 = vpop.f32.mrf.mxu0  ;;  %v620_v60 = vpop.f32.mrf.mxu1 }
 0x113   : > { %821 = vst.msk [vmem:[%s1262_s18 + $0x18] sm:$0xf] %vm814_vm3, %v1013_v55  ;;  %837 = vst.msk [vmem:[%s1262_s18 + $0x58] sm:$0xf] %vm814_vm3, %v1029_v56  ;;  %v661_v61 = vmax.f32 %v555_v57, 0.0  ;;  %v677_v62 = vmax.f32 %v619_v58, 0.0 }
 0x114   : > { %v559_v63 = vpop.f32.mrf.mxu0  ;;  %v623_v0 = vpop.f32.mrf.mxu1 }
 0x115   : > { %v1014_v1 = vpack.c.bf16 %v661_v61, %v661_v61  ;;  %v1030_v2 = vpack.c.bf16 %v677_v62, %v677_v62  ;;  %v560_v3 = vadd.f32 %v1254_v47, %v559_v63  ;;  %v624_v4 = vadd.f32 %v1254_v47, %v623_v0 }
 0x116   : > { %v561_v5 = vpop.f32.mrf.mxu0  ;;  %v625_v6 = vpop.f32.mrf.mxu1 }
 0x117   : > { %822 = vst.msk [vmem:[%s1262_s18 + $0x1c] sm:$0xf] %vm814_vm3, %v1014_v1  ;;  %838 = vst.msk [vmem:[%s1262_s18 + $0x5c] sm:$0xf] %vm814_vm3, %v1030_v2  ;;  %v662_v7 = vmax.f32 %v560_v3, 0.0  ;;  %v678_v8 = vmax.f32 %v624_v4, 0.0 }
 0x118   : > { %v562_v9 = vpop.f32.mrf.mxu0  ;;  %v626_v10 = vpop.f32.mrf.mxu1 }
 0x119   : > { %v1015_v11 = vpack.c.bf16 %v662_v7, %v662_v7  ;;  %v1031_v12 = vpack.c.bf16 %v678_v8, %v678_v8  ;;  %v563_v13 = vadd.f32 %v1254_v47, %v562_v9  ;;  %v627_v14 = vadd.f32 %v1254_v47, %v626_v10 }
 0x11a   : > { %v564_v15 = vpop.f32.mrf.mxu0  ;;  %v628_v16 = vpop.f32.mrf.mxu1 }
 0x11b   : > { %823 = vst.msk [vmem:[%s1262_s18 + $0x20] sm:$0xf] %vm814_vm3, %v1015_v11  ;;  %839 = vst.msk [vmem:[%s1262_s18 + $0x60] sm:$0xf] %vm814_vm3, %v1031_v12  ;;  %v663_v17 = vmax.f32 %v563_v13, 0.0  ;;  %v679_v18 = vmax.f32 %v627_v14, 0.0 }
 0x11c   : > { %v567_v19 = vpop.f32.mrf.mxu0  ;;  %v631_v20 = vpop.f32.mrf.mxu1 }
 0x11d   : > { %v1016_v21 = vpack.c.bf16 %v663_v17, %v663_v17  ;;  %v1032_v22 = vpack.c.bf16 %v679_v18, %v679_v18  ;;  %v568_v23 = vadd.f32 %v1254_v47, %v567_v19  ;;  %v632_v24 = vadd.f32 %v1254_v47, %v631_v20 }
 0x11e   : > { %v569_v25 = vpop.f32.mrf.mxu0  ;;  %v633_v26 = vpop.f32.mrf.mxu1 }
 0x11f   : > { %824 = vst.msk [vmem:[%s1262_s18 + $0x24] sm:$0xf] %vm814_vm3, %v1016_v21  ;;  %840 = vst.msk [vmem:[%s1262_s18 + $0x64] sm:$0xf] %vm814_vm3, %v1032_v22  ;;  %v664_v27 = vmax.f32 %v568_v23, 0.0  ;;  %v680_v28 = vmax.f32 %v632_v24, 0.0 }
 0x120   : > { %v570_v29 = vpop.f32.mrf.mxu0  ;;  %v634_v30 = vpop.f32.mrf.mxu1 }
 0x121   : > { %v1017_v31 = vpack.c.bf16 %v664_v27, %v664_v27  ;;  %v1033_v32 = vpack.c.bf16 %v680_v28, %v680_v28  ;;  %v571_v33 = vadd.f32 %v1254_v47, %v570_v29  ;;  %v635_v34 = vadd.f32 %v1254_v47, %v634_v30 }
 0x122   : > { %v572_v35 = vpop.f32.mrf.mxu0  ;;  %v636_v36 = vpop.f32.mrf.mxu1 }
 0x123   : > { %825 = vst.msk [vmem:[%s1262_s18 + $0x28] sm:$0xf] %vm814_vm3, %v1017_v31  ;;  %841 = vst.msk [vmem:[%s1262_s18 + $0x68] sm:$0xf] %vm814_vm3, %v1033_v32  ;;  %v665_v37 = vmax.f32 %v571_v33, 0.0  ;;  %v681_v38 = vmax.f32 %v635_v34, 0.0 }
 0x124   : > { %v575_v39 = vpop.f32.mrf.mxu0  ;;  %v639_v40 = vpop.f32.mrf.mxu1 }
 0x125   : > { %v1018_v41 = vpack.c.bf16 %v665_v37, %v665_v37  ;;  %v1034_v42 = vpack.c.bf16 %v681_v38, %v681_v38  ;;  %v576_v43 = vadd.f32 %v1254_v47, %v575_v39  ;;  %v640_v44 = vadd.f32 %v1254_v47, %v639_v40 }
 0x126   : > { %v577_v45 = vpop.f32.mrf.mxu0  ;;  %v641_v46 = vpop.f32.mrf.mxu1 }
 0x127   : > { %826 = vst.msk [vmem:[%s1262_s18 + $0x2c] sm:$0xf] %vm814_vm3, %v1018_v41  ;;  %842 = vst.msk [vmem:[%s1262_s18 + $0x6c] sm:$0xf] %vm814_vm3, %v1034_v42  ;;  %v666_v48 = vmax.f32 %v576_v43, 0.0  ;;  %v682_v49 = vmax.f32 %v640_v44, 0.0 }
 0x128   : > { %v578_v50 = vpop.f32.mrf.mxu0  ;;  %v642_v51 = vpop.f32.mrf.mxu1 }
 0x129   : > { %v1019_v52 = vpack.c.bf16 %v666_v48, %v666_v48  ;;  %v1035_v53 = vpack.c.bf16 %v682_v49, %v682_v49  ;;  %v579_v54 = vadd.f32 %v1254_v47, %v578_v50  ;;  %v643_v55 = vadd.f32 %v1254_v47, %v642_v51 }
 0x12a   : > { %v580_v56 = vpop.f32.mrf.mxu0  ;;  %v644_v57 = vpop.f32.mrf.mxu1 }
 0x12b   : > { %827 = vst.msk [vmem:[%s1262_s18 + $0x30] sm:$0xf] %vm814_vm3, %v1019_v52  ;;  %843 = vst.msk [vmem:[%s1262_s18 + $0x70] sm:$0xf] %vm814_vm3, %v1035_v53  ;;  %v667_v58 = vmax.f32 %v579_v54, 0.0  ;;  %v683_v59 = vmax.f32 %v643_v55, 0.0 }
 0x12c   : > { %v583_v60 = vpop.f32.mrf.mxu0  ;;  %v647_v61 = vpop.f32.mrf.mxu1 }
 0x12d   : > { %v1020_v62 = vpack.c.bf16 %v667_v58, %v667_v58  ;;  %v1036_v63 = vpack.c.bf16 %v683_v59, %v683_v59  ;;  %v584_v0 = vadd.f32 %v1254_v47, %v583_v60  ;;  %v648_v1 = vadd.f32 %v1254_v47, %v647_v61 }
 0x12e   : > { %v585_v2 = vpop.f32.mrf.mxu0  ;;  %v649_v3 = vpop.f32.mrf.mxu1 }
 0x12f   : > { %828 = vst.msk [vmem:[%s1262_s18 + $0x34] sm:$0xf] %vm814_vm3, %v1020_v62  ;;  %844 = vst.msk [vmem:[%s1262_s18 + $0x74] sm:$0xf] %vm814_vm3, %v1036_v63  ;;  %v668_v4 = vmax.f32 %v584_v0, 0.0  ;;  %v684_v5 = vmax.f32 %v648_v1, 0.0 }
 0x130   : > { %v586_v6 = vpop.f32.mrf.mxu0  ;;  %v650_v7 = vpop.f32.mrf.mxu1 }
 0x131   : > { %v1021_v8 = vpack.c.bf16 %v668_v4, %v668_v4  ;;  %v1037_v9 = vpack.c.bf16 %v684_v5, %v684_v5  ;;  %v587_v10 = vadd.f32 %v1254_v47, %v586_v6  ;;  %v651_v11 = vadd.f32 %v1254_v47, %v650_v7 }
 0x132   : > { %v588_v12 = vpop.f32.mrf.mxu0  ;;  %v652_v13 = vpop.f32.mrf.mxu1 }
 0x133   : > { %829 = vst.msk [vmem:[%s1262_s18 + $0x38] sm:$0xf] %vm814_vm3, %v1021_v8  ;;  %845 = vst.msk [vmem:[%s1262_s18 + $0x78] sm:$0xf] %vm814_vm3, %v1037_v9  ;;  %v669_v14 = vmax.f32 %v587_v10, 0.0  ;;  %v685_v15 = vmax.f32 %v651_v11, 0.0 }
 0x135   : > { %v1022_v16 = vpack.c.bf16 %v669_v14, %v669_v14  ;;  %v1038_v17 = vpack.c.bf16 %v685_v15, %v685_v15 }
 0x137   : > { %830 = vst.msk [vmem:[%s1262_s18 + $0x3c] sm:$0xf] %vm814_vm3, %v1022_v16  ;;  %846 = vst.msk [vmem:[%s1262_s18 + $0x7c] sm:$0xf] %vm814_vm3, %v1038_v17 }
 0x138 PF: > { %s13_s12 = sadd.s32 1, %s1133_s12  }
 0x139   : > { %p10_p4 = scmp.ge.s32.totalorder %s13_s12, 4  }
 0x13b   :  { %12 = sbr.rel (!%p10_p4) target bundleno = 1 (0x1), region = 62 }

// kernel: _lambda_.9
= control target key start
LH: loop header
LB: loop body
LE: loop exit
PB: predicated region body
PF: predicated region fallthrough
CT: control target
= control target key end

     0   :  { %s1261_s6 = smov 0   ;;  %s1815_s0 = inlined_call_operand.vmem [shape: bf16[2,18,18,64], index: 0, kind: input, shape index: {}]   ;;  %s1816_s1 = inlined_call_operand.vmem [shape: bf16[2,16,16,64], index: 1, kind: output, shape index: {}]  }
   0x1 LB: > { %s1205_s7 = sadd.s32 4294967295, %s1249_s6   ;;  %p1209_p0 = scmp.ge.s32.totalorder %s1249_s6, 1  ;;  %s1249_s6 = sphi %s1261_s6, %s11_s6  }
   0x2   : > { %p87_p1 = scmp.lt.s32.totalorder %s1249_s6, 3 }
   0x4   : > { %p88_p2 = pnand %p1209_p0, %p87_p1 }
   0x5   : > { %p107_p3 = scmp.lt.s32.totalorder (!%p88_p2), %s1205_s7, 1 }
   0x6   : > { %91 = sbr.rel (%p88_p2) target bundleno = 187 (0xbb), region = 24 }
   0xb   : > { %s1822_s7 = smov (!%p107_p3, %s1205_s7), 1  ;;  %vm171_vm0 = vsmask.f32 3328  ;;  %vm172_vm1 = vsmask.f32 7440  ;;  %vm670_vm2 = vcmask 1042432  }
   0xc   : > { %s1234_s8 = smul.u32 216, %s1822_s7  ;;  %vm671_vm3 = vcmask 1046532   ;;  %vm1309_vm5 = vmor %vm171_vm0, %vm172_vm1  ;;  %vm1117_vm6 = vcmask 519168   ;;  %s1233_s12 = sshll.u32 %s1822_s7, 7 }
   0xd   : > { %vm1301_vm4 = vmor %vm670_vm2, %vm671_vm3  ;;  %s1375_s15 = scalar_lea.vmem %s1816_s1, %s1233_s12 }
   0xe   : > { %s1275_s11 = scalar_lea.vmem %s1815_s0, %s1234_s8 }
   0xf   : > { %v117_v0 = vld [vmem:[%s1275_s11] sm:$0xf]  ;;  %v1279_v1 = vld [vmem:[%s1275_s11 + $0x4] sm:$0xf]  ;;  %v1282_v2 = vld [vmem:[%s1275_s11 + $0xc] sm:$0xf] }
  0x10   : > { %v1285_v3 = vld [vmem:[%s1275_s11 + $0x10] sm:$0xf]  ;;  %v1288_v4 = vld [vmem:[%s1275_s11 + $0x18] sm:$0xf]  ;;  %v175_v5 = vshrl.u32 %v117_v0, 16  ;;  %v178_v6 = vshll.u32 %v117_v0, 16 }
  0x11   : > { %v184_v7 = vshll.u32 %v1279_v1, 16  ;;  %v199_v8 = vshrl.u32 %v1282_v2, 16  ;;  %v1293_v9 = vld [vmem:[%s1275_s11 + $0x1c] sm:$0xf]  ;;  %v202_v10 = vshll.u32 %v1282_v2, 16  ;;  %v208_v11 = vshll.u32 %v1285_v3, 16 }
  0x12   : > { %v223_v12 = vshrl.u32 %v1288_v4, 16  ;;  %v226_v13 = vshll.u32 %v1288_v4, 16  ;;  %v177_v14 = vrot.slane %v175_v5, 4  ;;  %v180_v15 = vrot.slane %v178_v6, 5  ;;  %v119_v32 = vld [vmem:[%s1275_s11 + $0x8] sm:$0x1] }
  0x13   : > { %v186_v16 = vrot.slane %v184_v7, 5  ;;  %v201_v17 = vrot.slane %v199_v8, 4  ;;  %v204_v18 = vrot.slane %v202_v10, 5  ;;  %v210_v19 = vrot.slane %v208_v11, 5  ;;  %v122_v42 = vld [vmem:[%s1275_s11 + $0x14] sm:$0x1] }
  0x14   : > { %v225_v20 = vrot.slane %v223_v12, 4  ;;  %v228_v21 = vrot.slane %v226_v13, 5  ;;  %v181_v23 = vor.u32 %v180_v15, %v177_v14  ;;  %v232_v24 = vshll.u32 %v1293_v9, 16  ;;  %v125_v50 = vld [vmem:[%s1275_s11 + $0x20] sm:$0x1] }
  0x15   : > { %v1213_v25 = vrot.slane %v117_v0, 9  ;;  %v675_v26 = vrot.slane %v1279_v1, 5  ;;  %v205_v28 = vor.u32 %v204_v18, %v201_v17  ;;  %v1214_v30 = vrot.slane %v1282_v2, 9  ;;  %v1343_v63 = vld [vmem:[%s1275_s11 + $0x24] sm:$0xf] }
  0x16   : > { %v229_v29 = vor.u32 %v228_v21, %v225_v20  ;;  %v682_v31 = vrot.slane %v1285_v3, 5  ;;  %v182_v33 = vrot.slane %v181_v23, 4  ;;  %v234_v34 = vrot.slane %v232_v24, 5 }
  0x17   : > { %v676_v35 = vsel %vm1301_vm4, %v1213_v25, %v675_v26  ;;  %v1215_v36 = vrot.slane %v1288_v4, 9  ;;  %v206_v37 = vrot.slane %v205_v28, 4  ;;  %v689_v40 = vrot.slane %v1293_v9, 5 }
  0x18   : > { %v230_v38 = vrot.slane %v229_v29, 4  ;;  %v683_v39 = vsel %vm1301_vm4, %v1214_v30, %v682_v31  ;;  %v187_v41 = vsel %vm1309_vm5, %v182_v33, %v186_v16  ;;  %v188_v43 = vshrl.u32 %v1279_v1, 16 }
  0x19   : > { %v194_v44 = vshll.u32 %v119_v32, 16  ;;  %v212_v45 = vshrl.u32 %v1285_v3, 16  ;;  %v211_v46 = vsel %vm1309_vm5, %v206_v37, %v210_v19  ;;  %v590_v48 = vmax.bf16 %v187_v41, %v117_v0 }
  0x1a   : > { %v235_v47 = vsel %vm1309_vm5, %v230_v38, %v234_v34  ;;  %v1333_v49 = vsel %vm1301_vm4, %v1215_v36, %v689_v40  ;;  %v592_v51 = vmax.bf16 %v211_v46, %v1282_v2  ;;  %v190_v53 = vrot.slane %v188_v43, 4 }
  0x1b   : > { %v594_v52 = vmax.bf16 %v235_v47, %v1288_v4  ;;  %v196_v54 = vrot.slane %v194_v44, 5  ;;  %v817_v55 = vmax.bf16 %v676_v35, %v590_v48  ;;  %v214_v56 = vrot.slane %v212_v45, 4 }
  0x1c   : > { %v218_v57 = vshll.u32 %v122_v42, 16  ;;  %v236_v58 = vshrl.u32 %v1293_v9, 16  ;;  %v819_v59 = vmax.bf16 %v683_v39, %v592_v51  ;;  %v191_v61 = vor.u32 %v190_v53, %v186_v16 }
  0x1d   : > { %v1340_v60 = vmax.bf16 %v1333_v49, %v594_v52  ;;  %v242_v62 = vshll.u32 %v125_v50, 16  ;;  %v849_v0 = vmax.bf16 %v817_v55, %v1282_v2  ;;  %v215_v5 = vor.u32 %v214_v56, %v210_v19  ;;  %v1388_v55 = vld [vmem:[%s1275_s11 + $0x30] sm:$0xf] }
  0x1e   : > { %v220_v6 = vrot.slane %v218_v57, 5  ;;  %v238_v7 = vrot.slane %v236_v58, 4  ;;  %v851_v8 = vmax.bf16 %v819_v59, %v1288_v4  ;;  %v192_v11 = vrot.slane %v191_v61, 4 }
  0x1f   : > { %v853_v10 = vmax.bf16 %v1340_v60, %v1343_v63  ;;  %v244_v12 = vrot.slane %v242_v62, 5  ;;  %v907_v13 = vmax.bf16 %v849_v0, %v211_v46  ;;  %v216_v14 = vrot.slane %v215_v5, 4 }
  0x20   : > { %v239_v15 = vor.u32 %v238_v7, %v234_v34  ;;  %v677_v16 = vrot.slane %v675_v26, 4  ;;  %v909_v17 = vmax.bf16 %v851_v8, %v235_v47  ;;  %v197_v2 = vsel %vm1309_vm5, %v192_v11, %v196_v54  ;;  %v1396_v11 = vld [vmem:[%s1275_s11 + $0x34] sm:$0xf] }
  0x21   : > { %v678_v18 = vrot.slane %v119_v32, 5  ;;  %v684_v19 = vrot.slane %v682_v31, 4  ;;  %v951_v20 = vmax.bf16 %v907_v13, %v683_v39  ;;  %v221_v21 = vsel %vm1309_vm5, %v216_v14, %v220_v6  ;;  %v1361_v32 = vld [vmem:[%s1275_s11 + $0x28] sm:$0xf] }
  0x22   : > { %v240_v23 = vrot.slane %v239_v15, 4  ;;  %v591_v24 = vmax.bf16 %v197_v2, %v1279_v1  ;;  %v953_v25 = vmax.bf16 %v909_v17, %v1333_v49  ;;  %v593_v28 = vmax.bf16 %v221_v21, %v1285_v3 }
  0x23   : > { %v679_v26 = vsel %vm1301_vm4, %v677_v16, %v678_v18  ;;  %v685_v29 = vrot.slane %v122_v42, 5  ;;  %v983_v30 = vmax.bf16 %v951_v20, %v1288_v4  ;;  %v691_v33 = vrot.slane %v689_v40, 4 }
  0x24   : > { %v245_v31 = vsel %vm1309_vm5, %v240_v23, %v244_v12  ;;  %v692_v34 = vrot.slane %v125_v50, 5  ;;  %v818_v36 = vmax.bf16 %v679_v26, %v591_v24  ;;  %v247_v37 = vshrl.u32 %v1343_v63, 16  ;;  %v128_v50 = vld [vmem:[%s1275_s11 + $0x2c] sm:$0x1] }
  0x25   : > { %v595_v1 = vmax.bf16 %v245_v31, %v1293_v9  ;;  %v686_v35 = vsel %vm1301_vm4, %v684_v19, %v685_v29  ;;  %v1041_v38 = vmax.bf16 %v983_v30, %v235_v47  ;;  %v250_v41 = vshll.u32 %v1343_v63, 16 }
  0x26   : > { %v693_v4 = vsel %vm1301_vm4, %v691_v33, %v692_v34  ;;  %v820_v39 = vmax.bf16 %v686_v35, %v593_v28  ;;  %v850_v42 = vmax.bf16 %v818_v36, %v1285_v3  ;;  %v249_v43 = vrot.slane %v247_v37, 4 }
  0x27   : > { %v822_v40 = vmax.bf16 %v693_v4, %v595_v1  ;;  %v256_v44 = vshll.u32 %v1361_v32, 16  ;;  %v1085_v45 = vmax.bf16 %v1041_v38, %v1333_v49  ;;  %v252_v47 = vrot.slane %v250_v41, 5 }
  0x28   : > { %v852_v46 = vmax.bf16 %v820_v39, %v1293_v9  ;;  %v1216_v48 = vrot.slane %v1343_v63, 9  ;;  %v908_v52 = vmax.bf16 %v850_v42, %v221_v21  ;;  %v696_v54 = vrot.slane %v1361_v32, 5 }
  0x29   : > { %v854_v51 = vmax.bf16 %v822_v40, %v1361_v32  ;;  %v258_v53 = vrot.slane %v256_v44, 5  ;;  %1118 = vst.msk [vmem:[%s1375_s15] sm:$0xf] %vm1117_vm6, %v1085_v45  ;;  %v253_v56 = vor.u32 %v252_v47, %v249_v43  ;;  %v985_v49 = vmax.bf16 %v953_v25, %v1343_v63  ;;  %v1424_v44 = vld [vmem:[%s1275_s11 + $0x3c] sm:$0xf] }
  0x2a   : > { %v910_v3 = vmax.bf16 %v852_v46, %v245_v31  ;;  %v260_v57 = vshrl.u32 %v1361_v32, 16  ;;  %v952_v58 = vmax.bf16 %v908_v52, %v686_v35  ;;  %v697_v59 = vsel %vm1301_vm4, %v1216_v48, %v696_v54 }
  0x2b   : > { %v266_v61 = vshll.u32 %v128_v50, 16  ;;  %v698_v62 = vrot.slane %v696_v54, 4  ;;  %v254_v5 = vrot.slane %v253_v56, 4  ;;  %v699_v7 = vrot.slane %v128_v50, 5 }
  0x2c   : > { %v954_v0 = vmax.bf16 %v910_v3, %v693_v4  ;;  %v262_v6 = vrot.slane %v260_v57, 4  ;;  %v984_v8 = vmax.bf16 %v952_v58, %v1293_v9  ;;  %v271_v13 = vshrl.u32 %v1388_v55, 16 }
  0x2d   : > { %v268_v12 = vrot.slane %v266_v61, 5  ;;  %v274_v14 = vshll.u32 %v1388_v55, 16  ;;  %v259_v15 = vsel %vm1309_vm5, %v254_v5, %v258_v53  ;;  %v700_v17 = vsel %vm1301_vm4, %v698_v62, %v699_v7 }
  0x2e   : > { %v263_v16 = vor.u32 %v262_v6, %v258_v53  ;;  %v986_v2 = vmax.bf16 %v954_v0, %v1361_v32  ;;  %v1042_v18 = vmax.bf16 %v984_v8, %v245_v31  ;;  %v596_v9 = vmax.bf16 %v259_v15, %v1343_v63  ;;  %v131_v63 = vld [vmem:[%s1275_s11 + $0x38] sm:$0x1]  ;;  %v1435_v53 = vld [vmem:[%s1275_s11 + $0x40] sm:$0xf] }
  0x2f   : > { %v911_v19 = vmax.bf16 %v853_v10, %v259_v15  ;;  %v1043_v20 = vmax.bf16 %v985_v49, %v259_v15  ;;  %v273_v23 = vrot.slane %v271_v13, 4  ;;  %v276_v24 = vrot.slane %v274_v14, 5  ;;  %v134_v13 = vld [vmem:[%s1275_s11 + $0x44] sm:$0x1] }
  0x30   : > { %v264_v21 = vrot.slane %v263_v16, 4  ;;  %v280_v25 = vshll.u32 %v1396_v11, 16  ;;  %v1086_v28 = vmax.bf16 %v1042_v18, %v693_v4  ;;  %v823_v26 = vmax.bf16 %v697_v59, %v596_v9 }
  0x31   : > { %v955_v29 = vmax.bf16 %v911_v19, %v697_v59  ;;  %v1087_v30 = vmax.bf16 %v1043_v20, %v697_v59  ;;  %v277_v33 = vor.u32 %v276_v24, %v273_v23  ;;  %v1217_v60 = vrot.slane %v1388_v55, 9  ;;  %v1454_v19 = vld [vmem:[%s1275_s11 + $0x48] sm:$0xf] }
  0x32   : > { %v269_v31 = vsel %vm1309_vm5, %v264_v21, %v268_v12  ;;  %v282_v34 = vrot.slane %v280_v25, 5  ;;  %1119 = vst.msk [vmem:[%s1375_s15 + $0x4] sm:$0xf] %vm1117_vm6, %v1086_v28  ;;  %v855_v10 = vmax.bf16 %v823_v26, %v1388_v55  ;;  %v703_v38 = vrot.slane %v1396_v11, 5 }
  0x33   : > { %1120 = vst.msk [vmem:[%s1375_s15 + $0x8] sm:$0xf] %vm1117_vm6, %v1087_v30  ;;  %v597_v1 = vmax.bf16 %v269_v31, %v1361_v32  ;;  %v912_v35 = vmax.bf16 %v854_v51, %v269_v31  ;;  %v1044_v36 = vmax.bf16 %v986_v2, %v269_v31  ;;  %v278_v37 = vrot.slane %v277_v33, 4  ;;  %v1460_v30 = vld [vmem:[%s1275_s11 + $0x4c] sm:$0xf] }
  0x34   : > { %v987_v4 = vmax.bf16 %v955_v29, %v1388_v55  ;;  %v284_v39 = vshrl.u32 %v1396_v11, 16  ;;  %v290_v43 = vshll.u32 %v131_v63, 16  ;;  %v704_v45 = vsel %vm1301_vm4, %v1217_v60, %v703_v38 }
  0x35   : > { %v824_v41 = vmax.bf16 %v700_v17, %v597_v1  ;;  %v956_v40 = vmax.bf16 %v912_v35, %v700_v17  ;;  %v1088_v42 = vmax.bf16 %v1044_v36, %v700_v17  ;;  %v283_v32 = vsel %vm1309_vm5, %v278_v37, %v282_v34 }
  0x36   : > { %v286_v46 = vrot.slane %v284_v39, 4  ;;  %v705_v47 = vrot.slane %v703_v38, 4  ;;  %v598_v50 = vmax.bf16 %v283_v32, %v1388_v55  ;;  %v913_v51 = vmax.bf16 %v855_v10, %v283_v32 }
  0x37   : > { %v856_v48 = vmax.bf16 %v824_v41, %v1396_v11  ;;  %1121 = vst.msk [vmem:[%s1375_s15 + $0xc] sm:$0xf] %vm1117_vm6, %v1088_v42  ;;  %v1045_v52 = vmax.bf16 %v987_v4, %v283_v32  ;;  %v292_v3 = vrot.slane %v290_v43, 5  ;;  %v706_v56 = vrot.slane %v131_v63, 5  ;;  %v137_v43 = vld [vmem:[%s1275_s11 + $0x50] sm:$0x1] }
  0x38   : > { %v287_v54 = vor.u32 %v286_v46, %v282_v34  ;;  %v988_v49 = vmax.bf16 %v956_v40, %v1396_v11  ;;  %v825_v57 = vmax.bf16 %v704_v45, %v598_v50  ;;  %v957_v58 = vmax.bf16 %v913_v51, %v704_v45 }
  0x39   : > { %v1089_v59 = vmax.bf16 %v1045_v52, %v704_v45  ;;  %v295_v61 = vshrl.u32 %v1424_v44, 16  ;;  %v707_v55 = vsel %vm1301_vm4, %v705_v47, %v706_v56  ;;  %v298_v0 = vshll.u32 %v1424_v44, 16 }
  0x3a   : > { %v288_v62 = vrot.slane %v287_v54, 4  ;;  %v304_v5 = vshll.u32 %v1435_v53, 16  ;;  %v857_v6 = vmax.bf16 %v825_v57, %v1424_v44  ;;  %v1218_v8 = vrot.slane %v1424_v44, 9 }
  0x3b   : > { %1122 = vst.msk [vmem:[%s1375_s15 + $0x10] sm:$0xf] %vm1117_vm6, %v1089_v59  ;;  %v297_v7 = vrot.slane %v295_v61, 4  ;;  %v710_v12 = vrot.slane %v1435_v53, 5  ;;  %v300_v15 = vrot.slane %v298_v0, 5  ;;  %v989_v17 = vmax.bf16 %v957_v58, %v1424_v44 }
  0x3c   : > { %v293_v14 = vsel %vm1309_vm5, %v288_v62, %v292_v3  ;;  %v306_v16 = vrot.slane %v304_v5, 5  ;;  %v308_v23 = vshrl.u32 %v1435_v53, 16  ;;  %v314_v24 = vshll.u32 %v134_v13, 16  ;;  %v1487_v61 = vld [vmem:[%s1275_s11 + $0x54] sm:$0xf] }
  0x3d   : > { %v599_v2 = vmax.bf16 %v293_v14, %v1396_v11  ;;  %v914_v18 = vmax.bf16 %v856_v48, %v293_v14  ;;  %v1046_v9 = vmax.bf16 %v988_v49, %v293_v14  ;;  %v711_v20 = vsel %vm1301_vm4, %v1218_v8, %v710_v12 }
  0x3e   : > { %v301_v21 = vor.u32 %v300_v15, %v297_v7  ;;  %v712_v25 = vrot.slane %v710_v12, 4  ;;  %v713_v31 = vrot.slane %v134_v13, 5  ;;  %v310_v33 = vrot.slane %v308_v23, 4 }
  0x3f   : > { %v826_v28 = vmax.bf16 %v707_v55, %v599_v2  ;;  %v958_v26 = vmax.bf16 %v914_v18, %v707_v55  ;;  %v1090_v29 = vmax.bf16 %v1046_v9, %v707_v55  ;;  %v316_v34 = vrot.slane %v314_v24, 5  ;;  %v1498_v9 = vld [vmem:[%s1275_s11 + $0x58] sm:$0xf] }
  0x40   : > { %v302_v11 = vrot.slane %v301_v21, 4  ;;  %v319_v60 = vshrl.u32 %v1454_v19, 16  ;;  %v714_v10 = vsel %vm1301_vm4, %v712_v25, %v713_v31  ;;  %v322_v35 = vshll.u32 %v1454_v19, 16 }
  0x41   : > { %v858_v63 = vmax.bf16 %v826_v28, %v1435_v53  ;;  %1123 = vst.msk [vmem:[%s1375_s15 + $0x14] sm:$0xf] %vm1117_vm6, %v1090_v29  ;;  %v990_v1 = vmax.bf16 %v958_v26, %v1435_v53  ;;  %v311_v37 = vor.u32 %v310_v33, %v306_v16  ;;  %v328_v4 = vshll.u32 %v1460_v30, 16 }
  0x42   : > { %v307_v36 = vsel %vm1309_vm5, %v302_v11, %v306_v16  ;;  %v321_v38 = vrot.slane %v319_v60, 4  ;;  %v324_v42 = vrot.slane %v322_v35, 5  ;;  %v1219_v46 = vrot.slane %v1454_v19, 9  ;;  %v1515_v35 = vld [vmem:[%s1275_s11 + $0x60] sm:$0xf] }
  0x43   : > { %v600_v39 = vmax.bf16 %v307_v36, %v1424_v44  ;;  %v915_v41 = vmax.bf16 %v857_v6, %v307_v36  ;;  %v1047_v40 = vmax.bf16 %v989_v17, %v307_v36  ;;  %v312_v32 = vrot.slane %v311_v37, 4 }
  0x44   : > { %v330_v45 = vrot.slane %v328_v4, 5  ;;  %v717_v47 = vrot.slane %v1460_v30, 5  ;;  %v325_v52 = vor.u32 %v324_v42, %v321_v38  ;;  %v332_v3 = vshrl.u32 %v1460_v30, 16 }
  0x45   : > { %v827_v48 = vmax.bf16 %v711_v20, %v600_v39  ;;  %v959_v50 = vmax.bf16 %v915_v41, %v711_v20  ;;  %v1091_v51 = vmax.bf16 %v1047_v40, %v711_v20  ;;  %v317_v54 = vsel %vm1309_vm5, %v312_v32, %v316_v34 }
  0x46   : > { %v718_v44 = vsel %vm1301_vm4, %v1219_v46, %v717_v47  ;;  %v338_v56 = vshll.u32 %v137_v43, 16  ;;  %v601_v57 = vmax.bf16 %v317_v54, %v1435_v53  ;;  %v916_v58 = vmax.bf16 %v858_v63, %v317_v54 }
  0x47   : > { %v859_v49 = vmax.bf16 %v827_v48, %v1454_v19  ;;  %1124 = vst.msk [vmem:[%s1375_s15 + $0x18] sm:$0xf] %vm1117_vm6, %v1091_v51  ;;  %v1048_v59 = vmax.bf16 %v990_v1, %v317_v54  ;;  %v326_v62 = vrot.slane %v325_v52, 4  ;;  %v991_v55 = vmax.bf16 %v959_v50, %v1454_v19  ;;  %v140_v1 = vld [vmem:[%s1275_s11 + $0x5c] sm:$0x1] }
  0x48   : > { %v334_v0 = vrot.slane %v332_v3, 4  ;;  %v340_v5 = vrot.slane %v338_v56, 5  ;;  %v828_v6 = vmax.bf16 %v714_v10, %v601_v57  ;;  %v960_v7 = vmax.bf16 %v916_v58, %v714_v10 }
  0x49   : > { %v1092_v8 = vmax.bf16 %v1048_v59, %v714_v10  ;;  %v719_v12 = vrot.slane %v717_v47, 4  ;;  %v331_v13 = vsel %vm1309_vm5, %v326_v62, %v330_v45  ;;  %v720_v53 = vrot.slane %v137_v43, 5 }
  0x4a   : > { %v335_v14 = vor.u32 %v334_v0, %v330_v45  ;;  %v343_v15 = vshrl.u32 %v1487_v61, 16  ;;  %v860_v16 = vmax.bf16 %v828_v6, %v1460_v30  ;;  %v602_v17 = vmax.bf16 %v331_v13, %v1454_v19 }
  0x4b   : > { %1125 = vst.msk [vmem:[%s1375_s15 + $0x1c] sm:$0xf] %vm1117_vm6, %v1092_v8  ;;  %v917_v2 = vmax.bf16 %v859_v49, %v331_v13  ;;  %v1049_v18 = vmax.bf16 %v991_v55, %v331_v13  ;;  %v721_v21 = vsel %vm1301_vm4, %v719_v12, %v720_v53  ;;  %v992_v23 = vmax.bf16 %v960_v7, %v1460_v30  ;;  %v143_v53 = vld [vmem:[%s1275_s11 + $0x68] sm:$0x1] }
  0x4c   : > { %v336_v20 = vrot.slane %v335_v14, 4  ;;  %v345_v24 = vrot.slane %v343_v15, 4  ;;  %v829_v25 = vmax.bf16 %v718_v44, %v602_v17  ;;  %v346_v29 = vshll.u32 %v1487_v61, 16 }
  0x4d   : > { %v961_v28 = vmax.bf16 %v917_v2, %v718_v44  ;;  %v1093_v26 = vmax.bf16 %v1049_v18, %v718_v44  ;;  %v352_v31 = vshll.u32 %v1498_v9, 16  ;;  %v1220_v11 = vrot.slane %v1487_v61, 9 }
  0x4e   : > { %v341_v19 = vsel %vm1309_vm5, %v336_v20, %v340_v5  ;;  %v724_v33 = vrot.slane %v1498_v9, 5  ;;  %v861_v34 = vmax.bf16 %v829_v25, %v1487_v61  ;;  %v348_v36 = vrot.slane %v346_v29, 5 }
  0x4f   : > { %1126 = vst.msk [vmem:[%s1375_s15 + $0x20] sm:$0xf] %vm1117_vm6, %v1093_v26  ;;  %v603_v60 = vmax.bf16 %v341_v19, %v1460_v30  ;;  %v918_v63 = vmax.bf16 %v860_v16, %v341_v19  ;;  %v1050_v10 = vmax.bf16 %v992_v23, %v341_v19  ;;  %v354_v37 = vrot.slane %v352_v31, 5  ;;  %v1522_v30 = vld [vmem:[%s1275_s11 + $0x64] sm:$0xf] }
  0x50   : > { %v725_v38 = vsel %vm1301_vm4, %v1220_v11, %v724_v33  ;;  %v993_v4 = vmax.bf16 %v961_v28, %v1487_v61  ;;  %v356_v42 = vshrl.u32 %v1498_v9, 16  ;;  %v349_v43 = vor.u32 %v348_v36, %v345_v24 }
  0x51   : > { %v830_v39 = vmax.bf16 %v721_v21, %v603_v60  ;;  %v962_v41 = vmax.bf16 %v918_v63, %v721_v21  ;;  %v1094_v40 = vmax.bf16 %v1050_v10, %v721_v21  ;;  %v362_v32 = vshll.u32 %v140_v1, 16 }
  0x52   : > { %v726_v45 = vrot.slane %v724_v33, 4  ;;  %v727_v46 = vrot.slane %v140_v1, 5  ;;  %v358_v48 = vrot.slane %v356_v42, 4  ;;  %v367_v51 = vshrl.u32 %v1515_v35, 16 }
  0x53   : > { %v862_v47 = vmax.bf16 %v830_v39, %v1498_v9  ;;  %1127 = vst.msk [vmem:[%s1375_s15 + $0x24] sm:$0xf] %vm1117_vm6, %v1094_v40  ;;  %v994_v50 = vmax.bf16 %v962_v41, %v1498_v9  ;;  %v350_v52 = vrot.slane %v349_v43, 4  ;;  %v364_v54 = vrot.slane %v362_v32, 5  ;;  %v1559_v41 = vld [vmem:[%s1275_s11 + $0x70] sm:$0xf] }
  0x54   : > { %v728_v44 = vsel %vm1301_vm4, %v726_v45, %v727_v46  ;;  %v370_v3 = vshll.u32 %v1515_v35, 16  ;;  %v359_v56 = vor.u32 %v358_v48, %v354_v37  ;;  %v369_v49 = vrot.slane %v367_v51, 4 }
  0x55   : > { %v376_v57 = vshll.u32 %v1522_v30, 16  ;;  %v1221_v58 = vrot.slane %v1515_v35, 9  ;;  %v355_v59 = vsel %vm1309_vm5, %v350_v52, %v354_v37  ;;  %v731_v55 = vrot.slane %v1522_v30, 5 }
  0x56   : > { %v372_v62 = vrot.slane %v370_v3, 5  ;;  %v380_v0 = vshrl.u32 %v1522_v30, 16  ;;  %v604_v5 = vmax.bf16 %v355_v59, %v1487_v61  ;;  %v919_v6 = vmax.bf16 %v861_v34, %v355_v59 }
  0x57   : > { %v1051_v7 = vmax.bf16 %v993_v4, %v355_v59  ;;  %v360_v8 = vrot.slane %v359_v56, 4  ;;  %v378_v13 = vrot.slane %v376_v57, 5  ;;  %v732_v14 = vsel %vm1301_vm4, %v1221_v58, %v731_v55  ;;  %v1577_v58 = vld [vmem:[%s1275_s11 + $0x78] sm:$0xf] }
  0x58   : > { %v373_v12 = vor.u32 %v372_v62, %v369_v49  ;;  %v382_v15 = vrot.slane %v380_v0, 4  ;;  %v831_v16 = vmax.bf16 %v725_v38, %v604_v5  ;;  %v963_v17 = vmax.bf16 %v919_v6, %v725_v38 }
  0x59   : > { %v1095_v2 = vmax.bf16 %v1051_v7, %v725_v38  ;;  %v365_v18 = vsel %vm1309_vm5, %v360_v8, %v364_v54  ;;  %v386_v26 = vshll.u32 %v143_v53, 16  ;;  %v733_v36 = vrot.slane %v731_v55, 4  ;;  %v1581_v55 = vld [vmem:[%s1275_s11 + $0x7c] sm:$0xf] }
  0x5a   : > { %v605_v61 = vmax.bf16 %v365_v18, %v1498_v9  ;;  %v920_v20 = vmax.bf16 %v862_v47, %v365_v18  ;;  %v1052_v21 = vmax.bf16 %v994_v50, %v365_v18  ;;  %v374_v23 = vrot.slane %v373_v12, 4  ;;  %v1552_v9 = vld [vmem:[%s1275_s11 + $0x6c] sm:$0xf] }
  0x5b   : > { %v863_v24 = vmax.bf16 %v831_v16, %v1515_v35  ;;  %1128 = vst.msk [vmem:[%s1375_s15 + $0x28] sm:$0xf] %vm1117_vm6, %v1095_v2  ;;  %v995_v25 = vmax.bf16 %v963_v17, %v1515_v35  ;;  %v383_v28 = vor.u32 %v382_v15, %v378_v13  ;;  %v388_v1 = vrot.slane %v386_v26, 5  ;;  %v149_v26 = vld [vmem:[%s1275_s11 + $0x80] sm:$0x1] }
  0x5c   : > { %v832_v29 = vmax.bf16 %v728_v44, %v605_v61  ;;  %v964_v19 = vmax.bf16 %v920_v20, %v728_v44  ;;  %v1096_v31 = vmax.bf16 %v1052_v21, %v728_v44  ;;  %v379_v11 = vsel %vm1309_vm5, %v374_v23, %v378_v13  ;;  %v146_v44 = vld [vmem:[%s1275_s11 + $0x74] sm:$0x1] }
  0x5d   : > { %v606_v33 = vmax.bf16 %v379_v11, %v1515_v35  ;;  %v921_v34 = vmax.bf16 %v863_v24, %v379_v11  ;;  %v1053_v60 = vmax.bf16 %v995_v25, %v379_v11  ;;  %v384_v63 = vrot.slane %v383_v28, 4 }
  0x5e   : > { %v864_v10 = vmax.bf16 %v832_v29, %v1522_v30  ;;  %1129 = vst.msk [vmem:[%s1375_s15 + $0x2c] sm:$0xf] %vm1117_vm6, %v1096_v31  ;;  %v734_v37 = vrot.slane %v143_v53, 5  ;;  %v996_v40 = vmax.bf16 %v964_v19, %v1522_v30  ;;  %v391_v43 = vshrl.u32 %v1552_v9, 16 }
  0x5f   : > { %v833_v38 = vmax.bf16 %v732_v14, %v606_v33  ;;  %v965_v4 = vmax.bf16 %v921_v34, %v732_v14  ;;  %v1097_v39 = vmax.bf16 %v1053_v60, %v732_v14  ;;  %v389_v35 = vsel %vm1309_vm5, %v384_v63, %v388_v1 }
  0x60   : > { %v735_v42 = vsel %vm1301_vm4, %v733_v36, %v734_v37  ;;  %v394_v32 = vshll.u32 %v1552_v9, 16  ;;  %v607_v46 = vmax.bf16 %v389_v35, %v1522_v30  ;;  %v922_v47 = vmax.bf16 %v864_v10, %v389_v35 }
  0x61   : > { %v865_v45 = vmax.bf16 %v833_v38, %v1552_v9  ;;  %1130 = vst.msk [vmem:[%s1375_s15 + $0x30] sm:$0xf] %vm1117_vm6, %v1097_v39  ;;  %v1054_v48 = vmax.bf16 %v996_v40, %v389_v35  ;;  %v393_v50 = vrot.slane %v391_v43, 4  ;;  %v400_v52 = vshll.u32 %v1559_v41, 16  ;;  %v1611_v40 = vld [vmem:[%s1275_s11 + $0x84] sm:$0xf] }
  0x62   : > { %v396_v51 = vrot.slane %v394_v32, 5  ;;  %v1222_v54 = vrot.slane %v1552_v9, 9  ;;  %v834_v3 = vmax.bf16 %v735_v42, %v607_v46  ;;  %v966_v56 = vmax.bf16 %v922_v47, %v735_v42 }
  0x63   : > { %v1098_v49 = vmax.bf16 %v1054_v48, %v735_v42  ;;  %v738_v57 = vrot.slane %v1559_v41, 5  ;;  %v402_v30 = vrot.slane %v400_v52, 5  ;;  %v997_v62 = vmax.bf16 %v965_v4, %v1552_v9 }
  0x64   : > { %v397_v59 = vor.u32 %v396_v51, %v393_v50  ;;  %v404_v0 = vshrl.u32 %v1559_v41, 16  ;;  %v866_v5 = vmax.bf16 %v834_v3, %v1559_v41  ;;  %v410_v7 = vshll.u32 %v146_v44, 16 }
  0x65   : > { %1131 = vst.msk [vmem:[%s1375_s15 + $0x34] sm:$0xf] %vm1117_vm6, %v1098_v49  ;;  %v739_v6 = vsel %vm1301_vm4, %v1222_v54, %v738_v57  ;;  %v740_v8 = vrot.slane %v738_v57, 4  ;;  %v741_v14 = vrot.slane %v146_v44, 5  ;;  %v998_v53 = vmax.bf16 %v966_v56, %v1559_v41  ;;  %v1622_v49 = vld [vmem:[%s1275_s11 + $0x88] sm:$0xf] }
  0x66   : > { %v398_v12 = vrot.slane %v397_v59, 4  ;;  %v406_v13 = vrot.slane %v404_v0, 4  ;;  %v412_v15 = vrot.slane %v410_v7, 5  ;;  %v415_v16 = vshrl.u32 %v1577_v58, 16 }
  0x67   : > { %v418_v17 = vshll.u32 %v1577_v58, 16  ;;  %v424_v2 = vshll.u32 %v1581_v55, 16  ;;  %v742_v20 = vsel %vm1301_vm4, %v740_v8, %v741_v14  ;;  %v1223_v21 = vrot.slane %v1577_v58, 9 }
  0x68   : > { %v403_v18 = vsel %vm1309_vm5, %v398_v12, %v402_v30  ;;  %v407_v61 = vor.u32 %v406_v13, %v402_v30  ;;  %v417_v28 = vrot.slane %v415_v16, 4  ;;  %v745_v11 = vrot.slane %v1581_v55, 5 }
  0x69   : > { %v608_v23 = vmax.bf16 %v403_v18, %v1552_v9  ;;  %v923_v24 = vmax.bf16 %v865_v45, %v403_v18  ;;  %v1055_v25 = vmax.bf16 %v997_v62, %v403_v18  ;;  %v420_v19 = vrot.slane %v418_v17, 5  ;;  %v152_v17 = vld [vmem:[%s1275_s11 + $0x8c] sm:$0x1] }
  0x6a   : > { %v408_v29 = vrot.slane %v407_v61, 4  ;;  %v426_v31 = vrot.slane %v424_v2, 5  ;;  %v428_v63 = vshrl.u32 %v1581_v55, 16  ;;  %v746_v1 = vsel %vm1301_vm4, %v1223_v21, %v745_v11  ;;  %v1639_v2 = vld [vmem:[%s1275_s11 + $0x90] sm:$0xf] }
  0x6b   : > { %v835_v33 = vmax.bf16 %v739_v6, %v608_v23  ;;  %v967_v34 = vmax.bf16 %v923_v24, %v739_v6  ;;  %v1099_v60 = vmax.bf16 %v1055_v25, %v739_v6  ;;  %v421_v9 = vor.u32 %v420_v19, %v417_v28 }
  0x6c   : > { %v413_v10 = vsel %vm1309_vm5, %v408_v29, %v412_v15  ;;  %v434_v36 = vshll.u32 %v149_v26, 16  ;;  %v430_v43 = vrot.slane %v428_v63, 4  ;;  %v747_v48 = vrot.slane %v745_v11, 4 }
  0x6d   : > { %v867_v37 = vmax.bf16 %v835_v33, %v1577_v58  ;;  %1132 = vst.msk [vmem:[%s1375_s15 + $0x38] sm:$0xf] %vm1117_vm6, %v1099_v60  ;;  %v609_v38 = vmax.bf16 %v413_v10, %v1559_v41  ;;  %v924_v4 = vmax.bf16 %v866_v5, %v413_v10  ;;  %v1056_v39 = vmax.bf16 %v998_v53, %v413_v10 }
  0x6e   : > { %v422_v35 = vrot.slane %v421_v9, 4  ;;  %v999_v42 = vmax.bf16 %v967_v34, %v1577_v58  ;;  %v436_v32 = vrot.slane %v434_v36, 5  ;;  %v431_v51 = vor.u32 %v430_v43, %v426_v31 }
  0x6f   : > { %v836_v45 = vmax.bf16 %v742_v20, %v609_v38  ;;  %v968_v46 = vmax.bf16 %v924_v4, %v742_v20  ;;  %v1100_v47 = vmax.bf16 %v1056_v39, %v742_v20  ;;  %v748_v41 = vrot.slane %v149_v26, 5 }
  0x70   : > { %v427_v50 = vsel %vm1309_vm5, %v422_v35, %v426_v31  ;;  %v439_v52 = vshrl.u32 %v1611_v40, 16  ;;  %v432_v57 = vrot.slane %v431_v51, 4  ;;  %v442_v7 = vshll.u32 %v1611_v40, 16 }
  0x71   : > { %v868_v54 = vmax.bf16 %v836_v45, %v1581_v55  ;;  %1133 = vst.msk [vmem:[%s1375_s15 + $0x3c] sm:$0xf] %vm1117_vm6, %v1100_v47  ;;  %v610_v44 = vmax.bf16 %v427_v50, %v1577_v58  ;;  %v925_v3 = vmax.bf16 %v867_v37, %v427_v50  ;;  %v1057_v56 = vmax.bf16 %v999_v42, %v427_v50 }
  0x72   : > { %v749_v59 = vsel %vm1301_vm4, %v747_v48, %v748_v41  ;;  %v1000_v30 = vmax.bf16 %v968_v46, %v1581_v55  ;;  %v441_v62 = vrot.slane %v439_v52, 4  ;;  %v437_v58 = vsel %vm1309_vm5, %v432_v57, %v436_v32  ;;  %v155_v41 = vld [vmem:[%s1275_s11 + $0x98] sm:$0x1] }
  0x73   : > { %v837_v0 = vmax.bf16 %v746_v1, %v610_v44  ;;  %v969_v5 = vmax.bf16 %v925_v3, %v746_v1  ;;  %v1101_v6 = vmax.bf16 %v1057_v56, %v746_v1  ;;  %v448_v8 = vshll.u32 %v1622_v49, 16 }
  0x74   : > { %v1224_v12 = vrot.slane %v1611_v40, 9  ;;  %v752_v13 = vrot.slane %v1622_v49, 5  ;;  %v611_v53 = vmax.bf16 %v437_v58, %v1581_v55  ;;  %v926_v15 = vmax.bf16 %v868_v54, %v437_v58  ;;  %v1646_v55 = vld [vmem:[%s1275_s11 + $0x94] sm:$0xf] }
  0x75   : > { %v869_v14 = vmax.bf16 %v837_v0, %v1611_v40  ;;  %1134 = vst.msk [vmem:[%s1375_s15 + $0x40] sm:$0xf] %vm1117_vm6, %v1101_v6  ;;  %v1058_v16 = vmax.bf16 %v1000_v30, %v437_v58  ;;  %v444_v18 = vrot.slane %v442_v7, 5  ;;  %v450_v61 = vrot.slane %v448_v8, 5 }
  0x76   : > { %v753_v20 = vsel %vm1301_vm4, %v1224_v12, %v752_v13  ;;  %v1001_v21 = vmax.bf16 %v969_v5, %v1611_v40  ;;  %v838_v23 = vmax.bf16 %v749_v59, %v611_v53  ;;  %v970_v24 = vmax.bf16 %v926_v15, %v749_v59 }
  0x77   : > { %v1102_v25 = vmax.bf16 %v1058_v16, %v749_v59  ;;  %v452_v28 = vshrl.u32 %v1622_v49, 16  ;;  %v445_v26 = vor.u32 %v444_v18, %v441_v62  ;;  %v458_v29 = vshll.u32 %v152_v17, 16 }
  0x78   : > { %v754_v19 = vrot.slane %v752_v13, 4  ;;  %v755_v31 = vrot.slane %v152_v17, 5  ;;  %v870_v11 = vmax.bf16 %v838_v23, %v1622_v49  ;;  %v1002_v34 = vmax.bf16 %v970_v24, %v1622_v49  ;;  %v1683_v24 = vld [vmem:[%s1275_s11 + $0xa0] sm:$0xf] }
  0x79   : > { %1135 = vst.msk [vmem:[%s1375_s15 + $0x44] sm:$0xf] %vm1117_vm6, %v1102_v25  ;;  %v454_v33 = vrot.slane %v452_v28, 4  ;;  %v463_v60 = vshrl.u32 %v1639_v2, 16  ;;  %v446_v63 = vrot.slane %v445_v26, 4  ;;  %v460_v10 = vrot.slane %v458_v29, 5 }
  0x7a   : > { %v756_v9 = vsel %vm1301_vm4, %v754_v19, %v755_v31  ;;  %v466_v1 = vshll.u32 %v1639_v2, 16  ;;  %v472_v38 = vshll.u32 %v1646_v55, 16  ;;  %v1225_v4 = vrot.slane %v1639_v2, 9 }
  0x7b   : > { %v455_v36 = vor.u32 %v454_v33, %v450_v61  ;;  %v465_v37 = vrot.slane %v463_v60, 4  ;;  %v451_v39 = vsel %vm1309_vm5, %v446_v63, %v450_v61  ;;  %v759_v42 = vrot.slane %v1646_v55, 5 }
  0x7c   : > { %v468_v35 = vrot.slane %v466_v1, 5  ;;  %v476_v43 = vshrl.u32 %v1646_v55, 16  ;;  %v612_v32 = vmax.bf16 %v451_v39, %v1611_v40  ;;  %v927_v45 = vmax.bf16 %v869_v14, %v451_v39 }
  0x7d   : > { %v1059_v46 = vmax.bf16 %v1001_v21, %v451_v39  ;;  %v456_v47 = vrot.slane %v455_v36, 4  ;;  %v474_v50 = vrot.slane %v472_v38, 5  ;;  %v760_v51 = vsel %vm1301_vm4, %v1225_v4, %v759_v42  ;;  %v1701_v4 = vld [vmem:[%s1275_s11 + $0xa8] sm:$0xf] }
  0x7e   : > { %v469_v48 = vor.u32 %v468_v35, %v465_v37  ;;  %v478_v52 = vrot.slane %v476_v43, 4  ;;  %v839_v54 = vmax.bf16 %v753_v20, %v612_v32  ;;  %v971_v44 = vmax.bf16 %v927_v45, %v753_v20 }
  0x7f   : > { %v1103_v3 = vmax.bf16 %v1059_v46, %v753_v20  ;;  %v461_v56 = vsel %vm1309_vm5, %v456_v47, %v460_v10  ;;  %v482_v6 = vshll.u32 %v155_v41, 16  ;;  %v761_v18 = vrot.slane %v759_v42, 4  ;;  %v1705_v42 = vld [vmem:[%s1275_s11 + $0xac] sm:$0xf] }
  0x80   : > { %v613_v40 = vmax.bf16 %v461_v56, %v1622_v49  ;;  %v928_v57 = vmax.bf16 %v870_v11, %v461_v56  ;;  %v1060_v59 = vmax.bf16 %v1002_v34, %v461_v56  ;;  %v470_v30 = vrot.slane %v469_v48, 4  ;;  %v1676_v49 = vld [vmem:[%s1275_s11 + $0x9c] sm:$0xf] }
  0x81   : > { %v871_v62 = vmax.bf16 %v839_v54, %v1639_v2  ;;  %1136 = vst.msk [vmem:[%s1375_s15 + $0x48] sm:$0xf] %vm1117_vm6, %v1103_v3  ;;  %v1003_v0 = vmax.bf16 %v971_v44, %v1639_v2  ;;  %v479_v5 = vor.u32 %v478_v52, %v474_v50  ;;  %v484_v17 = vrot.slane %v482_v6, 5  ;;  %v161_v6 = vld [vmem:[%s1275_s11 + $0xb0] sm:$0x1] }
  0x82   : > { %v840_v7 = vmax.bf16 %v756_v9, %v613_v40  ;;  %v972_v58 = vmax.bf16 %v928_v57, %v756_v9  ;;  %v1104_v8 = vmax.bf16 %v1060_v59, %v756_v9  ;;  %v475_v12 = vsel %vm1309_vm5, %v470_v30, %v474_v50  ;;  %v158_v9 = vld [vmem:[%s1275_s11 + $0xa4] sm:$0x1] }
  0x83   : > { %v614_v13 = vmax.bf16 %v475_v12, %v1639_v2  ;;  %v929_v14 = vmax.bf16 %v871_v62, %v475_v12  ;;  %v1061_v53 = vmax.bf16 %v1003_v0, %v475_v12  ;;  %v480_v15 = vrot.slane %v479_v5, 4 }
  0x84   : > { %v872_v16 = vmax.bf16 %v840_v7, %v1646_v55  ;;  %1137 = vst.msk [vmem:[%s1375_s15 + $0x4c] sm:$0xf] %vm1117_vm6, %v1104_v8  ;;  %v762_v61 = vrot.slane %v155_v41, 5  ;;  %v1004_v25 = vmax.bf16 %v972_v58, %v1646_v55  ;;  %v487_v26 = vshrl.u32 %v1676_v49, 16 }
  0x85   : > { %v841_v20 = vmax.bf16 %v760_v51, %v614_v13  ;;  %v973_v21 = vmax.bf16 %v929_v14, %v760_v51  ;;  %v1105_v23 = vmax.bf16 %v1061_v53, %v760_v51  ;;  %v485_v2 = vsel %vm1309_vm5, %v480_v15, %v484_v17 }
  0x86   : > { %v763_v28 = vsel %vm1301_vm4, %v761_v18, %v762_v61  ;;  %v490_v29 = vshll.u32 %v1676_v49, 16  ;;  %v615_v31 = vmax.bf16 %v485_v2, %v1646_v55  ;;  %v930_v11 = vmax.bf16 %v872_v16, %v485_v2 }
  0x87   : > { %v873_v19 = vmax.bf16 %v841_v20, %v1676_v49  ;;  %1138 = vst.msk [vmem:[%s1375_s15 + $0x50] sm:$0xf] %vm1117_vm6, %v1105_v23  ;;  %v1062_v33 = vmax.bf16 %v1004_v25, %v485_v2  ;;  %v489_v34 = vrot.slane %v487_v26, 4  ;;  %v496_v63 = vshll.u32 %v1683_v24, 16  ;;  %v1735_v25 = vld [vmem:[%s1275_s11 + $0xb4] sm:$0xf] }
  0x88   : > { %v492_v60 = vrot.slane %v490_v29, 5  ;;  %v1226_v10 = vrot.slane %v1676_v49, 9  ;;  %v842_v1 = vmax.bf16 %v763_v28, %v615_v31  ;;  %v974_v36 = vmax.bf16 %v930_v11, %v763_v28 }
  0x89   : > { %v1106_v37 = vmax.bf16 %v1062_v33, %v763_v28  ;;  %v766_v38 = vrot.slane %v1683_v24, 5  ;;  %v498_v55 = vrot.slane %v496_v63, 5  ;;  %v1005_v35 = vmax.bf16 %v973_v21, %v1676_v49 }
  0x8a   : > { %v493_v39 = vor.u32 %v492_v60, %v489_v34  ;;  %v500_v43 = vshrl.u32 %v1683_v24, 16  ;;  %v874_v32 = vmax.bf16 %v842_v1, %v1683_v24  ;;  %v506_v46 = vshll.u32 %v158_v9, 16 }
  0x8b   : > { %1139 = vst.msk [vmem:[%s1375_s15 + $0x54] sm:$0xf] %vm1117_vm6, %v1106_v37  ;;  %v767_v45 = vsel %vm1301_vm4, %v1226_v10, %v766_v38  ;;  %v768_v47 = vrot.slane %v766_v38, 4  ;;  %v769_v51 = vrot.slane %v158_v9, 5  ;;  %v1006_v41 = vmax.bf16 %v974_v36, %v1683_v24  ;;  %v1746_v37 = vld [vmem:[%s1275_s11 + $0xb8] sm:$0xf] }
  0x8c   : > { %v494_v48 = vrot.slane %v493_v39, 4  ;;  %v502_v50 = vrot.slane %v500_v43, 4  ;;  %v508_v52 = vrot.slane %v506_v46, 5  ;;  %v511_v54 = vshrl.u32 %v1701_v4, 16 }
  0x8d   : > { %v514_v44 = vshll.u32 %v1701_v4, 16  ;;  %v520_v3 = vshll.u32 %v1705_v42, 16  ;;  %v770_v57 = vsel %vm1301_vm4, %v768_v47, %v769_v51  ;;  %v1227_v59 = vrot.slane %v1701_v4, 9 }
  0x8e   : > { %v499_v56 = vsel %vm1309_vm5, %v494_v48, %v498_v55  ;;  %v503_v40 = vor.u32 %v502_v50, %v498_v55  ;;  %v513_v5 = vrot.slane %v511_v54, 4  ;;  %v773_v12 = vrot.slane %v1705_v42, 5 }
  0x8f   : > { %v616_v30 = vmax.bf16 %v499_v56, %v1676_v49  ;;  %v931_v62 = vmax.bf16 %v873_v19, %v499_v56  ;;  %v1063_v0 = vmax.bf16 %v1005_v35, %v499_v56  ;;  %v516_v58 = vrot.slane %v514_v44, 5  ;;  %v164_v44 = vld [vmem:[%s1275_s11 + $0xbc] sm:$0x1] }
  0x90   : > { %v504_v7 = vrot.slane %v503_v40, 4  ;;  %v522_v8 = vrot.slane %v520_v3, 5  ;;  %v524_v15 = vshrl.u32 %v1705_v42, 16  ;;  %v774_v17 = vsel %vm1301_vm4, %v1227_v59, %v773_v12  ;;  %v165_v59 = vld [vmem:[%s1275_s11 + $0xc0] sm:$0xf] }
  0x91   : > { %v843_v13 = vmax.bf16 %v767_v45, %v616_v30  ;;  %v975_v14 = vmax.bf16 %v931_v62, %v767_v45  ;;  %v1107_v53 = vmax.bf16 %v1063_v0, %v767_v45  ;;  %v517_v49 = vor.u32 %v516_v58, %v513_v5 }
  0x92   : > { %v509_v16 = vsel %vm1309_vm5, %v504_v7, %v508_v52  ;;  %v530_v18 = vshll.u32 %v161_v6, 16  ;;  %v526_v26 = vrot.slane %v524_v15, 4  ;;  %v775_v33 = vrot.slane %v773_v12, 4 }
  0x93   : > { %v875_v61 = vmax.bf16 %v843_v13, %v1701_v4  ;;  %1140 = vst.msk [vmem:[%s1375_s15 + $0x58] sm:$0xf] %vm1117_vm6, %v1107_v53  ;;  %v617_v20 = vmax.bf16 %v509_v16, %v1683_v24  ;;  %v932_v21 = vmax.bf16 %v874_v32, %v509_v16  ;;  %v1064_v23 = vmax.bf16 %v1006_v41, %v509_v16 }
  0x94   : > { %v518_v2 = vrot.slane %v517_v49, 4  ;;  %v1007_v28 = vmax.bf16 %v975_v14, %v1701_v4  ;;  %v532_v29 = vrot.slane %v530_v18, 5  ;;  %v527_v60 = vor.u32 %v526_v26, %v522_v8 }
  0x95   : > { %v844_v19 = vmax.bf16 %v770_v57, %v617_v20  ;;  %v976_v31 = vmax.bf16 %v932_v21, %v770_v57  ;;  %v1108_v11 = vmax.bf16 %v1064_v23, %v770_v57  ;;  %v776_v24 = vrot.slane %v161_v6, 5 }
  0x96   : > { %v523_v34 = vsel %vm1309_vm5, %v518_v2, %v522_v8  ;;  %v535_v63 = vshrl.u32 %v1735_v25, 16  ;;  %v528_v38 = vrot.slane %v527_v60, 4  ;;  %v538_v46 = vshll.u32 %v1735_v25, 16  ;;  %v166_v8 = vld [vmem:[%s1275_s11 + $0xc4] sm:$0xf] }
  0x97   : > { %v876_v10 = vmax.bf16 %v844_v19, %v1705_v42  ;;  %1141 = vst.msk [vmem:[%s1375_s15 + $0x5c] sm:$0xf] %vm1117_vm6, %v1108_v11  ;;  %v618_v9 = vmax.bf16 %v523_v34, %v1701_v4  ;;  %v933_v1 = vmax.bf16 %v875_v61, %v523_v34  ;;  %v1065_v36 = vmax.bf16 %v1007_v28, %v523_v34 }
  0x98   : > { %v777_v39 = vsel %vm1301_vm4, %v775_v33, %v776_v24  ;;  %v1008_v55 = vmax.bf16 %v976_v31, %v1705_v42  ;;  %v537_v35 = vrot.slane %v535_v63, 4  ;;  %v533_v4 = vsel %vm1309_vm5, %v528_v38, %v532_v29  ;;  %v167_v24 = vld [vmem:[%s1275_s11 + $0xc8] sm:$0x1] }
  0x99   : > { %v845_v43 = vmax.bf16 %v774_v17, %v618_v9  ;;  %v977_v32 = vmax.bf16 %v933_v1, %v774_v17  ;;  %v1109_v45 = vmax.bf16 %v1065_v36, %v774_v17  ;;  %v544_v47 = vshll.u32 %v1746_v37, 16 }
  0x9a   : > { %v1228_v48 = vrot.slane %v1735_v25, 9  ;;  %v780_v50 = vrot.slane %v1746_v37, 5  ;;  %v619_v41 = vmax.bf16 %v533_v4, %v1705_v42  ;;  %v934_v52 = vmax.bf16 %v876_v10, %v533_v4 }
  0x9b   : > { %v877_v51 = vmax.bf16 %v845_v43, %v1735_v25  ;;  %1142 = vst.msk [vmem:[%s1375_s15 + $0x60] sm:$0xf] %vm1117_vm6, %v1109_v45  ;;  %v1066_v54 = vmax.bf16 %v1008_v55, %v533_v4  ;;  %v540_v3 = vrot.slane %v538_v46, 5  ;;  %v546_v56 = vrot.slane %v544_v47, 5 }
  0x9c   : > { %v781_v40 = vsel %vm1301_vm4, %v1228_v48, %v780_v50  ;;  %v1009_v57 = vmax.bf16 %v977_v32, %v1735_v25  ;;  %v846_v30 = vmax.bf16 %v777_v39, %v619_v41  ;;  %v978_v62 = vmax.bf16 %v934_v52, %v777_v39 }
  0x9d   : > { %v1110_v0 = vmax.bf16 %v1066_v54, %v777_v39  ;;  %v548_v5 = vshrl.u32 %v1746_v37, 16  ;;  %v541_v6 = vor.u32 %v540_v3, %v537_v35  ;;  %v554_v42 = vshll.u32 %v164_v44, 16 }
  0x9e   : > { %v782_v7 = vrot.slane %v780_v50, 4  ;;  %v783_v58 = vrot.slane %v164_v44, 5  ;;  %v878_v12 = vmax.bf16 %v846_v30, %v1746_v37  ;;  %v1010_v14 = vmax.bf16 %v978_v62, %v1746_v37  ;;  %v168_v50 = vld [vmem:[%s1275_s11 + $0xcc] sm:$0xf] }
  0x9f   : > { %1143 = vst.msk [vmem:[%s1375_s15 + $0x64] sm:$0xf] %vm1117_vm6, %v1110_v0  ;;  %v550_v13 = vrot.slane %v548_v5, 4  ;;  %v882_v53 = vshrl.u32 %v165_v59, 16  ;;  %v542_v15 = vrot.slane %v541_v6, 4  ;;  %v556_v16 = vrot.slane %v554_v42, 5 }
  0xa0   : > { %v784_v49 = vsel %vm1301_vm4, %v782_v7, %v783_v58  ;;  %v885_v17 = vshll.u32 %v165_v59, 16  ;;  %v891_v20 = vshll.u32 %v166_v8, 16  ;;  %v1229_v21 = vrot.slane %v165_v59, 9  ;;  %v170_v6 = vld [vmem:[%s1275_s11 + $0xd4] sm:$0x1] }
  0xa1   : > { %v551_v18 = vor.u32 %v550_v13, %v546_v56  ;;  %v884_v61 = vrot.slane %v882_v53, 4  ;;  %v547_v23 = vsel %vm1309_vm5, %v542_v15, %v546_v56  ;;  %v944_v28 = vrot.slane %v166_v8, 5 }
  0xa2   : > { %v887_v2 = vrot.slane %v885_v17, 5  ;;  %v895_v26 = vshrl.u32 %v166_v8, 16  ;;  %v620_v29 = vmax.bf16 %v547_v23, %v1735_v25  ;;  %v935_v19 = vmax.bf16 %v877_v51, %v547_v23 }
  0xa3   : > { %v1067_v31 = vmax.bf16 %v1009_v57, %v547_v23  ;;  %v552_v11 = vrot.slane %v551_v18, 4  ;;  %v893_v34 = vrot.slane %v891_v20, 5  ;;  %v945_v60 = vsel %vm1301_vm4, %v1229_v21, %v944_v28 }
  0xa4   : > { %v888_v33 = vor.u32 %v887_v2, %v884_v61  ;;  %v897_v63 = vrot.slane %v895_v26, 4  ;;  %v847_v10 = vmax.bf16 %v781_v40, %v620_v29  ;;  %v979_v9 = vmax.bf16 %v935_v19, %v781_v40 }
  0xa5   : > { %v1111_v1 = vmax.bf16 %v1067_v31, %v781_v40  ;;  %v557_v36 = vsel %vm1309_vm5, %v552_v11, %v556_v16  ;;  %v901_v45 = vshll.u32 %v167_v24, 16  ;;  %v946_v44 = vrot.slane %v944_v28, 4  ;;  %v169_v40 = vld [vmem:[%s1275_s11 + $0xd0] sm:$0xf] }
  0xa6   : > { %v621_v25 = vmax.bf16 %v557_v36, %v1746_v37  ;;  %v936_v38 = vmax.bf16 %v878_v12, %v557_v36  ;;  %v1068_v39 = vmax.bf16 %v1010_v14, %v557_v36  ;;  %v889_v55 = vrot.slane %v888_v33, 4 }
  0xa7   : > { %1144 = vst.msk [vmem:[%s1375_s15 + $0x68] sm:$0xf] %vm1117_vm6, %v1111_v1  ;;  %v879_v35 = vmax.bf16 %v847_v10, %v165_v59  ;;  %v1011_v43 = vmax.bf16 %v979_v9, %v165_v59  ;;  %v898_v32 = vor.u32 %v897_v63, %v893_v34  ;;  %v903_v52 = vrot.slane %v901_v45, 5 }
  0xa8   : > { %v848_v46 = vmax.bf16 %v784_v49, %v621_v25  ;;  %v980_v4 = vmax.bf16 %v936_v38, %v784_v49  ;;  %v1112_v47 = vmax.bf16 %v1068_v39, %v784_v49  ;;  %v894_v48 = vsel %vm1309_vm5, %v889_v55, %v893_v34 }
  0xa9   : > { %v937_v51 = vmax.bf16 %v894_v48, %v879_v35  ;;  %v1069_v37 = vmax.bf16 %v1011_v43, %v894_v48  ;;  %v899_v41 = vrot.slane %v898_v32, 4  ;;  %v947_v3 = vrot.slane %v167_v24, 5 }
  0xaa   : > { %1145 = vst.msk [vmem:[%s1375_s15 + $0x6c] sm:$0xf] %vm1117_vm6, %v1112_v47  ;;  %v880_v54 = vmax.bf16 %v848_v46, %v166_v8  ;;  %v1012_v56 = vmax.bf16 %v980_v4, %v166_v8  ;;  %v1016_v30 = vshrl.u32 %v168_v50, 16  ;;  %v1019_v5 = vshll.u32 %v168_v50, 16 }
  0xab   : > { %v1113_v57 = vmax.bf16 %v1069_v37, %v945_v60  ;;  %v904_v59 = vsel %vm1309_vm5, %v899_v41, %v903_v52  ;;  %v981_v42 = vmax.bf16 %v945_v60, %v937_v51  ;;  %v948_v7 = vsel %vm1301_vm4, %v946_v44, %v947_v3 }
  0xac   : > { %v938_v62 = vmax.bf16 %v904_v59, %v880_v54  ;;  %v1070_v0 = vmax.bf16 %v1012_v56, %v904_v59  ;;  %v1018_v58 = vrot.slane %v1016_v30, 4  ;;  %v1025_v12 = vshll.u32 %v169_v40, 16 }
  0xad   : > { %1146 = vst.msk [vmem:[%s1375_s15 + $0x70] sm:$0xf] %vm1117_vm6, %v1113_v57  ;;  %v1021_v13 = vrot.slane %v1019_v5, 5  ;;  %v1078_v53 = vrot.slane %v169_v40, 5  ;;  %v1029_v15 = vshrl.u32 %v169_v40, 16  ;;  %v1035_v16 = vshll.u32 %v170_v6, 16 }
  0xae   : > { %v1114_v8 = vmax.bf16 %v1070_v0, %v948_v7  ;;  %v1027_v14 = vrot.slane %v1025_v12, 5  ;;  %v982_v49 = vmax.bf16 %v948_v7, %v938_v62  ;;  %v1230_v18 = vrot.slane %v168_v50, 9 }
  0xaf   : > { %v1022_v17 = vor.u32 %v1021_v13, %v1018_v58  ;;  %v1013_v61 = vmax.bf16 %v981_v42, %v168_v50  ;;  %v1031_v20 = vrot.slane %v1029_v15, 4  ;;  %v1037_v2 = vrot.slane %v1035_v16, 5 }
  0xb0   : > { %1147 = vst.msk [vmem:[%s1375_s15 + $0x74] sm:$0xf] %vm1117_vm6, %v1114_v8  ;;  %v1080_v28 = vrot.slane %v1078_v53, 4  ;;  %v1081_v26 = vrot.slane %v170_v6, 5  ;;  %v1079_v19 = vsel %vm1301_vm4, %v1230_v18, %v1078_v53  ;;  %v1014_v31 = vmax.bf16 %v982_v49, %v169_v40 }
  0xb1   : > { %v1023_v21 = vrot.slane %v1022_v17, 4  ;;  %v1032_v23 = vor.u32 %v1031_v20, %v1027_v14 }
  0xb2   : > { %v1082_v24 = vsel %vm1301_vm4, %v1080_v28, %v1081_v26 }
  0xb3   : > { %v1028_v29 = vsel %vm1309_vm5, %v1023_v21, %v1027_v14  ;;  %v1033_v33 = vrot.slane %v1032_v23, 4 }
  0xb4   : > { %v1071_v11 = vmax.bf16 %v1028_v29, %v1013_v61 }
  0xb5   : > { %v1038_v60 = vsel %vm1309_vm5, %v1033_v33, %v1037_v2 }
  0xb6   : > { %v1115_v34 = vmax.bf16 %v1079_v19, %v1071_v11  ;;  %v1072_v63 = vmax.bf16 %v1038_v60, %v1014_v31 }
  0xb8   : > { %1148 = vst.msk [vmem:[%s1375_s15 + $0x78] sm:$0xf] %vm1117_vm6, %v1115_v34  ;;  %v1116_v10 = vmax.bf16 %v1082_v24, %v1072_v63 }
  0xba   : > { %1149 = vst.msk [vmem:[%s1375_s15 + $0x7c] sm:$0xf] %vm1117_vm6, %v1116_v10 }
  0xbb PF: > { %s11_s6 = sadd.s32 1, %s1249_s6  }
  0xbc   : > { %p8_p4 = scmp.ge.s32.totalorder %s11_s6, 4  }
  0xbe   :  { %10 = sbr.rel (!%p8_p4) target bundleno = 1 (0x1), region = 54 }

// kernel: _lambda_.10
= control target key start
LH: loop header
LB: loop body
LE: loop exit
PB: predicated region body
PF: predicated region fallthrough
CT: control target
= control target key end

     0   :  { %s1211_s12 = smov 0   ;;  %s1385_s0 = inlined_call_operand.vmem [shape: bf16[128,576], index: 0, kind: input, shape index: {}]   ;;  %s1386_s1 = inlined_call_operand.vmem [shape: bf16[576,64], index: 1, kind: input, shape index: {}]   ;;  %s1387_s2 = inlined_call_operand.vmem [shape: f32[1,64], index: 2, kind: input, shape index: {}]   ;;  %s1388_s3 = inlined_call_operand.vmem [shape: bf16[128,64], index: 3, kind: output, shape index: {}]  }
   0x1 LB: > { %s910_s13 = sadd.s32 4294967295, %s1189_s12   ;;  %p914_p0 = scmp.ge.s32.totalorder %s1189_s12, 1  ;;  %s1189_s12 = sphi %s1211_s12, %s13_s12  }
   0x2   : > { %p139_p1 = scmp.lt.s32.totalorder %s1189_s12, 3 }
   0x4   : > { %p140_p2 = pnand %p914_p0, %p139_p1 }
   0x5   : > { %s915_s19 = sshll.u32 (!%p140_p2), %s910_s13, 3 }
   0x6   : > { %143 = sbr.rel (%p140_p2) target bundleno = 284 (0x11c), region = 32  ;;  %p165_p3 = scmp.lt.s32.totalorder (!%p140_p2), %s915_s19, 15 }
   0xb   : > { %v1119_v0 = vld [vmem:[%s1386_s1 + $0x78] sm:$0xff]   ;;  %v1123_v4 = vld [vmem:[%s1386_s1 + $0x70] sm:$0xff]   ;;  %v1127_v8 = vld [vmem:[%s1386_s1 + $0x68] sm:$0xff]   ;;  %s1390_s19 = smov (!%p165_p3, %s915_s19), 15  ;;  %vm597_vm0 = vcmask 523264   ;;  %vm845_vm1 = vcmask 519168  }
   0xc   : > { %v1120_v1 = vld [vmem:[%s1386_s1 + $0xf8] sm:$0xff]   ;;  %998 = vmatprep.subr.bf16.mxu0 %v1119_v0  ;;  %v1124_v5 = vld [vmem:[%s1386_s1 + $0xf0] sm:$0xff]   ;;  %v1128_v9 = vld [vmem:[%s1386_s1 + $0xe8] sm:$0xff]   ;;  %s1110_s16 = smul.u32 20, %s1390_s19  ;;  %s918_s17 = sshll.u32 %s1390_s19, 2 }
   0xd   : > { %v1121_v2 = vld [vmem:[%s1386_s1 + $0x38] sm:$0xff]   ;;  %1038 = vmatprep.subr.bf16.mxu1 %v1120_v1  ;;  %v1125_v6 = vld [vmem:[%s1386_s1 + $0x30] sm:$0xff]   ;;  %v1129_v10 = vld [vmem:[%s1386_s1 + $0x28] sm:$0xff]   ;;  %s1364_s21 = scalar_lea.vmem %s1388_s3, %s918_s17 }
   0xe   : > { %v1122_v3 = vld [vmem:[%s1386_s1 + $0xb8] sm:$0xff]   ;;  %999 = vmatpush3.bf16.msra.mxu0 %v1121_v2  ;;  %v1126_v7 = vld [vmem:[%s1386_s1 + $0xb0] sm:$0xff]   ;;  %v1130_v11 = vld [vmem:[%s1386_s1 + $0xa8] sm:$0xff]   ;;  %s1317_s13 = scalar_lea.vmem %s1385_s0, %s1110_s16 }
   0xf   : > { %1039 = vmatpush3.bf16.msra.mxu1 %v1122_v3  ;;  %1000 = vmatprep.subr.bf16.mxu0 %v1123_v4  ;;  %v1131_v12 = vld [vmem:[%s1386_s1 + $0x60] sm:$0xff]   ;;  %v1135_v16 = vld [vmem:[%s1386_s1 + $0x58] sm:$0xff]   ;;  %v1139_v20 = vld [vmem:[%s1386_s1 + $0x50] sm:$0xff]  }
  0x10   : > { %1040 = vmatprep.subr.bf16.mxu1 %v1124_v5  ;;  %v1132_v13 = vld [vmem:[%s1386_s1 + $0xe0] sm:$0xff]   ;;  %v1136_v17 = vld [vmem:[%s1386_s1 + $0xd8] sm:$0xff]   ;;  %v1140_v21 = vld [vmem:[%s1386_s1 + $0xd0] sm:$0xff]  }
  0x11   : > { %v1133_v14 = vld [vmem:[%s1386_s1 + $0x20] sm:$0xff]   ;;  %v1137_v18 = vld [vmem:[%s1386_s1 + $0x18] sm:$0xff]   ;;  %v1141_v22 = vld [vmem:[%s1386_s1 + $0x10] sm:$0xff]  }
  0x12   : > { %1001 = vmatpush3.bf16.msra.mxu0 %v1125_v6  ;;  %v1134_v15 = vld [vmem:[%s1386_s1 + $0xa0] sm:$0xff]   ;;  %v1138_v19 = vld [vmem:[%s1386_s1 + $0x98] sm:$0xff]   ;;  %v1142_v23 = vld [vmem:[%s1386_s1 + $0x90] sm:$0xff]  }
  0x13   : > { %1041 = vmatpush3.bf16.msra.mxu1 %v1126_v7  ;;  %1002 = vmatprep.subr.bf16.mxu0 %v1127_v8  ;;  %v1143_v24 = vld [vmem:[%s1386_s1 + $0x48] sm:$0xff]   ;;  %v1147_v28 = vld [vmem:[%s1386_s1 + $0x40] sm:$0xff]   ;;  %v1157_v36 = vld [vmem:[%s1386_s1 + $0x118] sm:$0xff]  }
  0x14   : > { %1042 = vmatprep.subr.bf16.mxu1 %v1128_v9  ;;  %v1144_v25 = vld [vmem:[%s1386_s1 + $0xc8] sm:$0xff]   ;;  %v1148_v29 = vld [vmem:[%s1386_s1 + $0xc0] sm:$0xff]   ;;  %v1164_v39 = vld [vmem:[%s1386_s1 + $0x110] sm:$0xff]  }
  0x15   : > { %v1145_v26 = vld [vmem:[%s1386_s1 + $0x8] sm:$0xff]   ;;  %v1149_v30 = vld [vmem:[%s1386_s1] sm:$0xff]   ;;  %v1167_v43 = vld [vmem:[%s1317_s13 + $0x5c] ss:$20 sps:$4 sm:$0xff]  }
  0x16   : > { %1003 = vmatpush3.bf16.msra.mxu0 %v1129_v10  ;;  %v1146_v27 = vld [vmem:[%s1386_s1 + $0x88] sm:$0xff]   ;;  %v1150_v31 = vld [vmem:[%s1386_s1 + $0x80] sm:$0xff]   ;;  %v1172_v48 = vld [vmem:[%s1317_s13 + $0x7c] ss:$20 sps:$4 sm:$0xff]  }
  0x17   : > { %1043 = vmatpush3.bf16.msra.mxu1 %v1130_v11  ;;  %1004 = vmatprep.subr.bf16.mxu0 %v1131_v12  ;;  %v1151_v32 = vld [vmem:[%s1317_s13] ss:$20 sps:$4 sm:$0xff]   ;;  %v1153_v33 = vld [vmem:[%s1317_s13 + $0x4] ss:$20 sps:$4 sm:$0xff]   ;;  %v1154_v34 = vld [vmem:[%s1317_s13 + $0x8] ss:$20 sps:$4 sm:$0xff]  }
  0x18   : > { %1044 = vmatprep.subr.bf16.mxu1 %v1132_v13  ;;  %v1156_v35 = vld [vmem:[%s1317_s13 + $0xc] ss:$20 sps:$4 sm:$0xff]   ;;  %642 = vmatprep.mubr.bf16.mxu0 %v1153_v33  ;;  %v1160_v38 = vld [vmem:[%s1317_s13 + $0x34] ss:$20 sps:$4 sm:$0xff]   ;;  %v1163_v41 = vld [vmem:[%s1317_s13 + $0x30] ss:$20 sps:$4 sm:$0xff]  }
  0x19   : > { %707 = vmatprep.mubr.bf16.mxu1 %v1156_v35  ;;  %v1158_v37 = vld [vmem:[%s1317_s13 + $0x2c] ss:$20 sps:$4 sm:$0xff]   ;;  %v1162_v40 = vld [vmem:[%s1317_s13 + $0x28] ss:$20 sps:$4 sm:$0xff]   ;;  %v1169_v46 = vld [vmem:[%s1317_s13 + $0x50] ss:$20 sps:$4 sm:$0xff]  }
  0x1a   : > { %1005 = vmatpush3.bf16.msra.mxu0 %v1133_v14  ;;  %v1165_v42 = vld [vmem:[%s1317_s13 + $0x54] ss:$20 sps:$4 sm:$0xff]   ;;  %v1178_v45 = vld [vmem:[%s1386_s1 + $0x100] sm:$0xff]   ;;  %v1170_v47 = vld [vmem:[%s1317_s13 + $0x58] ss:$20 sps:$4 sm:$0xff]  }
  0x1b   : > { %1045 = vmatpush3.bf16.msra.mxu1 %v1134_v15  ;;  %1006 = vmatprep.subr.bf16.mxu0 %v1135_v16  ;;  %v1171_v44 = vld [vmem:[%s1386_s1 + $0x108] sm:$0xff]   ;;  %v1174_v49 = vld [vmem:[%s1317_s13 + $0x84] ss:$20 sps:$4 sm:$0xff]   ;;  %v1177_v51 = vld [vmem:[%s1317_s13 + $0x80] ss:$20 sps:$4 sm:$0xff]  }
  0x1c   : > { %1046 = vmatprep.subr.bf16.mxu1 %v1136_v17  ;;  %v1176_v50 = vld [vmem:[%s1317_s13 + $0x78] ss:$20 sps:$4 sm:$0xff]   ;;  %v1179_v52 = vld [vmem:[%s1317_s13 + $0x10] ss:$20 sps:$4 sm:$0xff]   ;;  %v1180_v53 = vld [vmem:[%s1317_s13 + $0x60] ss:$20 sps:$4 sm:$0xff]  }
  0x1d   : > { %v1181_v54 = vld [vmem:[%s1317_s13 + $0x38] ss:$20 sps:$4 sm:$0xff]   ;;  %v1182_v55 = vld [vmem:[%s1317_s13 + $0x88] ss:$20 sps:$4 sm:$0xff]  }
  0x1e   : > { %1007 = vmatpush3.bf16.msra.mxu0 %v1137_v18 }
  0x1f   : > { %1047 = vmatpush3.bf16.msra.mxu1 %v1138_v19  ;;  %1008 = vmatprep.subr.bf16.mxu0 %v1139_v20  ;;  %v919_v19 = vld [vmem:[%s1387_s2] ss:$0 sm:$0xff] }
  0x20   : > { %1048 = vmatprep.subr.bf16.mxu1 %v1140_v21 }
  0x22   : > { %1009 = vmatpush3.bf16.msra.mxu0 %v1141_v22 }
  0x23   : > { %1049 = vmatpush3.bf16.msra.mxu1 %v1142_v23  ;;  %1010 = vmatprep.subr.bf16.mxu0 %v1143_v24 }
  0x24   : > { %1050 = vmatprep.subr.bf16.mxu1 %v1144_v25 }
  0x26   : > { %1011 = vmatpush3.bf16.msra.mxu0 %v1145_v26 }
  0x27   : > { %1051 = vmatpush3.bf16.msra.mxu1 %v1146_v27  ;;  %1012 = vmatprep.subr.bf16.mxu0 %v1147_v28 }
  0x28   : > { %1052 = vmatprep.subr.bf16.mxu1 %v1148_v29 }
  0x2a   : > { %1013 = vmatpush3.bf16.msra.mxu0 %v1149_v30 }
  0x2b   : > { %1053 = vmatpush3.bf16.msra.mxu1 %v1150_v31  ;;  %1086 = vmatprep.subr.bf16.mxu0 %v1157_v36 }
  0x2c   : > { %1102 = vmatprep.subr.bf16.mxu1 %v1157_v36 }
  0x2d   : > { %643 = vmatmul.mubr.bf16.vlgmr.msra.gmra.mxu0 %v1151_v32 }
  0x2e   : > { %708 = vmatmul.mubr.bf16.vlgmr.msra.gmra.mxu1 %v1154_v34  ;;  %1087 = vmatpush3.bf16.msra.mxu0 %v1157_v36 }
  0x2f   : > { %1106 = vmatpush3.bf16.msra.mxu1 %v1157_v36  ;;  %650 = vmatprep.mubr.bf16.mxu0 %v1158_v37 }
  0x30   : > { %715 = vmatprep.mubr.bf16.mxu1 %v1160_v38  ;;  %1088 = vmatprep.subr.bf16.mxu0 %v1164_v39 }
  0x31   : > { %1103 = vmatprep.subr.bf16.mxu1 %v1164_v39 }
  0x32   : > { %1089 = vmatpush3.bf16.msra.mxu0 %v1164_v39 }
  0x33   : > { %1107 = vmatpush3.bf16.msra.mxu1 %v1164_v39  ;;  %1090 = vmatprep.subr.bf16.mxu0 %v1171_v44 }
  0x34   : > { %1104 = vmatprep.subr.bf16.mxu1 %v1171_v44 }
  0x35   : > { %651 = vmatmul.mubr.bf16.gmra.mxu0 %v1162_v40 }
  0x36   : > { %716 = vmatmul.mubr.bf16.gmra.mxu1 %v1163_v41  ;;  %658 = vmatprep.mubr.bf16.mxu0 %v1165_v42 }
  0x37   : > { %723 = vmatprep.mubr.bf16.mxu1 %v1167_v43  ;;  %1091 = vmatpush3.bf16.msra.mxu0 %v1171_v44 }
  0x38   : > { %1108 = vmatpush3.bf16.msra.mxu1 %v1171_v44  ;;  %1092 = vmatprep.subr.bf16.mxu0 %v1178_v45 }
  0x39   : > { %1105 = vmatprep.subr.bf16.mxu1 %v1178_v45 }
  0x3b   : > { %1093 = vmatpush3.bf16.msra.mxu0 %v1178_v45 }
  0x3c   : > { %1109 = vmatpush3.bf16.msra.mxu1 %v1178_v45 }
  0x3d   : > { %659 = vmatmul.mubr.bf16.gmra.mxu0 %v1169_v46 }
  0x3e   : > { %724 = vmatmul.mubr.bf16.gmra.mxu1 %v1170_v47  ;;  %666 = vmatprep.mubr.bf16.mxu0 %v1172_v48 }
  0x3f   : > { %731 = vmatprep.mubr.bf16.mxu1 %v1174_v49 }
  0x45   : > { %667 = vmatmul.mubr.bf16.gmra.mxu0 %v1176_v50 }
  0x46   : > { %732 = vmatmul.mubr.bf16.gmra.mxu1 %v1177_v51  ;;  %1094 = vmatprep.mubr.msk.bf16.mxu0 %vm597_vm0, %v1179_v52 }
  0x47   : > { %1098 = vmatprep.mubr.msk.bf16.mxu1 %vm597_vm0, %v1180_v53 }
  0x4d   : > { %1095 = vmatmul.mubr.msk.bf16.vlgmr.msra.gmra.mxu0 %vm597_vm0, %v1181_v54 }
  0x4e   : > { %1099 = vmatmul.mubr.msk.bf16.vlgmr.msra.gmra.mxu1 %vm597_vm0, %v1182_v55 }
  0xed   : > { %v1014_v56 = vpop.f32.mrf.mxu0 }
  0xee   : > { %v1054_v57 = vpop.f32.mrf.mxu1 }
  0xef   : > { %v1015_v58 = vpop.f32.mrf.mxu0 }
  0xf0   : > { %v1055_v59 = vpop.f32.mrf.mxu1  ;;  %v1016_v17 = vadd.f32 %v1015_v58, %v1014_v56 }
  0xf1   : > { %v1017_v60 = vpop.f32.mrf.mxu0  ;;  %v1056_v34 = vadd.f32 %v1055_v59, %v1054_v57 }
  0xf2   : > { %v1057_v61 = vpop.f32.mrf.mxu1  ;;  %v645_v27 = vadd.f32 %v1016_v17, %v919_v19 }
  0xf3   : > { %v1018_v62 = vpop.f32.mrf.mxu0 }
  0xf4   : > { %v1058_v63 = vpop.f32.mrf.mxu1  ;;  %v1019_v28 = vadd.f32 %v1018_v62, %v1017_v60  ;;  %v710_v46 = vadd.f32 %v1056_v34, %v645_v27 }
  0xf5   : > { %v1020_v0 = vpop.f32.mrf.mxu0  ;;  %v1059_v52 = vadd.f32 %v1058_v63, %v1057_v61 }
  0xf6   : > { %v1060_v1 = vpop.f32.mrf.mxu1  ;;  %v648_v43 = vadd.f32 %v1019_v28, %v919_v19 }
  0xf7   : > { %v1021_v2 = vpop.f32.mrf.mxu0 }
  0xf8   : > { %v1061_v3 = vpop.f32.mrf.mxu1  ;;  %v1022_v15 = vadd.f32 %v1021_v2, %v1020_v0 }
  0xf9   : > { %v1023_v4 = vpop.f32.mrf.mxu0  ;;  %v1062_v30 = vadd.f32 %v1061_v3, %v1060_v1 }
  0xfa   : > { %v1063_v5 = vpop.f32.mrf.mxu1  ;;  %v653_v23 = vadd.f32 %v1022_v15, %v919_v19 }
  0xfb   : > { %v1024_v6 = vpop.f32.mrf.mxu0 }
  0xfc   : > { %v1064_v7 = vpop.f32.mrf.mxu1  ;;  %v1025_v24 = vadd.f32 %v1024_v6, %v1023_v4  ;;  %v718_v41 = vadd.f32 %v1062_v30, %v653_v23  ;;  %v713_v6 = vadd.f32 %v1059_v52, %v648_v43 }
  0xfd   : > { %v1026_v8 = vpop.f32.mrf.mxu0  ;;  %v1065_v47 = vadd.f32 %v1064_v7, %v1063_v5 }
  0xfe   : > { %v1066_v9 = vpop.f32.mrf.mxu1  ;;  %v656_v38 = vadd.f32 %v1025_v24, %v919_v19 }
  0xff   : > { %v1027_v10 = vpop.f32.mrf.mxu0 }
 0x100   : > { %v1067_v11 = vpop.f32.mrf.mxu1  ;;  %v1028_v21 = vadd.f32 %v1027_v10, %v1026_v8  ;;  %v721_v60 = vadd.f32 %v1065_v47, %v656_v38 }
 0x101   : > { %v1029_v12 = vpop.f32.mrf.mxu0  ;;  %v1068_v44 = vadd.f32 %v1067_v11, %v1066_v9 }
 0x102   : > { %v1069_v13 = vpop.f32.mrf.mxu1  ;;  %v661_v35 = vadd.f32 %v1028_v21, %v919_v19 }
 0x103   : > { %v1030_v14 = vpop.f32.mrf.mxu0 }
 0x104   : > { %v1070_v16 = vpop.f32.mrf.mxu1  ;;  %v1031_v36 = vadd.f32 %v1030_v14, %v1029_v12  ;;  %v726_v56 = vadd.f32 %v1068_v44, %v661_v35 }
 0x105   : > { %v1032_v18 = vpop.f32.mrf.mxu0  ;;  %v1071_v0 = vadd.f32 %v1070_v16, %v1069_v13 }
 0x106   : > { %v1072_v20 = vpop.f32.mrf.mxu1  ;;  %v664_v53 = vadd.f32 %v1031_v36, %v919_v19 }
 0x107   : > { %v1033_v22 = vpop.f32.mrf.mxu0 }
 0x108   : > { %v1034_v25 = vadd.f32 %v1033_v22, %v1032_v18  ;;  %v1073_v26 = vpop.f32.mrf.mxu1  ;;  %v729_v11 = vadd.f32 %v1071_v0, %v664_v53 }
 0x109   : > { %v1035_v29 = vpop.f32.mrf.mxu0  ;;  %v1074_v32 = vadd.f32 %v1073_v26, %v1072_v20 }
 0x10a   : > { %v669_v31 = vadd.f32 %v1034_v25, %v919_v19  ;;  %v1075_v33 = vpop.f32.mrf.mxu1 }
 0x10b   : > { %v1036_v37 = vpop.f32.mrf.mxu0 }
 0x10c   : > { %v1037_v39 = vadd.f32 %v1036_v37, %v1035_v29  ;;  %v1076_v40 = vpop.f32.mrf.mxu1  ;;  %v734_v42 = vadd.f32 %v1074_v32, %v669_v31 }
 0x10d   : > { %v1096_v45 = vpop.f32.mrf.mxu0  ;;  %v1077_v49 = vadd.f32 %v1076_v40, %v1075_v33 }
 0x10e   : > { %v672_v48 = vadd.f32 %v1037_v39, %v919_v19  ;;  %v783_v50 = vadd.f32 %v1096_v45, %v718_v41  ;;  %v1100_v51 = vpop.f32.mrf.mxu1 }
 0x10f   : > { %v799_v54 = vadd.f32 %v1100_v51, %v734_v42  ;;  %v774_v55 = vpop.f32.mrf.mxu0 }
 0x110   : > { %v807_v57 = vmax.f32 %v783_v50, 0.0  ;;  %v775_v58 = vadd.f32 %v774_v55, %v710_v46  ;;  %v790_v59 = vpop.f32.mrf.mxu1  ;;  %v737_v62 = vadd.f32 %v1077_v49, %v672_v48 }
 0x111   : > { %v811_v1 = vmax.f32 %v799_v54, 0.0  ;;  %v791_v2 = vadd.f32 %v790_v59, %v726_v56  ;;  %v1097_v61 = vpop.f32.mrf.mxu0 }
 0x112   : > { %v992_v63 = vpack.c.bf16 %v807_v57, %v807_v57  ;;  %v805_v3 = vmax.f32 %v775_v58, 0.0  ;;  %v786_v4 = vadd.f32 %v1097_v61, %v721_v60  ;;  %v1101_v5 = vpop.f32.mrf.mxu1 }
 0x113   : > { %v996_v7 = vpack.c.bf16 %v811_v1, %v811_v1  ;;  %v809_v8 = vmax.f32 %v791_v2, 0.0  ;;  %v802_v9 = vadd.f32 %v1101_v5, %v737_v62  ;;  %v777_v10 = vpop.f32.mrf.mxu0 }
 0x114   : > { %848 = vst.msk [vmem:[%s1364_s21 + $0x8] sm:$0xf] %vm845_vm1, %v992_v63  ;;  %v990_v12 = vpack.c.bf16 %v805_v3, %v805_v3  ;;  %v808_v13 = vmax.f32 %v786_v4, 0.0  ;;  %v778_v14 = vadd.f32 %v777_v10, %v713_v6  ;;  %v793_v15 = vpop.f32.mrf.mxu1 }
 0x115   : > { %852 = vst.msk [vmem:[%s1364_s21 + $0x18] sm:$0xf] %vm845_vm1, %v996_v7  ;;  %v994_v16 = vpack.c.bf16 %v809_v8, %v809_v8  ;;  %v812_v17 = vmax.f32 %v802_v9, 0.0  ;;  %v794_v18 = vadd.f32 %v793_v15, %v729_v11 }
 0x116   : > { %846 = vst.msk [vmem:[%s1364_s21] sm:$0xf] %vm845_vm1, %v990_v12  ;;  %v993_v19 = vpack.c.bf16 %v808_v13, %v808_v13  ;;  %v806_v20 = vmax.f32 %v778_v14, 0.0 }
 0x117   : > { %850 = vst.msk [vmem:[%s1364_s21 + $0x10] sm:$0xf] %vm845_vm1, %v994_v16  ;;  %v997_v21 = vpack.c.bf16 %v812_v17, %v812_v17  ;;  %v810_v22 = vmax.f32 %v794_v18, 0.0 }
 0x118   : > { %849 = vst.msk [vmem:[%s1364_s21 + $0xc] sm:$0xf] %vm845_vm1, %v993_v19  ;;  %v991_v23 = vpack.c.bf16 %v806_v20, %v806_v20 }
 0x119   : > { %853 = vst.msk [vmem:[%s1364_s21 + $0x1c] sm:$0xf] %vm845_vm1, %v997_v21  ;;  %v995_v24 = vpack.c.bf16 %v810_v22, %v810_v22 }
 0x11a   : > { %847 = vst.msk [vmem:[%s1364_s21 + $0x4] sm:$0xf] %vm845_vm1, %v991_v23 }
 0x11b   : > { %851 = vst.msk [vmem:[%s1364_s21 + $0x14] sm:$0xf] %vm845_vm1, %v995_v24 }
 0x11c PF: > { %s13_s12 = sadd.s32 1, %s1189_s12  }
 0x11d   : > { %p10_p4 = scmp.ge.s32.totalorder %s13_s12, 4  }
 0x11f   :  { %12 = sbr.rel (!%p10_p4) target bundleno = 1 (0x1), region = 62 }

// kernel: _lambda_.11
= control target key start
LH: loop header
LB: loop body
LE: loop exit
PB: predicated region body
PF: predicated region fallthrough
CT: control target
= control target key end

     0   :  { %s1322_s15 = smov 0   ;;  %s1525_s0 = inlined_call_operand.vmem [shape: bf16[128,576], index: 0, kind: input, shape index: {}]   ;;  %s1526_s1 = inlined_call_operand.vmem [shape: bf16[576,64], index: 1, kind: input, shape index: {}]   ;;  %s1527_s2 = inlined_call_operand.vmem [shape: f32[1,64], index: 2, kind: input, shape index: {}]   ;;  %s1528_s3 = inlined_call_operand.vmem [shape: bf16[128,64], index: 3, kind: input, shape index: {}]   ;;  %s1529_s4 = inlined_call_operand.vmem [shape: bf16[128,64], index: 4, kind: output, shape index: {}]  }
   0x1 LB: > { %s995_s16 = sadd.s32 4294967295, %s1295_s15   ;;  %p999_p0 = scmp.ge.s32.totalorder %s1295_s15, 1  ;;  %s1295_s15 = sphi %s1322_s15, %s14_s15  }
   0x2   : > { %p175_p1 = scmp.lt.s32.totalorder %s1295_s15, 3 }
   0x4   : > { %p176_p2 = pnand %p999_p0, %p175_p1 }
   0x5   : > { %s1000_s23 = sshll.u32 (!%p176_p2), %s995_s16, 3 }
   0x6   : > { %179 = sbr.rel (%p176_p2) target bundleno = 286 (0x11e), region = 36  ;;  %p208_p3 = scmp.lt.s32.totalorder (!%p176_p2), %s1000_s23, 15 }
   0xb   : > { %v1225_v0 = vld [vmem:[%s1526_s1 + $0x78] sm:$0xff]   ;;  %v1229_v4 = vld [vmem:[%s1526_s1 + $0x70] sm:$0xff]   ;;  %v1233_v8 = vld [vmem:[%s1526_s1 + $0x68] sm:$0xff]   ;;  %s1531_s23 = smov (!%p208_p3, %s1000_s23), 15  ;;  %vm646_vm0 = vcmask 523264   ;;  %vm918_vm1 = vcmask 519168  }
   0xc   : > { %v1226_v1 = vld [vmem:[%s1526_s1 + $0xf8] sm:$0xff]   ;;  %1104 = vmatprep.subr.bf16.mxu0 %v1225_v0  ;;  %v1230_v5 = vld [vmem:[%s1526_s1 + $0xf0] sm:$0xff]   ;;  %v1234_v9 = vld [vmem:[%s1526_s1 + $0xe8] sm:$0xff]   ;;  %s1216_s21 = smul.u32 20, %s1531_s23 }
   0xd   : > { %v1227_v2 = vld [vmem:[%s1526_s1 + $0x38] sm:$0xff]   ;;  %1144 = vmatprep.subr.bf16.mxu1 %v1226_v1  ;;  %v1231_v6 = vld [vmem:[%s1526_s1 + $0x30] sm:$0xff]   ;;  %v1235_v10 = vld [vmem:[%s1526_s1 + $0x28] sm:$0xff]  }
   0xe   : > { %v1228_v3 = vld [vmem:[%s1526_s1 + $0xb8] sm:$0xff]   ;;  %1105 = vmatpush3.bf16.msra.mxu0 %v1227_v2  ;;  %v1232_v7 = vld [vmem:[%s1526_s1 + $0xb0] sm:$0xff]   ;;  %v1236_v11 = vld [vmem:[%s1526_s1 + $0xa8] sm:$0xff]   ;;  %s1428_s6 = scalar_lea.vmem %s1525_s0, %s1216_s21  ;;  %s1003_s21 = sshll.u32 %s1531_s23, 2 }
   0xf   : > { %1145 = vmatpush3.bf16.msra.mxu1 %v1228_v3  ;;  %1106 = vmatprep.subr.bf16.mxu0 %v1229_v4  ;;  %v1237_v12 = vld [vmem:[%s1526_s1 + $0x60] sm:$0xff]   ;;  %v1241_v16 = vld [vmem:[%s1526_s1 + $0x58] sm:$0xff]   ;;  %v1245_v20 = vld [vmem:[%s1526_s1 + $0x50] sm:$0xff]   ;;  %s218_s25 = scalar_lea.vmem %s1528_s3, %s1003_s21  ;;  %s1504_s30 = scalar_lea.vmem %s1529_s4, %s1003_s21 }
  0x10   : > { %1146 = vmatprep.subr.bf16.mxu1 %v1230_v5  ;;  %v1238_v13 = vld [vmem:[%s1526_s1 + $0xe0] sm:$0xff]   ;;  %v1242_v17 = vld [vmem:[%s1526_s1 + $0xd8] sm:$0xff]   ;;  %v1246_v21 = vld [vmem:[%s1526_s1 + $0xd0] sm:$0xff]  }
  0x11   : > { %v1239_v14 = vld [vmem:[%s1526_s1 + $0x20] sm:$0xff]   ;;  %v1243_v18 = vld [vmem:[%s1526_s1 + $0x18] sm:$0xff]   ;;  %v1247_v22 = vld [vmem:[%s1526_s1 + $0x10] sm:$0xff]  }
  0x12   : > { %1107 = vmatpush3.bf16.msra.mxu0 %v1231_v6  ;;  %v1240_v15 = vld [vmem:[%s1526_s1 + $0xa0] sm:$0xff]   ;;  %v1244_v19 = vld [vmem:[%s1526_s1 + $0x98] sm:$0xff]   ;;  %v1248_v23 = vld [vmem:[%s1526_s1 + $0x90] sm:$0xff]  }
  0x13   : > { %1147 = vmatpush3.bf16.msra.mxu1 %v1232_v7  ;;  %1108 = vmatprep.subr.bf16.mxu0 %v1233_v8  ;;  %v1249_v24 = vld [vmem:[%s1526_s1 + $0x48] sm:$0xff]   ;;  %v1253_v28 = vld [vmem:[%s1526_s1 + $0x40] sm:$0xff]   ;;  %v1263_v36 = vld [vmem:[%s1526_s1 + $0x118] sm:$0xff]  }
  0x14   : > { %1148 = vmatprep.subr.bf16.mxu1 %v1234_v9  ;;  %v1250_v25 = vld [vmem:[%s1526_s1 + $0xc8] sm:$0xff]   ;;  %v1254_v29 = vld [vmem:[%s1526_s1 + $0xc0] sm:$0xff]   ;;  %v1270_v39 = vld [vmem:[%s1526_s1 + $0x110] sm:$0xff]  }
  0x15   : > { %v1251_v26 = vld [vmem:[%s1526_s1 + $0x8] sm:$0xff]   ;;  %v1255_v30 = vld [vmem:[%s1526_s1] sm:$0xff]   ;;  %v1273_v43 = vld [vmem:[%s1428_s6 + $0x5c] ss:$20 sps:$4 sm:$0xff]  }
  0x16   : > { %1109 = vmatpush3.bf16.msra.mxu0 %v1235_v10  ;;  %v1252_v27 = vld [vmem:[%s1526_s1 + $0x88] sm:$0xff]   ;;  %v1256_v31 = vld [vmem:[%s1526_s1 + $0x80] sm:$0xff]   ;;  %v1278_v48 = vld [vmem:[%s1428_s6 + $0x7c] ss:$20 sps:$4 sm:$0xff]  }
  0x17   : > { %1149 = vmatpush3.bf16.msra.mxu1 %v1236_v11  ;;  %1110 = vmatprep.subr.bf16.mxu0 %v1237_v12  ;;  %v1257_v32 = vld [vmem:[%s1428_s6] ss:$20 sps:$4 sm:$0xff]   ;;  %v1259_v33 = vld [vmem:[%s1428_s6 + $0x4] ss:$20 sps:$4 sm:$0xff]   ;;  %v1260_v34 = vld [vmem:[%s1428_s6 + $0x8] ss:$20 sps:$4 sm:$0xff]  }
  0x18   : > { %1150 = vmatprep.subr.bf16.mxu1 %v1238_v13  ;;  %v1262_v35 = vld [vmem:[%s1428_s6 + $0xc] ss:$20 sps:$4 sm:$0xff]   ;;  %691 = vmatprep.mubr.bf16.mxu0 %v1259_v33  ;;  %v1266_v38 = vld [vmem:[%s1428_s6 + $0x34] ss:$20 sps:$4 sm:$0xff]   ;;  %v1269_v41 = vld [vmem:[%s1428_s6 + $0x30] ss:$20 sps:$4 sm:$0xff]  }
  0x19   : > { %756 = vmatprep.mubr.bf16.mxu1 %v1262_v35  ;;  %v1264_v37 = vld [vmem:[%s1428_s6 + $0x2c] ss:$20 sps:$4 sm:$0xff]   ;;  %v1268_v40 = vld [vmem:[%s1428_s6 + $0x28] ss:$20 sps:$4 sm:$0xff]   ;;  %v1275_v46 = vld [vmem:[%s1428_s6 + $0x50] ss:$20 sps:$4 sm:$0xff]  }
  0x1a   : > { %1111 = vmatpush3.bf16.msra.mxu0 %v1239_v14  ;;  %v1271_v42 = vld [vmem:[%s1428_s6 + $0x54] ss:$20 sps:$4 sm:$0xff]   ;;  %v1284_v45 = vld [vmem:[%s1526_s1 + $0x100] sm:$0xff]   ;;  %v1276_v47 = vld [vmem:[%s1428_s6 + $0x58] ss:$20 sps:$4 sm:$0xff]  }
  0x1b   : > { %1151 = vmatpush3.bf16.msra.mxu1 %v1240_v15  ;;  %1112 = vmatprep.subr.bf16.mxu0 %v1241_v16  ;;  %v1277_v44 = vld [vmem:[%s1526_s1 + $0x108] sm:$0xff]   ;;  %v1280_v49 = vld [vmem:[%s1428_s6 + $0x84] ss:$20 sps:$4 sm:$0xff]   ;;  %v1283_v51 = vld [vmem:[%s1428_s6 + $0x80] ss:$20 sps:$4 sm:$0xff]  }
  0x1c   : > { %1152 = vmatprep.subr.bf16.mxu1 %v1242_v17  ;;  %v1282_v50 = vld [vmem:[%s1428_s6 + $0x78] ss:$20 sps:$4 sm:$0xff]   ;;  %v1285_v52 = vld [vmem:[%s1428_s6 + $0x10] ss:$20 sps:$4 sm:$0xff]   ;;  %v1286_v53 = vld [vmem:[%s1428_s6 + $0x60] ss:$20 sps:$4 sm:$0xff]  }
  0x1d   : > { %v1287_v54 = vld [vmem:[%s1428_s6 + $0x38] ss:$20 sps:$4 sm:$0xff]   ;;  %v1288_v55 = vld [vmem:[%s1428_s6 + $0x88] ss:$20 sps:$4 sm:$0xff]  }
  0x1e   : > { %1113 = vmatpush3.bf16.msra.mxu0 %v1243_v18  ;;  %v1478_v17 = vld [vmem:[%s218_s25 + $0x8] sm:$0xff]   ;;  %v1480_v18 = vld [vmem:[%s218_s25 + $0x18] sm:$0xff]  }
  0x1f   : > { %1153 = vmatpush3.bf16.msra.mxu1 %v1244_v19  ;;  %1114 = vmatprep.subr.bf16.mxu0 %v1245_v20 }
  0x20   : > { %1154 = vmatprep.subr.bf16.mxu1 %v1246_v21  ;;  %v1482_v21 = vld [vmem:[%s218_s25] sm:$0xff]  }
  0x21   : > { %v1087_v33 = vunpack.c.l.bf16 %v1482_v21 }
  0x22   : > { %1115 = vmatpush3.bf16.msra.mxu0 %v1247_v22  ;;  %v1006_v22 = vld [vmem:[%s1527_s2] ss:$0 sm:$0xff] }
  0x23   : > { %1155 = vmatpush3.bf16.msra.mxu1 %v1248_v23  ;;  %1116 = vmatprep.subr.bf16.mxu0 %v1249_v24  ;;  %v1487_v24 = vld [vmem:[%s218_s25 + $0x10] sm:$0xff]  }
  0x24   : > { %1156 = vmatprep.subr.bf16.mxu1 %v1250_v25 }
  0x26   : > { %1117 = vmatpush3.bf16.msra.mxu0 %v1251_v26 }
  0x27   : > { %1157 = vmatpush3.bf16.msra.mxu1 %v1252_v27  ;;  %1118 = vmatprep.subr.bf16.mxu0 %v1253_v28  ;;  %v1091_v27 = vunpack.c.l.bf16 %v1478_v17  ;;  %v1099_v28 = vunpack.c.l.bf16 %v1480_v18 }
  0x28   : > { %1158 = vmatprep.subr.bf16.mxu1 %v1254_v29 }
  0x2a   : > { %1119 = vmatpush3.bf16.msra.mxu0 %v1255_v30 }
  0x2b   : > { %1159 = vmatpush3.bf16.msra.mxu1 %v1256_v31  ;;  %1192 = vmatprep.subr.bf16.mxu0 %v1263_v36 }
  0x2c   : > { %1208 = vmatprep.subr.bf16.mxu1 %v1263_v36 }
  0x2d   : > { %692 = vmatmul.mubr.bf16.vlgmr.msra.gmra.mxu0 %v1257_v32 }
  0x2e   : > { %757 = vmatmul.mubr.bf16.vlgmr.msra.gmra.mxu1 %v1260_v34  ;;  %1193 = vmatpush3.bf16.msra.mxu0 %v1263_v36 }
  0x2f   : > { %1212 = vmatpush3.bf16.msra.mxu1 %v1263_v36  ;;  %699 = vmatprep.mubr.bf16.mxu0 %v1264_v37  ;;  %v1095_v37 = vunpack.c.l.bf16 %v1487_v24 }
  0x30   : > { %764 = vmatprep.mubr.bf16.mxu1 %v1266_v38  ;;  %1194 = vmatprep.subr.bf16.mxu0 %v1270_v39  ;;  %v1092_v38 = vunpack.c.h.bf16 %v1478_v17  ;;  %v1096_v17 = vunpack.c.h.bf16 %v1487_v24 }
  0x31   : > { %1209 = vmatprep.subr.bf16.mxu1 %v1270_v39 }
  0x32   : > { %1195 = vmatpush3.bf16.msra.mxu0 %v1270_v39 }
  0x33   : > { %1213 = vmatpush3.bf16.msra.mxu1 %v1270_v39  ;;  %1196 = vmatprep.subr.bf16.mxu0 %v1277_v44 }
  0x34   : > { %1210 = vmatprep.subr.bf16.mxu1 %v1277_v44 }
  0x35   : > { %700 = vmatmul.mubr.bf16.gmra.mxu0 %v1268_v40 }
  0x36   : > { %765 = vmatmul.mubr.bf16.gmra.mxu1 %v1269_v41  ;;  %707 = vmatprep.mubr.bf16.mxu0 %v1271_v42 }
  0x37   : > { %772 = vmatprep.mubr.bf16.mxu1 %v1273_v43  ;;  %1197 = vmatpush3.bf16.msra.mxu0 %v1277_v44  ;;  %v1100_v43 = vunpack.c.h.bf16 %v1480_v18 }
  0x38   : > { %1214 = vmatpush3.bf16.msra.mxu1 %v1277_v44  ;;  %1198 = vmatprep.subr.bf16.mxu0 %v1284_v45 }
  0x39   : > { %1211 = vmatprep.subr.bf16.mxu1 %v1284_v45 }
  0x3b   : > { %1199 = vmatpush3.bf16.msra.mxu0 %v1284_v45 }
  0x3c   : > { %1215 = vmatpush3.bf16.msra.mxu1 %v1284_v45 }
  0x3d   : > { %708 = vmatmul.mubr.bf16.gmra.mxu0 %v1275_v46 }
  0x3e   : > { %773 = vmatmul.mubr.bf16.gmra.mxu1 %v1276_v47  ;;  %715 = vmatprep.mubr.bf16.mxu0 %v1278_v48 }
  0x3f   : > { %780 = vmatprep.mubr.bf16.mxu1 %v1280_v49 }
  0x45   : > { %716 = vmatmul.mubr.bf16.gmra.mxu0 %v1282_v50 }
  0x46   : > { %781 = vmatmul.mubr.bf16.gmra.mxu1 %v1283_v51  ;;  %1200 = vmatprep.mubr.msk.bf16.mxu0 %vm646_vm0, %v1285_v52 }
  0x47   : > { %1204 = vmatprep.mubr.msk.bf16.mxu1 %vm646_vm0, %v1286_v53 }
  0x4d   : > { %1201 = vmatmul.mubr.msk.bf16.vlgmr.msra.gmra.mxu0 %vm646_vm0, %v1287_v54 }
  0x4e   : > { %1205 = vmatmul.mubr.msk.bf16.vlgmr.msra.gmra.mxu1 %vm646_vm0, %v1288_v55 }
  0xed   : > { %v1120_v56 = vpop.f32.mrf.mxu0 }
  0xee   : > { %v1160_v57 = vpop.f32.mrf.mxu1 }
  0xef   : > { %v1121_v58 = vpop.f32.mrf.mxu0 }
  0xf0   : > { %v1161_v59 = vpop.f32.mrf.mxu1  ;;  %v1122_v19 = vadd.f32 %v1121_v58, %v1120_v56  ;;  %v1088_v58 = vunpack.c.h.bf16 %v1482_v21 }
  0xf1   : > { %v1123_v60 = vpop.f32.mrf.mxu0  ;;  %v1162_v44 = vadd.f32 %v1161_v59, %v1160_v57 }
  0xf2   : > { %v1468_v61 = vpop.f32.mrf.mxu1  ;;  %v694_v34 = vadd.f32 %v1122_v19, %v1006_v22 }
  0xf3   : > { %v1124_v62 = vpop.f32.mrf.mxu0 }
  0xf4   : > { %v1470_v63 = vpop.f32.mrf.mxu1  ;;  %v1125_v35 = vadd.f32 %v1124_v62, %v1123_v60  ;;  %v759_v56 = vadd.f32 %v1162_v44, %v694_v34 }
  0xf5   : > { %v1126_v0 = vpop.f32.mrf.mxu0  ;;  %v1165_v59 = vadd.f32 %v1470_v63, %v1468_v61 }
  0xf6   : > { %v1166_v1 = vpop.f32.mrf.mxu1  ;;  %v697_v53 = vadd.f32 %v1125_v35, %v1006_v22 }
  0xf7   : > { %v1127_v2 = vpop.f32.mrf.mxu0 }
  0xf8   : > { %v1167_v3 = vpop.f32.mrf.mxu1  ;;  %v1128_v15 = vadd.f32 %v1127_v2, %v1126_v0  ;;  %v762_v63 = vadd.f32 %v1165_v59, %v697_v53 }
  0xf9   : > { %v1129_v4 = vpop.f32.mrf.mxu0  ;;  %v1168_v39 = vadd.f32 %v1167_v3, %v1166_v1 }
  0xfa   : > { %v1169_v5 = vpop.f32.mrf.mxu1  ;;  %v702_v29 = vadd.f32 %v1128_v15, %v1006_v22 }
  0xfb   : > { %v1130_v6 = vpop.f32.mrf.mxu0 }
  0xfc   : > { %v1170_v7 = vpop.f32.mrf.mxu1  ;;  %v1131_v30 = vadd.f32 %v1130_v6, %v1129_v4  ;;  %v767_v51 = vadd.f32 %v1168_v39, %v702_v29 }
  0xfd   : > { %v1132_v8 = vpop.f32.mrf.mxu0  ;;  %v1171_v60 = vadd.f32 %v1170_v7, %v1169_v5 }
  0xfe   : > { %v1172_v9 = vpop.f32.mrf.mxu1  ;;  %v705_v48 = vadd.f32 %v1131_v30, %v1006_v22 }
  0xff   : > { %v1133_v10 = vpop.f32.mrf.mxu0 }
 0x100   : > { %v1173_v11 = vpop.f32.mrf.mxu1  ;;  %v1134_v25 = vadd.f32 %v1133_v10, %v1132_v8 }
 0x101   : > { %v1135_v12 = vpop.f32.mrf.mxu0  ;;  %v1174_v54 = vadd.f32 %v1173_v11, %v1172_v9  ;;  %v770_v11 = vadd.f32 %v1171_v60, %v705_v48 }
 0x102   : > { %v1175_v13 = vpop.f32.mrf.mxu1  ;;  %v710_v45 = vadd.f32 %v1134_v25, %v1006_v22 }
 0x103   : > { %v1136_v14 = vpop.f32.mrf.mxu0 }
 0x104   : > { %v1176_v16 = vpop.f32.mrf.mxu1  ;;  %v1137_v46 = vadd.f32 %v1136_v14, %v1135_v12  ;;  %v775_v6 = vadd.f32 %v1174_v54, %v710_v45 }
 0x105   : > { %v1138_v20 = vpop.f32.mrf.mxu0  ;;  %v1177_v14 = vadd.f32 %v1176_v16, %v1175_v13 }
 0x106   : > { %v1178_v23 = vpop.f32.mrf.mxu1  ;;  %v713_v2 = vadd.f32 %v1137_v46, %v1006_v22 }
 0x107   : > { %v1139_v26 = vpop.f32.mrf.mxu0 }
 0x108   : > { %v1140_v31 = vadd.f32 %v1139_v26, %v1138_v20  ;;  %v1179_v32 = vpop.f32.mrf.mxu1 }
 0x109   : > { %v1141_v36 = vpop.f32.mrf.mxu0  ;;  %v1180_v41 = vadd.f32 %v1179_v32, %v1178_v23  ;;  %v778_v23 = vadd.f32 %v1177_v14, %v713_v2 }
 0x10a   : > { %v718_v40 = vadd.f32 %v1140_v31, %v1006_v22  ;;  %v1181_v42 = vpop.f32.mrf.mxu1 }
 0x10b   : > { %v1142_v47 = vpop.f32.mrf.mxu0 }
 0x10c   : > { %v1143_v49 = vadd.f32 %v1142_v47, %v1141_v36  ;;  %v1182_v50 = vpop.f32.mrf.mxu1  ;;  %v783_v52 = vadd.f32 %v1180_v41, %v718_v40 }
 0x10d   : > { %v1202_v55 = vpop.f32.mrf.mxu0  ;;  %v1183_v0 = vadd.f32 %v1182_v50, %v1181_v42 }
 0x10e   : > { %v721_v62 = vadd.f32 %v1143_v49, %v1006_v22  ;;  %v832_v1 = vadd.f32 %v1202_v55, %v767_v51  ;;  %v1206_v57 = vpop.f32.mrf.mxu1 }
 0x10f   : > { %v848_v3 = vadd.f32 %v1206_v57, %v783_v52  ;;  %v823_v4 = vpop.f32.mrf.mxu0 }
 0x110   : > { %v872_v8 = vadd.f32 %v1091_v27, %v832_v1  ;;  %v824_v10 = vadd.f32 %v823_v4, %v759_v56  ;;  %v839_v9 = vpop.f32.mrf.mxu1  ;;  %v786_v12 = vadd.f32 %v1183_v0, %v721_v62 }
 0x111   : > { %v876_v15 = vadd.f32 %v1099_v28, %v848_v3  ;;  %v840_v5 = vadd.f32 %v839_v9, %v775_v6  ;;  %v1203_v7 = vpop.f32.mrf.mxu0 }
 0x112   : > { %v880_v18 = vmax.f32 %v872_v8, 0.0  ;;  %v870_v19 = vadd.f32 %v1087_v33, %v824_v10  ;;  %v835_v20 = vadd.f32 %v1203_v7, %v770_v11  ;;  %v1207_v61 = vpop.f32.mrf.mxu1 }
 0x113   : > { %v884_v21 = vmax.f32 %v876_v15, 0.0  ;;  %v874_v22 = vadd.f32 %v1095_v37, %v840_v5  ;;  %v851_v13 = vadd.f32 %v1207_v61, %v786_v12  ;;  %v826_v16 = vpop.f32.mrf.mxu0 }
 0x114   : > { %v1079_v25 = vpack.c.bf16 %v880_v18, %v880_v18  ;;  %v878_v24 = vmax.f32 %v870_v19, 0.0  ;;  %v873_v26 = vadd.f32 %v1092_v38, %v835_v20  ;;  %v827_v27 = vadd.f32 %v826_v16, %v762_v63  ;;  %v842_v28 = vpop.f32.mrf.mxu1 }
 0x115   : > { %v1083_v29 = vpack.c.bf16 %v884_v21, %v884_v21  ;;  %v882_v30 = vmax.f32 %v874_v22, 0.0  ;;  %v877_v31 = vadd.f32 %v1100_v43, %v851_v13  ;;  %v843_v32 = vadd.f32 %v842_v28, %v778_v23 }
 0x116   : > { %921 = vst.msk [vmem:[%s1504_s30 + $0x8] sm:$0xf] %vm918_vm1, %v1079_v25  ;;  %v1077_v33 = vpack.c.bf16 %v878_v24, %v878_v24  ;;  %v881_v34 = vmax.f32 %v873_v26, 0.0  ;;  %v871_v35 = vadd.f32 %v1088_v58, %v827_v27 }
 0x117   : > { %925 = vst.msk [vmem:[%s1504_s30 + $0x18] sm:$0xf] %vm918_vm1, %v1083_v29  ;;  %v1081_v36 = vpack.c.bf16 %v882_v30, %v882_v30  ;;  %v885_v37 = vmax.f32 %v877_v31, 0.0  ;;  %v875_v38 = vadd.f32 %v1096_v17, %v843_v32 }
 0x118   : > { %919 = vst.msk [vmem:[%s1504_s30] sm:$0xf] %vm918_vm1, %v1077_v33  ;;  %v1080_v39 = vpack.c.bf16 %v881_v34, %v881_v34  ;;  %v879_v40 = vmax.f32 %v871_v35, 0.0 }
 0x119   : > { %923 = vst.msk [vmem:[%s1504_s30 + $0x10] sm:$0xf] %vm918_vm1, %v1081_v36  ;;  %v1084_v41 = vpack.c.bf16 %v885_v37, %v885_v37  ;;  %v883_v42 = vmax.f32 %v875_v38, 0.0 }
 0x11a   : > { %922 = vst.msk [vmem:[%s1504_s30 + $0xc] sm:$0xf] %vm918_vm1, %v1080_v39  ;;  %v1078_v43 = vpack.c.bf16 %v879_v40, %v879_v40 }
 0x11b   : > { %926 = vst.msk [vmem:[%s1504_s30 + $0x1c] sm:$0xf] %vm918_vm1, %v1084_v41  ;;  %v1082_v44 = vpack.c.bf16 %v883_v42, %v883_v42 }
 0x11c   : > { %920 = vst.msk [vmem:[%s1504_s30 + $0x4] sm:$0xf] %vm918_vm1, %v1078_v43 }
 0x11d   : > { %924 = vst.msk [vmem:[%s1504_s30 + $0x14] sm:$0xf] %vm918_vm1, %v1082_v44 }
 0x11e PF: > { %s14_s15 = sadd.s32 1, %s1295_s15  }
 0x11f   : > { %p11_p4 = scmp.ge.s32.totalorder %s14_s15, 4  }
 0x121   :  { %13 = sbr.rel (!%p11_p4) target bundleno = 1 (0x1), region = 69 }

// kernel: _lambda_.12
= control target key start
LH: loop header
LB: loop body
LE: loop exit
PB: predicated region body
PF: predicated region fallthrough
CT: control target
= control target key end

     0   :  { %s907_s12 = smov 0   ;;  %s1048_s0 = inlined_call_operand.vmem [shape: bf16[32,576], index: 0, kind: input, shape index: {}]   ;;  %s1049_s1 = inlined_call_operand.vmem [shape: bf16[576,128], index: 1, kind: input, shape index: {}]   ;;  %s1050_s2 = inlined_call_operand.vmem [shape: f32[1,128], index: 2, kind: input, shape index: {}]   ;;  %s1051_s3 = inlined_call_operand.vmem [shape: bf16[32,128], index: 3, kind: output, shape index: {}]  }
   0x1 LB: > { %s699_s13 = sadd.s32 4294967295, %s883_s12   ;;  %p703_p0 = scmp.ge.s32.totalorder %s883_s12, 1  ;;  %s883_s12 = sphi %s907_s12, %s13_s12  }
   0x2   : > { %p139_p1 = scmp.lt.s32.totalorder %s883_s12, 3 }
   0x4   : > { %p140_p2 = pnand %p703_p0, %p139_p1 }
   0x5   : > { %s704_s17 = sshll.u32 (!%p140_p2), %s699_s13, 1 }
   0x6   : > { %143 = sbr.rel (%p140_p2) target bundleno = 264 (0x108), region = 32  ;;  %p165_p3 = scmp.lt.s32.totalorder (!%p140_p2), %s704_s17, 3 }
   0xb   : > { %v834_v0 = vld [vmem:[%s1049_s1 + $0x78] sm:$0xff]   ;;  %v838_v4 = vld [vmem:[%s1049_s1 + $0x70] sm:$0xff]   ;;  %v842_v8 = vld [vmem:[%s1049_s1 + $0x68] sm:$0xff]   ;;  %s1053_s17 = smov (!%p165_p3, %s704_s17), 3  ;;  %v885_v33 = vmov 0.0   ;;  %vm886_vm0 = vmmov 0  }
   0xc   : > { %v835_v1 = vld [vmem:[%s1049_s1 + $0x38] sm:$0xff]   ;;  %762 = vmatprep.subr.bf16.mxu0 %v834_v0  ;;  %v839_v5 = vld [vmem:[%s1049_s1 + $0x30] sm:$0xff]   ;;  %v843_v9 = vld [vmem:[%s1049_s1 + $0x28] sm:$0xff]   ;;  %s823_s14 = smul.u32 20, %s1053_s17  ;;  %vm504_vm1 = vcmask 523264   ;;  %s707_s18 = sshll.u32 %s1053_s17, 2 }
   0xd   : > { %v836_v2 = vld [vmem:[%s1049_s1 + $0xf8] sm:$0xff]   ;;  %763 = vmatpush3.bf16.msra.mxu0 %v835_v1  ;;  %v840_v6 = vld [vmem:[%s1049_s1 + $0xf0] sm:$0xff]   ;;  %v844_v10 = vld [vmem:[%s1049_s1 + $0xe8] sm:$0xff]   ;;  %s175_s21 = scalar_lea.vmem %s1051_s3, %s707_s18 }
   0xe   : > { %v837_v3 = vld [vmem:[%s1049_s1 + $0xb8] sm:$0xff]   ;;  %784 = vmatprep.subr.bf16.mxu1 %v836_v2  ;;  %764 = vmatprep.subr.bf16.mxu0 %v838_v4  ;;  %v841_v7 = vld [vmem:[%s1049_s1 + $0xb0] sm:$0xff]   ;;  %v845_v11 = vld [vmem:[%s1049_s1 + $0xa8] sm:$0xff]   ;;  %s1010_s13 = scalar_lea.vmem %s1048_s0, %s823_s14 }
   0xf   : > { %785 = vmatpush3.bf16.msra.mxu1 %v837_v3  ;;  %v846_v12 = vld [vmem:[%s1049_s1 + $0x60] sm:$0xff]   ;;  %v850_v16 = vld [vmem:[%s1049_s1 + $0x58] sm:$0xff]   ;;  %v854_v20 = vld [vmem:[%s1049_s1 + $0x50] sm:$0xff]  }
  0x10   : > { %786 = vmatprep.subr.bf16.mxu1 %v840_v6  ;;  %v847_v13 = vld [vmem:[%s1049_s1 + $0x20] sm:$0xff]   ;;  %v851_v17 = vld [vmem:[%s1049_s1 + $0x18] sm:$0xff]   ;;  %v855_v21 = vld [vmem:[%s1049_s1 + $0x10] sm:$0xff]  }
  0x11   : > { %765 = vmatpush3.bf16.msra.mxu0 %v839_v5  ;;  %v848_v14 = vld [vmem:[%s1049_s1 + $0xe0] sm:$0xff]   ;;  %v852_v18 = vld [vmem:[%s1049_s1 + $0xd8] sm:$0xff]   ;;  %v856_v22 = vld [vmem:[%s1049_s1 + $0xd0] sm:$0xff]  }
  0x12   : > { %766 = vmatprep.subr.bf16.mxu0 %v842_v8  ;;  %v849_v15 = vld [vmem:[%s1049_s1 + $0xa0] sm:$0xff]   ;;  %v853_v19 = vld [vmem:[%s1049_s1 + $0x98] sm:$0xff]   ;;  %v857_v23 = vld [vmem:[%s1049_s1 + $0x90] sm:$0xff]  }
  0x13   : > { %787 = vmatpush3.bf16.msra.mxu1 %v841_v7  ;;  %v858_v24 = vld [vmem:[%s1049_s1 + $0x48] sm:$0xff]   ;;  %v862_v28 = vld [vmem:[%s1049_s1 + $0x40] sm:$0xff]   ;;  %v872_v37 = vld [vmem:[%s1049_s1 + $0x118] sm:$0xff]  }
  0x14   : > { %788 = vmatprep.subr.bf16.mxu1 %v844_v10  ;;  %v859_v25 = vld [vmem:[%s1049_s1 + $0x8] sm:$0xff]   ;;  %v863_v29 = vld [vmem:[%s1049_s1] sm:$0xff]   ;;  %v873_v38 = vld [vmem:[%s1049_s1 + $0x110] sm:$0xff]  }
  0x15   : > { %767 = vmatpush3.bf16.msra.mxu0 %v843_v9  ;;  %v860_v26 = vld [vmem:[%s1049_s1 + $0xc8] sm:$0xff]   ;;  %v864_v30 = vld [vmem:[%s1049_s1 + $0xc0] sm:$0xff]  }
  0x16   : > { %768 = vmatprep.subr.bf16.mxu0 %v846_v12  ;;  %v861_v27 = vld [vmem:[%s1049_s1 + $0x88] sm:$0xff]   ;;  %v865_v31 = vld [vmem:[%s1010_s13] ss:$20 sps:$4 sm:$0xff]   ;;  %v867_v32 = vld [vmem:[%s1010_s13 + $0x4] ss:$20 sps:$4 sm:$0xff]  }
  0x17   : > { %789 = vmatpush3.bf16.msra.mxu1 %v845_v11  ;;  %v868_v34 = vld [vmem:[%s1049_s1 + $0x80] sm:$0xff]   ;;  %540 = vmatprep.mubr.bf16.mxu0 %v867_v32  ;;  %v869_v35 = vld [vmem:[%s1010_s13 + $0x8] ss:$20 sps:$4 sm:$0xff]  }
  0x18   : > { %790 = vmatprep.subr.bf16.mxu1 %v848_v14  ;;  %v871_v36 = vld [vmem:[%s1010_s13 + $0xc] ss:$20 sps:$4 sm:$0xff]   ;;  %v876_v41 = vld [vmem:[%s1010_s13 + $0x10] ss:$20 sps:$4 sm:$0xff]  }
  0x19   : > { %769 = vmatpush3.bf16.msra.mxu0 %v847_v13  ;;  %581 = vmatprep.mubr.bf16.mxu1 %v871_v36  ;;  %v874_v39 = vld [vmem:[%s1049_s1 + $0x108] sm:$0xff]   ;;  %v875_v40 = vld [vmem:[%s1049_s1 + $0x100] sm:$0xff]  }
  0x1a   : > { %770 = vmatprep.subr.bf16.mxu0 %v850_v16  ;;  %v708_v50 = vld [vmem:[%s1050_s2] ss:$0 sm:$0xff] }
  0x1b   : > { %791 = vmatpush3.bf16.msra.mxu1 %v849_v15 }
  0x1c   : > { %792 = vmatprep.subr.bf16.mxu1 %v852_v18 }
  0x1d   : > { %771 = vmatpush3.bf16.msra.mxu0 %v851_v17 }
  0x1e   : > { %772 = vmatprep.subr.bf16.mxu0 %v854_v20 }
  0x1f   : > { %793 = vmatpush3.bf16.msra.mxu1 %v853_v19 }
  0x20   : > { %794 = vmatprep.subr.bf16.mxu1 %v856_v22 }
  0x21   : > { %773 = vmatpush3.bf16.msra.mxu0 %v855_v21 }
  0x22   : > { %774 = vmatprep.subr.bf16.mxu0 %v858_v24 }
  0x23   : > { %795 = vmatpush3.bf16.msra.mxu1 %v857_v23 }
  0x24   : > { %796 = vmatprep.subr.bf16.mxu1 %v860_v26 }
  0x25   : > { %775 = vmatpush3.bf16.msra.mxu0 %v859_v25 }
  0x26   : > { %776 = vmatprep.subr.bf16.mxu0 %v862_v28 }
  0x27   : > { %797 = vmatpush3.bf16.msra.mxu1 %v861_v27 }
  0x28   : > { %798 = vmatprep.subr.bf16.mxu1 %v864_v30 }
  0x29   : > { %777 = vmatpush3.bf16.msra.mxu0 %v863_v29 }
  0x2a   : > { %811 = vmatprep.subr.bf16.mxu0 %v885_v33 }
  0x2b   : > { %799 = vmatpush3.bf16.msra.mxu1 %v868_v34 }
  0x2c   : > { %541 = vmatmul.mubr.bf16.vlgmr.msra.gmra.mxu0 %v865_v31 }
  0x2d   : > { %819 = vmatprep.mubr.msk.bf16.mxu0 %vm886_vm0, %v885_v33  ;;  %812 = vmatpush3.bf16.msra.mxu0 %v872_v37 }
  0x2e   : > { %582 = vmatmul.mubr.bf16.vlgmr.msra.gmra.mxu1 %v869_v35  ;;  %813 = vmatprep.subr.bf16.mxu0 %v885_v33 }
  0x31   : > { %814 = vmatpush3.bf16.msra.mxu0 %v873_v38 }
  0x32   : > { %815 = vmatprep.subr.bf16.mxu0 %v885_v33 }
  0x35   : > { %816 = vmatpush3.bf16.msra.mxu0 %v874_v39 }
  0x36   : > { %817 = vmatprep.subr.bf16.mxu0 %v885_v33 }
  0x39   : > { %818 = vmatpush3.bf16.msra.mxu0 %v875_v40 }
  0x3c   : > { %820 = vmatmul.mubr.msk.bf16.vlgmr.msra.gmra.mxu0 %vm504_vm1, %v876_v41 }
  0xec   : > { %v778_v42 = vpop.f32.mrf.mxu0 }
  0xee   : > { %v779_v43 = vpop.f32.mrf.mxu0  ;;  %v800_v44 = vpop.f32.mrf.mxu1 }
  0xef   : > { %v780_v49 = vadd.f32 %v779_v43, %v778_v42 }
  0xf0   : > { %v781_v45 = vpop.f32.mrf.mxu0  ;;  %v801_v46 = vpop.f32.mrf.mxu1 }
  0xf1   : > { %v543_v53 = vadd.f32 %v780_v49, %v708_v50  ;;  %v802_v54 = vadd.f32 %v801_v46, %v800_v44 }
  0xf2   : > { %v782_v47 = vpop.f32.mrf.mxu0  ;;  %v803_v48 = vpop.f32.mrf.mxu1 }
  0xf3   : > { %v783_v51 = vadd.f32 %v782_v47, %v781_v45  ;;  %v584_v58 = vadd.f32 %v802_v54, %v543_v53 }
  0xf4   : > { %v804_v52 = vpop.f32.mrf.mxu1 }
  0xf5   : > { %v546_v55 = vadd.f32 %v783_v51, %v708_v50  ;;  %v805_v56 = vadd.f32 %v804_v52, %v803_v48 }
  0xf7   : > { %v587_v61 = vadd.f32 %v805_v56, %v546_v55 }
  0xfc   : > { %v624_v57 = vpop.f32.mrf.mxu0 }
  0xfd   : > { %v625_v60 = vadd.f32 %v624_v57, %v584_v58 }
  0xfe   : > { %v821_v59 = vpop.f32.mrf.mxu0 }
  0xff   : > { %v631_v1 = vmax.f32 %v625_v60, 0.0 }
 0x100   : > { %v627_v62 = vpop.f32.mrf.mxu0 }
 0x101   : > { %v628_v63 = vadd.f32 %v627_v62, %v587_v61 }
 0x102   : > { %v822_v0 = vpop.f32.mrf.mxu0 }
 0x103   : > { %v632_v2 = vmax.f32 %v628_v63, 0.0 }
 0x105   : > { %v760_v3 = vpack.c.bf16 %v632_v2, %v631_v1 }
 0x107   : > { %761 = vst [vmem:[%s175_s21] sm:$0xff] %v760_v3  }
 0x108 PF: > { %s13_s12 = sadd.s32 1, %s883_s12  }
 0x109   : > { %p10_p4 = scmp.ge.s32.totalorder %s13_s12, 4  }
 0x10b   :  { %12 = sbr.rel (!%p10_p4) target bundleno = 1 (0x1), region = 62 }

// kernel: _lambda_.15
= control target key start
LH: loop header
LB: loop body
LE: loop exit
PB: predicated region body
PF: predicated region fallthrough
CT: control target
= control target key end

     0   :  { %v303_v2 = vmov 0   ;;  %s386_s0 = inlined_call_operand.vmem [shape: bf16[2,16,128], index: 0, kind: input, shape index: {}]   ;;  %s387_s1 = inlined_call_operand.vmem [shape: bf16[128,200], index: 1, kind: input, shape index: {}]   ;;  %s388_s2 = inlined_call_operand.vmem [shape: f32[1,200], index: 2, kind: input, shape index: {}]   ;;  %s389_s3 = inlined_call_operand.hbm [shape: f32[2,200], index: 3, kind: output, shape index: {}]  }
   0x1   :  { %v257_v0 = vld [vmem:[%s387_s1 + $0x74] ss:$8 sps:$4 sm:$0xff]   ;;  %v259_v1 = vld [vmem:[%s387_s1 + $0x70] ss:$8 sps:$4 sm:$0xff]   ;;  %191 = vmatprep.mubr.bf16.mxu0 %v303_v2  ;;  %v260_v3 = vld [vmem:[%s387_s1 + $0x64] ss:$8 sps:$4 sm:$0xff]  }
   0x2   :  { %159 = vmatprep.subr.bf16.mxu0 %v257_v0  ;;  %v262_v4 = vld [vmem:[%s387_s1 + $0x60] ss:$8 sps:$4 sm:$0xff]   ;;  %v263_v5 = vld [vmem:[%s387_s1 + $0x54] ss:$8 sps:$4 sm:$0xff]   ;;  %v265_v6 = vld [vmem:[%s387_s1 + $0x50] ss:$8 sps:$4 sm:$0xff]  }
   0x3   :  { %160 = vmatpush1.bf16.msra.mxu0 %v259_v1  ;;  %v266_v7 = vld [vmem:[%s387_s1 + $0x44] ss:$8 sps:$4 sm:$0xff]   ;;  %v268_v9 = vld [vmem:[%s387_s1 + $0x40] ss:$8 sps:$4 sm:$0xff]  }
   0x4   :  { %161 = vmatprep.subr.bf16.mxu0 %v260_v3  ;;  %v246_v8 = vld [vmem:[%s386_s0] sm:$0xff]   ;;  %v253_v12 = vld [vmem:[%s386_s0 + $0x8] sm:$0xff]  }
   0x5   :  { %v247_v10 = vunpack.c.l.bf16 %v246_v8  ;;  %v248_v11 = vunpack.c.h.bf16 %v246_v8 }
   0x7   :  { %162 = vmatpush1.bf16.msra.mxu0 %v262_v4 }
   0x8   :  { %163 = vmatprep.subr.bf16.mxu0 %v263_v5 }
   0xb   :  { %164 = vmatpush1.bf16.msra.mxu0 %v265_v6 }
   0xc   :  { %8 = vsyncpa [#allocation3], 0  ;;  %165 = vmatprep.subr.bf16.mxu0 %v266_v7  ;;  %v269_v13 = vld [vmem:[%s387_s1 + $0x34] ss:$8 sps:$4 sm:$0xff]   ;;  %v251_v14 = vunpack.c.l.bf16 %v253_v12  ;;  %v252_v15 = vunpack.c.h.bf16 %v253_v12  ;;  %v24_v16 = vadd.f32 %v248_v11, %v247_v10  ;;  %v271_v18 = vld [vmem:[%s387_s1 + $0x30] ss:$8 sps:$4 sm:$0xff]   ;;  %v61_v45 = vlaneseq }
   0xd   :  { %v272_v20 = vld [vmem:[%s387_s1 + $0x24] ss:$8 sps:$4 sm:$0xff]   ;;  %v274_v24 = vld [vmem:[%s387_s1 + $0x20] ss:$8 sps:$4 sm:$0xff]   ;;  %v275_v26 = vld [vmem:[%s387_s1 + $0x14] ss:$8 sps:$4 sm:$0xff]  }
   0xe   :  { %v31_v17 = vadd.f32 %v252_v15, %v251_v14  ;;  %v25_v19 = vrot.slane %v24_v16, 4  ;;  %v277_v30 = vld [vmem:[%s387_s1 + $0x10] ss:$8 sps:$4 sm:$0xff]   ;;  %v278_v32 = vld [vmem:[%s387_s1 + $0x4] ss:$8 sps:$4 sm:$0xff]   ;;  %vm75_vm0 = vcmask 1041409  }
   0xf   :  { %166 = vmatpush1.bf16.msra.mxu0 %v268_v9  ;;  %v280_v36 = vld [vmem:[%s387_s1] ss:$8 sps:$4 sm:$0xff]   ;;  %v62_v46 = vshrl.u32 %v61_v45, 7  ;;  %v304_v47 = vmov 1983009808   ;;  %vm211_vm1 = vcmask 1041408  }
  0x10   :  { %167 = vmatprep.subr.bf16.mxu0 %v269_v13  ;;  %v32_v21 = vrot.slane %v31_v17, 4  ;;  %v26_v22 = vadd.f32 %v25_v19, %v24_v16  ;;  %v204_v48 = vunpack.c.l.s4 %v304_v47  ;;  %v59_v51 = vld [vmem:[%s388_s2] sm:$0x3]  ;;  %vm212_vm2 = vcmask 584706   ;;  %s305_s21 = smov [#allocation2]  }
  0x11   :  { %v63_v49 = vsub.s32 0, %v62_v46  ;;  %v67_v50 = vsub.s32 1, %v62_v46  ;;  %s221_s22 = sshll.u32 %s305_s21, 4  ;;  %vm213_vm3 = vmor %vm212_vm2, %vm211_vm1  ;;  %s222_s22 = int_to_ptr.vmem [resolvable:$true] %s221_s22 }
  0x12   :  { %v33_v23 = vadd.f32 %v32_v21, %v31_v17  ;;  %v27_v25 = vrot.slane %v26_v22, 2  ;;  %v205_v52 = vunpack.c.0.s8 %v204_v48  ;;  %s281_s2 = scalar_lea.vmem %s222_s22, 64  ;;  %p286_p1 = scmp.lt.s32.totalorder %s222_s22, %s222_s22 }
  0x13   :  { %168 = vmatpush1.bf16.msra.mxu0 %v271_v18  ;;  %v64_v53 = vrot.slane %v59_v51, %v63_v49  ;;  %v68_v54 = vrot.slane %v59_v51, %v67_v50  ;;  %p282_p0 = scmp.ne.s32.totalorder %s222_s22, %s281_s2  ;;  %p287_p2 = scmp.lt.s32.totalorder %s281_s2, %s281_s2 }
  0x14   :  { %169 = vmatprep.subr.bf16.mxu0 %v272_v20  ;;  %v34_v27 = vrot.slane %v33_v23, 2  ;;  %v28_v28 = vadd.f32 %v27_v25, %v26_v22  ;;  %v208_v57 = vsub.s32 %v205_v52, %v62_v46 }
  0x15   :  { %p288_p3 = por %p287_p2, %p286_p1 }
  0x16   :  { %v35_v29 = vadd.f32 %v34_v27, %v33_v23  ;;  %v29_v31 = vrot.slane %v28_v28, 1 }
  0x17   :  { %170 = vmatpush1.bf16.msra.mxu0 %v274_v24  ;;  %p289_p4 = pnand %p288_p3, %p282_p0 }
  0x18   :  { %171 = vmatprep.subr.bf16.mxu0 %v275_v26  ;;  %v36_v33 = vrot.slane %v35_v29, 1  ;;  %v30_v34 = vadd.f32 %v29_v31, %v28_v28 }
  0x1a   :  { %v37_v35 = vadd.f32 %v36_v33, %v35_v29  ;;  %v39_v37 = vmul.f32 0.0625, %v30_v34 }
  0x1b   :  { %172 = vmatpush1.bf16.msra.mxu0 %v277_v30 }
  0x1c   :  { %173 = vmatprep.subr.bf16.mxu0 %v278_v32  ;;  %v40_v38 = vmul.f32 0.0625, %v37_v35  ;;  %v41_v39 = vpack.c.bf16 %v39_v37, %v39_v37 }
  0x1e   :  { %v42_v40 = vpack.c.bf16 %v40_v38, %v40_v38  ;;  %v73_v41 = vunpack.c.l.b16 %v41_v39 }
  0x1f   :  { %174 = vmatpush1.bf16.msra.mxu0 %v280_v36 }
  0x20   :  { %v74_v42 = vunpack.c.l.b16 %v42_v40 }
  0x22   :  { %v76_v43 = vsel %vm75_vm0, %v74_v42, %v73_v41 }
  0x23   :  { %v77_v44 = vpack.c.b16 %v76_v43, %v76_v43 }
  0x25   :  { %192 = vmatmul.mubr.bf16.vlgmr.msra.gmra.mxu0 %v77_v44 }
  0xe5   :  { %v193_v55 = vpop.f32.mrf.mxu0 }
  0xe6   :  { %v194_v58 = vadd.f32 %v193_v55, %v64_v53 }
  0xe7   :  { %v195_v56 = vpop.f32.mrf.mxu0 }
  0xe8   :  { %v196_v59 = vadd.f32 %v195_v56, %v68_v54 }
  0xe9   :  { %v197_v60 = vpop.f32.mrf.mxu0 }
  0xea   :  { %v202_v61 = vcombine.low %v194_v58, %v196_v59 }
  0xeb   :  { %v198_v62 = vpop.f32.mrf.mxu0 }
  0xec   :  { %v209_v63 = vrot.slane %v202_v61, %v208_v57 }
  0xee   :  { %214 = vst.msk [vmem:[#allocation2] sm:$0xf] %vm213_vm3, %v209_v63 }
  0xef   :  { %292 = shalt.err (!%p289_p4)
}
  0xf0   :  { %224 = dma.vmem_to_hbm [thread:$0]  %s222_s22, 64, %s389_s3, [#allocation3]  }
  0xf1   :  { %301 = dma.done.wait [#allocation3], 64  }
  0xf2   :  { %302 = vsyncadd [#allocation3], 4294967232 }
  0xf3   :  { %228 = vsyncpa [#allocation3], 1 }

// kernel: _lambda_.13
= control target key start
LH: loop header
LB: loop body
LE: loop exit
PB: predicated region body
PF: predicated region fallthrough
CT: control target
= control target key end

     0   :  { %s421_s12 = smov 0   ;;  %s453_s0 = inlined_call_operand.vmem [shape: bf16[32,64], index: 0, kind: input, shape index: {}]   ;;  %s454_s1 = inlined_call_operand.vmem [shape: bf16[64,128], index: 1, kind: input, shape index: {}]   ;;  %s455_s2 = inlined_call_operand.vmem [shape: f32[1,128], index: 2, kind: input, shape index: {}]   ;;  %s456_s3 = inlined_call_operand.vmem [shape: bf16[32,128], index: 3, kind: output, shape index: {}]  }
   0x1 LB: > { %s332_s13 = sadd.s32 4294967295, %s397_s12   ;;  %p336_p0 = scmp.ge.s32.totalorder %s397_s12, 1  ;;  %s397_s12 = sphi %s421_s12, %s13_s12  }
   0x2   : > { %p138_p1 = scmp.lt.s32.totalorder %s397_s12, 3 }
   0x4   : > { %p139_p2 = pnand %p336_p0, %p138_p1 }
   0x5   : > { %s337_s18 = sshll.u32 (!%p139_p2), %s332_s13, 1 }
   0x6   : > { %142 = sbr.rel (%p139_p2) target bundleno = 230 (0xe6), region = 32  ;;  %p163_p3 = scmp.lt.s32.totalorder (!%p139_p2), %s337_s18, 3 }
   0xb   : > { %v386_v0 = vld [vmem:[%s454_s1 + $0x18] sm:$0xff]   ;;  %v399_v1 = vmov 0.0   ;;  %v387_v2 = vld [vmem:[%s454_s1 + $0x10] sm:$0xff]   ;;  %vm400_vm0 = vmmov 0   ;;  %s458_s18 = smov (!%p163_p3, %s337_s18), 3  ;;  %v388_v3 = vld [vmem:[%s454_s1 + $0x8] sm:$0xff]  }
   0xc   : > { %364 = vmatprep.subr.bf16.mxu0 %v399_v1  ;;  %372 = vmatprep.mubr.msk.bf16.mxu0 %vm400_vm0, %v399_v1  ;;  %s338_s21 = sshll.u32 %s458_s18, 2  ;;  %v389_v4 = vld [vmem:[%s454_s1] sm:$0xff]   ;;  %vm221_vm1 = vcmask 523264  }
   0xd   : > { %365 = vmatpush3.bf16.msra.mxu0 %v386_v0  ;;  %s166_s24 = scalar_lea.vmem %s453_s0, %s338_s21  ;;  %v341_v7 = vld [vmem:[%s455_s2] ss:$0 sm:$0xff]  ;;  %s172_s4 = scalar_lea.vmem %s456_s3, %s338_s21 }
   0xe   : > { %366 = vmatprep.subr.bf16.mxu0 %v399_v1  ;;  %v390_v5 = vld [vmem:[%s166_s24] sm:$0xff]  }
  0x11   : > { %367 = vmatpush3.bf16.msra.mxu0 %v387_v2 }
  0x12   : > { %368 = vmatprep.subr.bf16.mxu0 %v399_v1 }
  0x15   : > { %369 = vmatpush3.bf16.msra.mxu0 %v388_v3 }
  0x16   : > { %370 = vmatprep.subr.bf16.mxu0 %v399_v1 }
  0x19   : > { %371 = vmatpush3.bf16.msra.mxu0 %v389_v4 }
  0x1c   : > { %373 = vmatmul.mubr.msk.bf16.vlgmr.msra.gmra.mxu0 %vm221_vm1, %v390_v5 }
  0xdc   : > { %v259_v6 = vpop.f32.mrf.mxu0 }
  0xdd   : > { %v260_v10 = vadd.f32 %v341_v7, %v259_v6 }
  0xde   : > { %v374_v8 = vpop.f32.mrf.mxu0 }
  0xe0   : > { %v262_v9 = vpop.f32.mrf.mxu0 }
  0xe1   : > { %v263_v11 = vadd.f32 %v341_v7, %v262_v9 }
  0xe2   : > { %v375_v12 = vpop.f32.mrf.mxu0 }
  0xe3   : > { %v357_v13 = vpack.c.bf16 %v263_v11, %v260_v10 }
  0xe5   : > { %358 = vst [vmem:[%s172_s4] sm:$0xff] %v357_v13  }
  0xe6 PF: > { %s13_s12 = sadd.s32 1, %s397_s12  }
  0xe7   : > { %p10_p4 = scmp.ge.s32.totalorder %s13_s12, 4  }
  0xe9   :  { %12 = sbr.rel (!%p10_p4) target bundleno = 1 (0x1), region = 62 }

// kernel: _lambda_.14
= control target key start
LH: loop header
LB: loop body
LE: loop exit
PB: predicated region body
PF: predicated region fallthrough
CT: control target
= control target key end

     0   :  { %s1513_s15 = smov 0   ;;  %s1769_s0 = inlined_call_operand.vmem [shape: bf16[32,1152], index: 0, kind: input, shape index: {}]   ;;  %s1770_s1 = inlined_call_operand.vmem [shape: bf16[1152,128], index: 1, kind: input, shape index: {}]   ;;  %s1771_s2 = inlined_call_operand.vmem [shape: f32[1,128], index: 2, kind: input, shape index: {}]   ;;  %s1772_s3 = inlined_call_operand.vmem [shape: bf16[32,128], index: 3, kind: input, shape index: {}]   ;;  %s1773_s4 = inlined_call_operand.vmem [shape: bf16[32,128], index: 4, kind: output, shape index: {}]  }
   0x1 LB: > { %s1157_s16 = sadd.s32 4294967295, %s1484_s15   ;;  %p1161_p0 = scmp.ge.s32.totalorder %s1484_s15, 1  ;;  %s1484_s15 = sphi %s1513_s15, %s14_s15  }
   0x2   : > { %p175_p1 = scmp.lt.s32.totalorder %s1484_s15, 3 }
   0x4   : > { %p176_p2 = pnand %p1161_p0, %p175_p1 }
   0x5   : > { %s1162_s21 = sshll.u32 (!%p176_p2), %s1157_s16, 1 }
   0x6   : > { %179 = sbr.rel (%p176_p2) target bundleno = 314 (0x13a), region = 36  ;;  %p208_p3 = scmp.lt.s32.totalorder (!%p176_p2), %s1162_s21, 3 }
   0xb   : > { %v1393_v0 = vld [vmem:[%s1770_s1 + $0x78] sm:$0xff]   ;;  %v1397_v4 = vld [vmem:[%s1770_s1 + $0x70] sm:$0xff]   ;;  %v1401_v8 = vld [vmem:[%s1770_s1 + $0x68] sm:$0xff]   ;;  %s1775_s21 = smov (!%p208_p3, %s1162_s21), 3  ;;  %vm1487_vm0 = vmmov 0  }
   0xc   : > { %v1394_v1 = vld [vmem:[%s1770_s1 + $0x38] sm:$0xff]   ;;  %1265 = vmatprep.subr.bf16.mxu0 %v1393_v0  ;;  %v1398_v5 = vld [vmem:[%s1770_s1 + $0x30] sm:$0xff]   ;;  %v1402_v9 = vld [vmem:[%s1770_s1 + $0x28] sm:$0xff]   ;;  %s1382_s19 = smul.u32 36, %s1775_s21 }
   0xd   : > { %v1395_v2 = vld [vmem:[%s1770_s1 + $0xf8] sm:$0xff]   ;;  %1266 = vmatpush3.bf16.msra.mxu0 %v1394_v1  ;;  %v1399_v6 = vld [vmem:[%s1770_s1 + $0xf0] sm:$0xff]   ;;  %v1403_v10 = vld [vmem:[%s1770_s1 + $0xe8] sm:$0xff]  }
   0xe   : > { %v1396_v3 = vld [vmem:[%s1770_s1 + $0xb8] sm:$0xff]   ;;  %1287 = vmatprep.subr.bf16.mxu1 %v1395_v2  ;;  %1267 = vmatprep.subr.bf16.mxu0 %v1397_v4  ;;  %v1400_v7 = vld [vmem:[%s1770_s1 + $0xb0] sm:$0xff]   ;;  %v1404_v11 = vld [vmem:[%s1770_s1 + $0xa8] sm:$0xff]   ;;  %s1616_s30 = scalar_lea.vmem %s1769_s0, %s1382_s19 }
   0xf   : > { %1288 = vmatpush3.bf16.msra.mxu1 %v1396_v3  ;;  %v1405_v12 = vld [vmem:[%s1770_s1 + $0x60] sm:$0xff]   ;;  %v1409_v16 = vld [vmem:[%s1770_s1 + $0x58] sm:$0xff]   ;;  %v1413_v20 = vld [vmem:[%s1770_s1 + $0x50] sm:$0xff]  }
  0x10   : > { %1289 = vmatprep.subr.bf16.mxu1 %v1399_v6  ;;  %v1406_v13 = vld [vmem:[%s1770_s1 + $0x20] sm:$0xff]   ;;  %v1410_v17 = vld [vmem:[%s1770_s1 + $0x18] sm:$0xff]   ;;  %v1414_v21 = vld [vmem:[%s1770_s1 + $0x10] sm:$0xff]   ;;  %v1486_v6 = vmov 0.0  }
  0x11   : > { %1268 = vmatpush3.bf16.msra.mxu0 %v1398_v5  ;;  %v1407_v14 = vld [vmem:[%s1770_s1 + $0xe0] sm:$0xff]   ;;  %v1411_v18 = vld [vmem:[%s1770_s1 + $0xd8] sm:$0xff]   ;;  %v1415_v22 = vld [vmem:[%s1770_s1 + $0xd0] sm:$0xff]  }
  0x12   : > { %1269 = vmatprep.subr.bf16.mxu0 %v1401_v8  ;;  %v1408_v15 = vld [vmem:[%s1770_s1 + $0xa0] sm:$0xff]   ;;  %v1412_v19 = vld [vmem:[%s1770_s1 + $0x98] sm:$0xff]   ;;  %v1416_v23 = vld [vmem:[%s1770_s1 + $0x90] sm:$0xff]  }
  0x13   : > { %1290 = vmatpush3.bf16.msra.mxu1 %v1400_v7  ;;  %v1417_v24 = vld [vmem:[%s1770_s1 + $0x48] sm:$0xff]   ;;  %v1421_v28 = vld [vmem:[%s1770_s1 + $0x40] sm:$0xff]   ;;  %v1428_v34 = vld [vmem:[%s1770_s1 + $0x178] sm:$0xff]  }
  0x14   : > { %1291 = vmatprep.subr.bf16.mxu1 %v1403_v10  ;;  %v1418_v25 = vld [vmem:[%s1770_s1 + $0x8] sm:$0xff]   ;;  %v1422_v29 = vld [vmem:[%s1770_s1] sm:$0xff]   ;;  %v1432_v37 = vld [vmem:[%s1770_s1 + $0x138] sm:$0xff]  }
  0x15   : > { %1270 = vmatpush3.bf16.msra.mxu0 %v1402_v9  ;;  %v1419_v26 = vld [vmem:[%s1770_s1 + $0xc8] sm:$0xff]   ;;  %v1423_v30 = vld [vmem:[%s1770_s1 + $0xc0] sm:$0xff]   ;;  %v1433_v38 = vld [vmem:[%s1770_s1 + $0x1f8] sm:$0xff]  }
  0x16   : > { %1271 = vmatprep.subr.bf16.mxu0 %v1405_v12  ;;  %v1420_v27 = vld [vmem:[%s1770_s1 + $0x88] sm:$0xff]   ;;  %v1424_v31 = vld [vmem:[%s1616_s30] ss:$36 sps:$4 sm:$0xff]   ;;  %v1434_v39 = vld [vmem:[%s1770_s1 + $0x1b8] sm:$0xff]  }
  0x17   : > { %1292 = vmatpush3.bf16.msra.mxu1 %v1404_v11  ;;  %v1426_v32 = vld [vmem:[%s1616_s30 + $0x4] ss:$36 sps:$4 sm:$0xff]   ;;  %v1431_v36 = vld [vmem:[%s1616_s30 + $0xc] ss:$36 sps:$4 sm:$0xff]   ;;  %v1447_v52 = vld [vmem:[%s1770_s1 + $0x158] sm:$0xff]  }
  0x18   : > { %1293 = vmatprep.subr.bf16.mxu1 %v1407_v14  ;;  %v1427_v33 = vld [vmem:[%s1770_s1 + $0x80] sm:$0xff]   ;;  %898 = vmatprep.mubr.bf16.mxu0 %v1426_v32  ;;  %v1429_v35 = vld [vmem:[%s1616_s30 + $0x8] ss:$36 sps:$4 sm:$0xff]   ;;  %v1435_v40 = vld [vmem:[%s1770_s1 + $0x170] sm:$0xff]  }
  0x19   : > { %1272 = vmatpush3.bf16.msra.mxu0 %v1406_v13  ;;  %939 = vmatprep.mubr.bf16.mxu1 %v1431_v36  ;;  %v1436_v41 = vld [vmem:[%s1770_s1 + $0x130] sm:$0xff]   ;;  %v1439_v44 = vld [vmem:[%s1770_s1 + $0x168] sm:$0xff]   ;;  %v1443_v48 = vld [vmem:[%s1770_s1 + $0x160] sm:$0xff]  }
  0x1a   : > { %1273 = vmatprep.subr.bf16.mxu0 %v1409_v16  ;;  %v1437_v42 = vld [vmem:[%s1770_s1 + $0x1f0] sm:$0xff]   ;;  %v1440_v45 = vld [vmem:[%s1770_s1 + $0x128] sm:$0xff]   ;;  %v1444_v49 = vld [vmem:[%s1770_s1 + $0x120] sm:$0xff]  }
  0x1b   : > { %1294 = vmatpush3.bf16.msra.mxu1 %v1408_v15  ;;  %v1438_v43 = vld [vmem:[%s1770_s1 + $0x1b0] sm:$0xff]   ;;  %v1441_v46 = vld [vmem:[%s1770_s1 + $0x1e8] sm:$0xff]   ;;  %v1445_v50 = vld [vmem:[%s1770_s1 + $0x1e0] sm:$0xff]  }
  0x1c   : > { %1295 = vmatprep.subr.bf16.mxu1 %v1411_v18  ;;  %v1442_v47 = vld [vmem:[%s1770_s1 + $0x1a8] sm:$0xff]   ;;  %v1446_v51 = vld [vmem:[%s1770_s1 + $0x1a0] sm:$0xff]   ;;  %v1448_v53 = vld [vmem:[%s1770_s1 + $0x118] sm:$0xff]  }
  0x1d   : > { %1274 = vmatpush3.bf16.msra.mxu0 %v1410_v17  ;;  %v1449_v54 = vld [vmem:[%s1770_s1 + $0x1d8] sm:$0xff]   ;;  %v1451_v56 = vld [vmem:[%s1770_s1 + $0x150] sm:$0xff]   ;;  %v1455_v60 = vld [vmem:[%s1770_s1 + $0x148] sm:$0xff]  }
  0x1e   : > { %1275 = vmatprep.subr.bf16.mxu0 %v1413_v20  ;;  %v1450_v55 = vld [vmem:[%s1770_s1 + $0x198] sm:$0xff]   ;;  %v1452_v57 = vld [vmem:[%s1770_s1 + $0x110] sm:$0xff]   ;;  %v1456_v61 = vld [vmem:[%s1770_s1 + $0x108] sm:$0xff]  }
  0x1f   : > { %1296 = vmatpush3.bf16.msra.mxu1 %v1412_v19  ;;  %v1453_v58 = vld [vmem:[%s1770_s1 + $0x1d0] sm:$0xff]   ;;  %v1457_v62 = vld [vmem:[%s1770_s1 + $0x1c8] sm:$0xff]   ;;  %v1459_v0 = vld [vmem:[%s1770_s1 + $0x140] sm:$0xff]  }
  0x20   : > { %1297 = vmatprep.subr.bf16.mxu1 %v1415_v22  ;;  %v1454_v59 = vld [vmem:[%s1770_s1 + $0x190] sm:$0xff]   ;;  %v1458_v63 = vld [vmem:[%s1770_s1 + $0x188] sm:$0xff]   ;;  %v1460_v1 = vld [vmem:[%s1770_s1 + $0x100] sm:$0xff]  }
  0x21   : > { %1276 = vmatpush3.bf16.msra.mxu0 %v1414_v21  ;;  %v1461_v2 = vld [vmem:[%s1770_s1 + $0x1c0] sm:$0xff]   ;;  %v1462_v3 = vld [vmem:[%s1616_s30 + $0x10] ss:$36 sps:$4 sm:$0xff]   ;;  %v1466_v7 = vld [vmem:[%s1616_s30 + $0x18] ss:$36 sps:$4 sm:$0xff]  }
  0x22   : > { %1277 = vmatprep.subr.bf16.mxu0 %v1417_v24  ;;  %v1464_v4 = vld [vmem:[%s1616_s30 + $0x14] ss:$36 sps:$4 sm:$0xff]   ;;  %v1465_v5 = vld [vmem:[%s1770_s1 + $0x180] sm:$0xff]   ;;  %v1471_v11 = vld [vmem:[%s1770_s1 + $0x228] sm:$0xff]  }
  0x23   : > { %1298 = vmatpush3.bf16.msra.mxu1 %v1416_v23  ;;  %v1468_v8 = vld [vmem:[%s1616_s30 + $0x1c] ss:$36 sps:$4 sm:$0xff]   ;;  %v1470_v10 = vld [vmem:[%s1770_s1 + $0x230] sm:$0xff]   ;;  %v1475_v15 = vld [vmem:[%s1770_s1 + $0x208] sm:$0xff]  }
  0x24   : > { %1299 = vmatprep.subr.bf16.mxu1 %v1419_v26  ;;  %v1469_v9 = vld [vmem:[%s1770_s1 + $0x238] sm:$0xff]   ;;  %v1472_v12 = vld [vmem:[%s1770_s1 + $0x220] sm:$0xff]   ;;  %v1474_v14 = vld [vmem:[%s1770_s1 + $0x210] sm:$0xff]  }
  0x25   : > { %1278 = vmatpush3.bf16.msra.mxu0 %v1418_v25  ;;  %v1473_v13 = vld [vmem:[%s1770_s1 + $0x218] sm:$0xff]   ;;  %v1476_v16 = vld [vmem:[%s1770_s1 + $0x200] sm:$0xff]  }
  0x26   : > { %1279 = vmatprep.subr.bf16.mxu0 %v1421_v28  ;;  %v1477_v17 = vld [vmem:[%s1616_s30 + $0x20] ss:$36 sps:$4 sm:$0xff]   ;;  %s1165_s30 = sshll.u32 %s1775_s21, 2 }
  0x27   : > { %1300 = vmatpush3.bf16.msra.mxu1 %v1420_v27  ;;  %s218_s29 = scalar_lea.vmem %s1772_s3, %s1165_s30  ;;  %s224_s5 = scalar_lea.vmem %s1773_s4, %s1165_s30 }
  0x28   : > { %1301 = vmatprep.subr.bf16.mxu1 %v1423_v30  ;;  %v1168_v30 = vld [vmem:[%s1771_s2] ss:$0 sm:$0xff] }
  0x29   : > { %1280 = vmatpush3.bf16.msra.mxu0 %v1422_v29 }
  0x2a   : > { %1309 = vmatprep.subr.bf16.mxu0 %v1428_v34 }
  0x2b   : > { %1302 = vmatpush3.bf16.msra.mxu1 %v1427_v33 }
  0x2c   : > { %899 = vmatmul.mubr.bf16.vlgmr.msra.gmra.mxu0 %v1424_v31  ;;  %1331 = vmatprep.subr.bf16.mxu1 %v1433_v38 }
  0x2d   : > { %1310 = vmatpush3.bf16.msra.mxu0 %v1432_v37  ;;  %980 = vmatprep.mubr.bf16.mxu0 %v1464_v4 }
  0x2e   : > { %940 = vmatmul.mubr.bf16.vlgmr.msra.gmra.mxu1 %v1429_v35  ;;  %1311 = vmatprep.subr.bf16.mxu0 %v1435_v40 }
  0x2f   : > { %1332 = vmatpush3.bf16.msra.mxu1 %v1434_v39  ;;  %1021 = vmatprep.mubr.bf16.mxu1 %v1468_v8 }
  0x30   : > { %1333 = vmatprep.subr.bf16.mxu1 %v1437_v42 }
  0x31   : > { %1312 = vmatpush3.bf16.msra.mxu0 %v1436_v41 }
  0x32   : > { %1313 = vmatprep.subr.bf16.mxu0 %v1439_v44 }
  0x33   : > { %1334 = vmatpush3.bf16.msra.mxu1 %v1438_v43 }
  0x34   : > { %1335 = vmatprep.subr.bf16.mxu1 %v1441_v46 }
  0x35   : > { %1314 = vmatpush3.bf16.msra.mxu0 %v1440_v45 }
  0x36   : > { %1315 = vmatprep.subr.bf16.mxu0 %v1443_v48 }
  0x37   : > { %1336 = vmatpush3.bf16.msra.mxu1 %v1442_v47  ;;  %v1257_v47 = vld [vmem:[%s218_s29] sm:$0xff]  }
  0x38   : > { %1337 = vmatprep.subr.bf16.mxu1 %v1445_v50 }
  0x39   : > { %1316 = vmatpush3.bf16.msra.mxu0 %v1444_v49 }
  0x3a   : > { %1317 = vmatprep.subr.bf16.mxu0 %v1447_v52 }
  0x3b   : > { %1338 = vmatpush3.bf16.msra.mxu1 %v1446_v51 }
  0x3c   : > { %1339 = vmatprep.subr.bf16.mxu1 %v1449_v54 }
  0x3d   : > { %1318 = vmatpush3.bf16.msra.mxu0 %v1448_v53  ;;  %v1258_v53 = vunpack.c.l.bf16 %v1257_v47 }
  0x3e   : > { %1319 = vmatprep.subr.bf16.mxu0 %v1451_v56  ;;  %v1259_v56 = vunpack.c.h.bf16 %v1257_v47 }
  0x3f   : > { %1340 = vmatpush3.bf16.msra.mxu1 %v1450_v55 }
  0x40   : > { %1341 = vmatprep.subr.bf16.mxu1 %v1453_v58 }
  0x41   : > { %1320 = vmatpush3.bf16.msra.mxu0 %v1452_v57 }
  0x42   : > { %1321 = vmatprep.subr.bf16.mxu0 %v1455_v60 }
  0x43   : > { %1342 = vmatpush3.bf16.msra.mxu1 %v1454_v59 }
  0x44   : > { %1343 = vmatprep.subr.bf16.mxu1 %v1457_v62 }
  0x45   : > { %1322 = vmatpush3.bf16.msra.mxu0 %v1456_v61 }
  0x46   : > { %1323 = vmatprep.subr.bf16.mxu0 %v1459_v0 }
  0x47   : > { %1344 = vmatpush3.bf16.msra.mxu1 %v1458_v63 }
  0x48   : > { %1345 = vmatprep.subr.bf16.mxu1 %v1461_v2 }
  0x49   : > { %1324 = vmatpush3.bf16.msra.mxu0 %v1460_v1 }
  0x4a   : > { %1362 = vmatprep.subr.bf16.mxu0 %v1486_v6 }
  0x4b   : > { %1346 = vmatpush3.bf16.msra.mxu1 %v1465_v5 }
  0x4c   : > { %981 = vmatmul.mubr.bf16.vlgmr.msra.gmra.mxu0 %v1462_v3 }
  0x4d   : > { %1378 = vmatprep.mubr.msk.bf16.mxu0 %vm1487_vm0, %v1486_v6  ;;  %1363 = vmatpush3.bf16.msra.mxu0 %v1469_v9 }
  0x4e   : > { %1022 = vmatmul.mubr.bf16.vlgmr.msra.gmra.mxu1 %v1466_v7  ;;  %1364 = vmatprep.subr.bf16.mxu0 %v1486_v6 }
  0x51   : > { %1365 = vmatpush3.bf16.msra.mxu0 %v1470_v10 }
  0x52   : > { %1366 = vmatprep.subr.bf16.mxu0 %v1486_v6 }
  0x55   : > { %1367 = vmatpush3.bf16.msra.mxu0 %v1471_v11 }
  0x56   : > { %1368 = vmatprep.subr.bf16.mxu0 %v1486_v6 }
  0x59   : > { %1369 = vmatpush3.bf16.msra.mxu0 %v1472_v12 }
  0x5a   : > { %1370 = vmatprep.subr.bf16.mxu0 %v1486_v6 }
  0x5d   : > { %1371 = vmatpush3.bf16.msra.mxu0 %v1473_v13 }
  0x5e   : > { %1372 = vmatprep.subr.bf16.mxu0 %v1486_v6 }
  0x61   : > { %1373 = vmatpush3.bf16.msra.mxu0 %v1474_v14 }
  0x62   : > { %1374 = vmatprep.subr.bf16.mxu0 %v1486_v6 }
  0x65   : > { %1375 = vmatpush3.bf16.msra.mxu0 %v1475_v15 }
  0x66   : > { %1376 = vmatprep.subr.bf16.mxu0 %v1486_v6 }
  0x69   : > { %1377 = vmatpush3.bf16.msra.mxu0 %v1476_v16 }
  0x6c   : > { %1379 = vmatmul.mubr.bf16.vlgmr.msra.gmra.mxu0 %v1477_v17 }
  0xec   : > { %v1281_v18 = vpop.f32.mrf.mxu0 }
  0xee   : > { %v1282_v19 = vpop.f32.mrf.mxu0  ;;  %v1303_v20 = vpop.f32.mrf.mxu1 }
  0xef   : > { %v1283_v29 = vadd.f32 %v1282_v19, %v1281_v18 }
  0xf0   : > { %v1284_v21 = vpop.f32.mrf.mxu0  ;;  %v1304_v22 = vpop.f32.mrf.mxu1 }
  0xf1   : > { %v901_v33 = vadd.f32 %v1283_v29, %v1168_v30  ;;  %v1305_v34 = vadd.f32 %v1304_v22, %v1303_v20 }
  0xf2   : > { %v1285_v23 = vpop.f32.mrf.mxu0  ;;  %v1306_v24 = vpop.f32.mrf.mxu1 }
  0xf3   : > { %v1286_v35 = vadd.f32 %v1285_v23, %v1284_v21  ;;  %v942_v39 = vadd.f32 %v1305_v34, %v901_v33 }
  0xf4   : > { %v1307_v26 = vpop.f32.mrf.mxu1 }
  0xf5   : > { %v904_v40 = vadd.f32 %v1286_v35, %v1168_v30  ;;  %v1308_v41 = vadd.f32 %v1307_v26, %v1306_v24 }
  0xf7   : > { %v945_v46 = vadd.f32 %v1308_v41, %v904_v40 }
 0x10c   : > { %v1325_v25 = vpop.f32.mrf.mxu0 }
 0x10e   : > { %v1326_v27 = vpop.f32.mrf.mxu0  ;;  %v1347_v28 = vpop.f32.mrf.mxu1 }
 0x10f   : > { %v1327_v36 = vadd.f32 %v1326_v27, %v1325_v25 }
 0x110   : > { %v1328_v31 = vpop.f32.mrf.mxu0  ;;  %v1348_v32 = vpop.f32.mrf.mxu1 }
 0x111   : > { %v983_v42 = vadd.f32 %v1327_v36, %v942_v39  ;;  %v1349_v43 = vadd.f32 %v1348_v32, %v1347_v28 }
 0x112   : > { %v1329_v37 = vpop.f32.mrf.mxu0  ;;  %v1350_v38 = vpop.f32.mrf.mxu1 }
 0x113   : > { %v1330_v44 = vadd.f32 %v1329_v37, %v1328_v31  ;;  %v1024_v50 = vadd.f32 %v1349_v43, %v983_v42 }
 0x114   : > { %v1351_v45 = vpop.f32.mrf.mxu1 }
 0x115   : > { %v986_v48 = vadd.f32 %v1330_v44, %v945_v46  ;;  %v1352_v49 = vadd.f32 %v1351_v45, %v1350_v38 }
 0x117   : > { %v1027_v55 = vadd.f32 %v1352_v49, %v986_v48 }
 0x12c   : > { %v1064_v51 = vpop.f32.mrf.mxu0 }
 0x12d   : > { %v1065_v52 = vadd.f32 %v1064_v51, %v1024_v50 }
 0x12e   : > { %v1380_v54 = vpop.f32.mrf.mxu0 }
 0x12f   : > { %v1075_v58 = vadd.f32 %v1258_v53, %v1065_v52 }
 0x130   : > { %v1067_v57 = vpop.f32.mrf.mxu0 }
 0x131   : > { %v1068_v59 = vadd.f32 %v1067_v57, %v1027_v55  ;;  %v1077_v62 = vmax.f32 %v1075_v58, 0.0 }
 0x132   : > { %v1381_v60 = vpop.f32.mrf.mxu0 }
 0x133   : > { %v1076_v61 = vadd.f32 %v1259_v56, %v1068_v59 }
 0x135   : > { %v1078_v63 = vmax.f32 %v1076_v61, 0.0 }
 0x137   : > { %v1263_v0 = vpack.c.bf16 %v1078_v63, %v1077_v62 }
 0x139   : > { %1264 = vst [vmem:[%s224_s5] sm:$0xff] %v1263_v0  }
 0x13a PF: > { %s14_s15 = sadd.s32 1, %s1484_s15  }
 0x13b   : > { %p11_p4 = scmp.ge.s32.totalorder %s14_s15, 4  }
 0x13d   :  { %13 = sbr.rel (!%p11_p4) target bundleno = 1 (0x1), region = 69 }

</bundles_post_ra>
